<compile_context>
chip_gen: v7x
topology: tpu7x:2x2x1
jax: 0.10.0
libtpu: 0.0.40
codegen_flags: <defaults>
</compile_context>

<pallas_src>
import functools
import math

import jax
import jax.numpy as jnp
import numpy as np
from jax.experimental import pallas as pl
from jax.experimental.pallas import tpu as pltpu


def _layernorm(x, gamma, beta, eps):
    mean = jnp.mean(x, axis=-1, keepdims=True)
    cent = x - mean
    var = jnp.mean(cent * cent, axis=-1, keepdims=True)
    return cent * jax.lax.rsqrt(var + eps) * gamma + beta


def encoder_layer_kernel(x_ref, mask_ref,
                         wq_ref, bq_ref, wk_ref, bk_ref, wv_ref, bv_ref,
                         wo_ref, bo_ref,
                         g1_ref, be1_ref,
                         w1_ref, bf1_ref, w2_ref, bf2_ref,
                         g2_ref, be2_ref,
                         out_ref, attnw_ref,
                         *, n_heads, d_k):
    x = x_ref[0]          # (S, D)
    mask = mask_ref[0]    # (S, S)  1.0 == masked

    # QKV projections: (S, D) @ (D, D) on the MXU, f32 accumulation.
    q = jnp.dot(x, wq_ref[...], preferred_element_type=jnp.float32) + bq_ref[...]
    k = jnp.dot(x, wk_ref[...], preferred_element_type=jnp.float32) + bk_ref[...]
    v = jnp.dot(x, wv_ref[...], preferred_element_type=jnp.float32) + bv_ref[...]
    wo = wo_ref[...]      # (D, D), already (in, out)

    scale = 1.0 / math.sqrt(d_k)
    ctx_proj = jnp.zeros(x.shape, jnp.float32)

    # Static unrolled loop over heads: lane slices instead of reshape/transpose,
    # and the output projection is folded into the loop (no concat relayout).
    for h in range(n_heads):
        lo = h * d_k
        q_h = q[:, lo:lo + d_k]                                  # (S, d_k)
        k_h = k[:, lo:lo + d_k]                                  # (S, d_k)
        v_h = v[:, lo:lo + d_k]                                  # (S, d_k)

        # scores = q_h @ k_h.T / sqrt(d_k)   (contract over d_k, no transpose op)
        s_h = jax.lax.dot_general(q_h, k_h, (((1,), (1,)), ((), ())),
                                  preferred_element_type=jnp.float32) * scale
        s_h = jnp.where(mask > 0.5, jnp.float32(-1e9), s_h)
        s_h = s_h - jnp.max(s_h, axis=-1, keepdims=True)
        e = jnp.exp(s_h)
        p_h = e * pl.reciprocal(jnp.sum(e, axis=-1, keepdims=True), approx=True)
        attnw_ref[0, h] = p_h.astype(attnw_ref.dtype)

        ctx_h = jnp.dot(p_h, v_h, preferred_element_type=jnp.float32)       # (S, d_k)
        ctx_proj = ctx_proj + jnp.dot(ctx_h, wo[lo:lo + d_k, :],
                                      preferred_element_type=jnp.float32)   # (S, D)

    attn_out = ctx_proj + bo_ref[...]

    # TODO(synk): nn.Dropout is identity in eval/inference mode; training-mode RNG dropout not implemented.
    h1 = _layernorm(x + attn_out, g1_ref[...], be1_ref[...], 1e-6)

    # Position-wise FFN: relu(h1 @ W1 + b1) @ W2 + b2
    f = jnp.dot(h1, w1_ref[...], preferred_element_type=jnp.float32) + bf1_ref[...]
    f = jnp.maximum(f, 0.0)
    f = jnp.dot(f, w2_ref[...], preferred_element_type=jnp.float32) + bf2_ref[...]

    out = _layernorm(h1 + f, g2_ref[...], be2_ref[...], 1e-6)
    out_ref[0] = out.astype(out_ref.dtype)


def encoder_layer_forward(inputs, attn_mask, params, n_heads):
    """Pallas-backed EncoderLayer forward. Returns (ffn_outputs, attn_weights)."""
    B, S, D = inputs.shape
    assert D % n_heads == 0
    d_k = D // n_heads
    d_ff = params["w1"].shape[0]

    # PyTorch Linear weights are (out, in): pre-transpose in the wrapper so the
    # kernel does plain (S, in) @ (in, out) with no in-kernel transpose.
    wq = jnp.transpose(params["wq"])
    wk = jnp.transpose(params["wk"])
    wv = jnp.transpose(params["wv"])
    wo = jnp.transpose(params["wo"])
    w1 = jnp.transpose(params["w1"])
    w2 = jnp.transpose(params["w2"])

    row = lambda v: v.reshape(1, -1)
    bq, bk, bv, bo = row(params["bq"]), row(params["bk"]), row(params["bv"]), row(params["bo"])
    bf1, bf2 = row(params["b1"]), row(params["b2"])
    g1, be1 = row(params["ln1_g"]), row(params["ln1_b"])
    g2, be2 = row(params["ln2_g"]), row(params["ln2_b"])

    mask_f = attn_mask.astype(jnp.float32)   # 1.0 == masked

    kernel = functools.partial(encoder_layer_kernel, n_heads=n_heads, d_k=d_k)

    def full(shape):
        return pl.BlockSpec(shape, lambda b, _s=len(shape): (0,) * _s)

    grid_spec = pltpu.PrefetchScalarGridSpec(
        num_scalar_prefetch=0,
        grid=(B,),
        in_specs=[
            pl.BlockSpec((1, S, D), lambda b: (b, 0, 0)),    # inputs
            pl.BlockSpec((1, S, S), lambda b: (b, 0, 0)),    # attn mask (f32)
            full((D, D)), full((1, D)),                      # WQ, bQ
            full((D, D)), full((1, D)),                      # WK, bK
            full((D, D)), full((1, D)),                      # WV, bV
            full((D, D)), full((1, D)),                      # WO, bO
            full((1, D)), full((1, D)),                      # ln1 gamma, beta
            full((D, d_ff)), full((1, d_ff)),                # W1, b1
            full((d_ff, D)), full((1, D)),                   # W2, b2
            full((1, D)), full((1, D)),                      # ln2 gamma, beta
        ],
        out_specs=[
            pl.BlockSpec((1, S, D), lambda b: (b, 0, 0)),             # ffn_outputs
            pl.BlockSpec((1, n_heads, S, S), lambda b: (b, 0, 0, 0)),  # attn_weights
        ],
    )

    out, attn_w = pl.pallas_call(
        kernel,
        out_shape=(jax.ShapeDtypeStruct((B, S, D), jnp.float32),
                   jax.ShapeDtypeStruct((B, n_heads, S, S), jnp.float32)),
        grid_spec=grid_spec,
        compiler_params=pltpu.CompilerParams(dimension_semantics=("parallel",)),
    )(inputs, mask_f,
      wq, bq, wk, bk, wv, bv, wo, bo,
      g1, be1, w1, bf1, w2, bf2, g2, be2)
    return out, attn_w


def encoder_layer_reference(inputs, attn_mask, params, n_heads):
    """Pure-JAX reference matching the PyTorch EncoderLayer.forward (eval mode)."""
    B, S, D = inputs.shape
    d_k = D // n_heads
    lin = lambda t, w, b: t @ w.T + b

    q = lin(inputs, params["wq"], params["bq"]).reshape(B, S, n_heads, d_k).transpose(0, 2, 1, 3)
    k = lin(inputs, params["wk"], params["bk"]).reshape(B, S, n_heads, d_k).transpose(0, 2, 1, 3)
    v = lin(inputs, params["wv"], params["bv"]).reshape(B, S, n_heads, d_k).transpose(0, 2, 1, 3)

    scores = jnp.einsum("bhqd,bhkd->bhqk", q, k) / math.sqrt(d_k)
    scores = jnp.where(attn_mask[:, None, :, :], -1e9, scores)
    attn_w = jax.nn.softmax(scores, axis=-1)
    ctx = jnp.einsum("bhqk,bhkd->bhqd", attn_w, v).transpose(0, 2, 1, 3).reshape(B, S, D)
    attn_out = lin(ctx, params["wo"], params["bo"])

    def ln(x, g, b):
        m = jnp.mean(x, -1, keepdims=True)
        var = jnp.mean((x - m) ** 2, -1, keepdims=True)
        return (x - m) / jnp.sqrt(var + 1e-6) * g + b

    h1 = ln(inputs + attn_out, params["ln1_g"], params["ln1_b"])
    f = jax.nn.relu(lin(h1, params["w1"], params["b1"]))
    f = lin(f, params["w2"], params["b2"])
    out = ln(h1 + f, params["ln2_g"], params["ln2_b"])
    return out, attn_w


if __name__ == "__main__":
    # Small but lane-dense / MXU-friendly shapes (multiples of 128 on lane dims).
    B, S = 2, 128
    d_model, n_heads, d_ff = 128, 4, 256

    key = jax.random.PRNGKey(0)
    keys = jax.random.split(key, 16)
    init = lambda k, shape, scale=0.05: scale * jax.random.normal(k, shape, jnp.float32)

    params = {
        "wq": init(keys[0], (d_model, d_model)), "bq": init(keys[1], (d_model,)),
        "wk": init(keys[2], (d_model, d_model)), "bk": init(keys[3], (d_model,)),
        "wv": init(keys[4], (d_model, d_model)), "bv": init(keys[5], (d_model,)),
        "wo": init(keys[6], (d_model, d_model)), "bo": init(keys[7], (d_model,)),
        "ln1_g": jnp.ones((d_model,), jnp.float32),
        "ln1_b": jnp.zeros((d_model,), jnp.float32),
        "w1": init(keys[8], (d_ff, d_model)), "b1": init(keys[9], (d_ff,)),
        "w2": init(keys[10], (d_model, d_ff)), "b2": init(keys[11], (d_model,)),
        "ln2_g": jnp.ones((d_model,), jnp.float32),
        "ln2_b": jnp.zeros((d_model,), jnp.float32),
    }

    inputs = jax.random.normal(keys[12], (B, S, d_model), jnp.float32)

    # Padding-style attention mask: True == masked (keys beyond the valid length).
    lengths = jnp.array([S, S - 37], dtype=jnp.int32)
    attn_mask = jnp.arange(S)[None, None, :] >= lengths[:, None, None]   # (B, 1, S)
    attn_mask = jnp.broadcast_to(attn_mask, (B, S, S))

    out, attn_w = encoder_layer_forward(inputs, attn_mask, params, n_heads)
    out = jax.block_until_ready(out)
    attn_w = jax.block_until_ready(attn_w)

    ref_out, ref_w = encoder_layer_reference(inputs, attn_mask, params, n_heads)
    np.testing.assert_allclose(np.asarray(out), np.asarray(ref_out), rtol=1e-2, atol=1e-2)
    np.testing.assert_allclose(np.asarray(attn_w), np.asarray(ref_w), rtol=1e-2, atol=1e-3)

    print("KERNEL_OK")
</pallas_src>

<mosaic_0001>
module attributes {stable_mosaic.version = 11 : i64} {
  func.func @encoder_layer_kernel(%arg0: i32, %arg1: memref<1x128x128xf32, #tpu.memory_space<vmem>>, %arg2: memref<1x128x128xf32, #tpu.memory_space<vmem>>, %arg3: memref<128x128xf32, #tpu.memory_space<vmem>>, %arg4: memref<1x128xf32, #tpu.memory_space<vmem>>, %arg5: memref<128x128xf32, #tpu.memory_space<vmem>>, %arg6: memref<1x128xf32, #tpu.memory_space<vmem>>, %arg7: memref<128x128xf32, #tpu.memory_space<vmem>>, %arg8: memref<1x128xf32, #tpu.memory_space<vmem>>, %arg9: memref<128x128xf32, #tpu.memory_space<vmem>>, %arg10: memref<1x128xf32, #tpu.memory_space<vmem>>, %arg11: memref<1x128xf32, #tpu.memory_space<vmem>>, %arg12: memref<1x128xf32, #tpu.memory_space<vmem>>, %arg13: memref<128x256xf32, #tpu.memory_space<vmem>>, %arg14: memref<1x256xf32, #tpu.memory_space<vmem>>, %arg15: memref<256x128xf32, #tpu.memory_space<vmem>>, %arg16: memref<1x128xf32, #tpu.memory_space<vmem>>, %arg17: memref<1x128xf32, #tpu.memory_space<vmem>>, %arg18: memref<1x128xf32, #tpu.memory_space<vmem>>, %arg19: memref<1x128x128xf32, #tpu.memory_space<vmem>>, %arg20: memref<1x4x128x128xf32, #tpu.memory_space<vmem>>) attributes {dimension_semantics = [#tpu.dimension_semantics<parallel>], iteration_bounds = array<i64: 2>, scalar_prefetch = 0 : i64, scratch_operands = 0 : i64, tpu.core_type = #tpu.core_type<tc>, window_params = [{transform_indices = @transform_0, window_bounds = array<i64: 1, 128, 128>}, {transform_indices = @transform_1, window_bounds = array<i64: 1, 128, 128>}, {pipeline_mode = #tpu.pipeline_mode<synchronous>, transform_indices = @transform_2, window_bounds = array<i64: 128, 128>}, {pipeline_mode = #tpu.pipeline_mode<synchronous>, transform_indices = @transform_3, window_bounds = array<i64: 1, 128>}, {pipeline_mode = #tpu.pipeline_mode<synchronous>, transform_indices = @transform_4, window_bounds = array<i64: 128, 128>}, {pipeline_mode = #tpu.pipeline_mode<synchronous>, transform_indices = @transform_5, window_bounds = array<i64: 1, 128>}, {pipeline_mode = #tpu.pipeline_mode<synchronous>, transform_indices = @transform_6, window_bounds = array<i64: 128, 128>}, {pipeline_mode = #tpu.pipeline_mode<synchronous>, transform_indices = @transform_7, window_bounds = array<i64: 1, 128>}, {pipeline_mode = #tpu.pipeline_mode<synchronous>, transform_indices = @transform_8, window_bounds = array<i64: 128, 128>}, {pipeline_mode = #tpu.pipeline_mode<synchronous>, transform_indices = @transform_9, window_bounds = array<i64: 1, 128>}, {pipeline_mode = #tpu.pipeline_mode<synchronous>, transform_indices = @transform_10, window_bounds = array<i64: 1, 128>}, {pipeline_mode = #tpu.pipeline_mode<synchronous>, transform_indices = @transform_11, window_bounds = array<i64: 1, 128>}, {pipeline_mode = #tpu.pipeline_mode<synchronous>, transform_indices = @transform_12, window_bounds = array<i64: 128, 256>}, {pipeline_mode = #tpu.pipeline_mode<synchronous>, transform_indices = @transform_13, window_bounds = array<i64: 1, 256>}, {pipeline_mode = #tpu.pipeline_mode<synchronous>, transform_indices = @transform_14, window_bounds = array<i64: 256, 128>}, {pipeline_mode = #tpu.pipeline_mode<synchronous>, transform_indices = @transform_15, window_bounds = array<i64: 1, 128>}, {pipeline_mode = #tpu.pipeline_mode<synchronous>, transform_indices = @transform_16, window_bounds = array<i64: 1, 128>}, {pipeline_mode = #tpu.pipeline_mode<synchronous>, transform_indices = @transform_17, window_bounds = array<i64: 1, 128>}, {transform_indices = @transform_18, window_bounds = array<i64: 1, 128, 128>}, {transform_indices = @transform_19, window_bounds = array<i64: 1, 4, 128, 128>}]} {
    %c0 = arith.constant 0 : index
    %c0_0 = arith.constant 0 : index
    %c0_1 = arith.constant 0 : index
    %0 = vector.load %arg1[%c0, %c0_0, %c0_1] : memref<1x128x128xf32, #tpu.memory_space<vmem>>, vector<1x128x128xf32>
    %1 = vector.shape_cast %0 : vector<1x128x128xf32> to vector<128x128xf32>
    %c0_2 = arith.constant 0 : index
    %c0_3 = arith.constant 0 : index
    %c0_4 = arith.constant 0 : index
    %2 = vector.load %arg2[%c0_2, %c0_3, %c0_4] : memref<1x128x128xf32, #tpu.memory_space<vmem>>, vector<1x128x128xf32>
    %3 = vector.shape_cast %2 : vector<1x128x128xf32> to vector<128x128xf32>
    %c0_5 = arith.constant 0 : index
    %c0_6 = arith.constant 0 : index
    %4 = vector.load %arg3[%c0_5, %c0_6] : memref<128x128xf32, #tpu.memory_space<vmem>>, vector<128x128xf32>
    %cst = arith.constant dense<0.000000e+00> : vector<128x128xf32>
    %5 = tpu.matmul %1, %4, %cst {dimension_numbers = #tpu.dot_dimension_numbers<[1], [0], [0], [1], [0, 0, 1, 1], [], []>} : vector<128x128xf32>, vector<128x128xf32>, vector<128x128xf32> -> vector<128x128xf32>
    %c0_7 = arith.constant 0 : index
    %c0_8 = arith.constant 0 : index
    %6 = vector.load %arg4[%c0_7, %c0_8] : memref<1x128xf32, #tpu.memory_space<vmem>>, vector<1x128xf32>
    %7 = vector.broadcast %6 : vector<1x128xf32> to vector<128x128xf32>
    %8 = arith.addf %5, %7 : vector<128x128xf32>
    %c0_9 = arith.constant 0 : index
    %c0_10 = arith.constant 0 : index
    %9 = vector.load %arg5[%c0_9, %c0_10] : memref<128x128xf32, #tpu.memory_space<vmem>>, vector<128x128xf32>
    %cst_11 = arith.constant dense<0.000000e+00> : vector<128x128xf32>
    %10 = tpu.matmul %1, %9, %cst_11 {dimension_numbers = #tpu.dot_dimension_numbers<[1], [0], [0], [1], [0, 0, 1, 1], [], []>} : vector<128x128xf32>, vector<128x128xf32>, vector<128x128xf32> -> vector<128x128xf32>
    %c0_12 = arith.constant 0 : index
    %c0_13 = arith.constant 0 : index
    %11 = vector.load %arg6[%c0_12, %c0_13] : memref<1x128xf32, #tpu.memory_space<vmem>>, vector<1x128xf32>
    %12 = vector.broadcast %11 : vector<1x128xf32> to vector<128x128xf32>
    %13 = arith.addf %10, %12 : vector<128x128xf32>
    %c0_14 = arith.constant 0 : index
    %c0_15 = arith.constant 0 : index
    %14 = vector.load %arg7[%c0_14, %c0_15] : memref<128x128xf32, #tpu.memory_space<vmem>>, vector<128x128xf32>
    %cst_16 = arith.constant dense<0.000000e+00> : vector<128x128xf32>
    %15 = tpu.matmul %1, %14, %cst_16 {dimension_numbers = #tpu.dot_dimension_numbers<[1], [0], [0], [1], [0, 0, 1, 1], [], []>} : vector<128x128xf32>, vector<128x128xf32>, vector<128x128xf32> -> vector<128x128xf32>
    %c0_17 = arith.constant 0 : index
    %c0_18 = arith.constant 0 : index
    %16 = vector.load %arg8[%c0_17, %c0_18] : memref<1x128xf32, #tpu.memory_space<vmem>>, vector<1x128xf32>
    %17 = vector.broadcast %16 : vector<1x128xf32> to vector<128x128xf32>
    %18 = arith.addf %15, %17 : vector<128x128xf32>
    %c0_19 = arith.constant 0 : index
    %c0_20 = arith.constant 0 : index
    %19 = vector.load %arg9[%c0_19, %c0_20] : memref<128x128xf32, #tpu.memory_space<vmem>>, vector<128x128xf32>
    %cst_21 = arith.constant 0.000000e+00 : f32
    %20 = vector.broadcast %cst_21 : f32 to vector<128x128xf32>
    %21 = vector.extract_strided_slice %8 {offsets = [0, 0], sizes = [128, 32], strides = [1, 1]} : vector<128x128xf32> to vector<128x32xf32>
    %22 = vector.extract_strided_slice %13 {offsets = [0, 0], sizes = [128, 32], strides = [1, 1]} : vector<128x128xf32> to vector<128x32xf32>
    %23 = vector.extract_strided_slice %18 {offsets = [0, 0], sizes = [128, 32], strides = [1, 1]} : vector<128x128xf32> to vector<128x32xf32>
    %cst_22 = arith.constant dense<0.000000e+00> : vector<128x128xf32>
    %24 = tpu.matmul %21, %22, %cst_22 {dimension_numbers = #tpu.dot_dimension_numbers<[1], [1], [0], [0], [0, 0, 1, 0], [], []>} : vector<128x32xf32>, vector<128x32xf32>, vector<128x128xf32> -> vector<128x128xf32>
    %cst_23 = arith.constant 0.176776692 : f32
    %25 = vector.broadcast %cst_23 : f32 to vector<128x128xf32>
    %26 = arith.mulf %24, %25 : vector<128x128xf32>
    %cst_24 = arith.constant 5.000000e-01 : f32
    %27 = vector.broadcast %cst_24 : f32 to vector<128x128xf32>
    %28 = arith.cmpf ogt, %3, %27 : vector<128x128xf32>
    %cst_25 = arith.constant -1.000000e+09 : f32
    %29 = vector.broadcast %cst_25 : f32 to vector<128x128xf32>
    %30 = arith.select %28, %29, %26 : vector<128x128xi1>, vector<128x128xf32>
    %cst_26 = arith.constant dense<0xFF800000> : vector<128xf32>
    %31 = vector.multi_reduction <maximumf>, %30, %cst_26 [1] : vector<128x128xf32> to vector<128xf32>
    %32 = vector.shape_cast %31 : vector<128xf32> to vector<128x1xf32>
    %33 = vector.broadcast %32 : vector<128x1xf32> to vector<128x128xf32>
    %34 = arith.subf %30, %33 : vector<128x128xf32>
    %35 = math.exp %34 : vector<128x128xf32>
    %cst_27 = arith.constant dense<0.000000e+00> : vector<128xf32>
    %36 = vector.multi_reduction <add>, %35, %cst_27 [1] : vector<128x128xf32> to vector<128xf32>
    %37 = vector.shape_cast %36 : vector<128xf32> to vector<128x1xf32>
    %38 = tpu.reciprocal %37 {approx = true} : vector<128x1xf32> -> vector<128x1xf32>
    %39 = vector.broadcast %38 : vector<128x1xf32> to vector<128x128xf32>
    %40 = arith.mulf %35, %39 : vector<128x128xf32>
    %c0_28 = arith.constant 0 : index
    %c0_29 = arith.constant 0 : index
    %c0_30 = arith.constant 0 : index
    %c0_31 = arith.constant 0 : index
    %41 = vector.load %arg20[%c0_28, %c0_29, %c0_30, %c0_31] : memref<1x4x128x128xf32, #tpu.memory_space<vmem>>, vector<1x1x128x128xf32>
    %42 = vector.shape_cast %41 : vector<1x1x128x128xf32> to vector<128x128xf32>
    %43 = vector.shape_cast %40 : vector<128x128xf32> to vector<1x1x128x128xf32>
    tpu.vector_store %arg20[%c0_28, %c0_29, %c0_30, %c0_31], %43 {strides = array<i32>} : memref<1x4x128x128xf32, #tpu.memory_space<vmem>>, vector<1x1x128x128xf32>,
    %cst_32 = arith.constant dense<0.000000e+00> : vector<128x32xf32>
    %44 = tpu.matmul %40, %23, %cst_32 {dimension_numbers = #tpu.dot_dimension_numbers<[1], [0], [0], [1], [0, 0, 1, 1], [], []>} : vector<128x128xf32>, vector<128x32xf32>, vector<128x32xf32> -> vector<128x32xf32>
    %45 = vector.extract_strided_slice %19 {offsets = [0, 0], sizes = [32, 128], strides = [1, 1]} : vector<128x128xf32> to vector<32x128xf32>
    %cst_33 = arith.constant dense<0.000000e+00> : vector<128x128xf32>
    %46 = tpu.matmul %44, %45, %cst_33 {dimension_numbers = #tpu.dot_dimension_numbers<[1], [0], [0], [1], [0, 0, 1, 1], [], []>} : vector<128x32xf32>, vector<32x128xf32>, vector<128x128xf32> -> vector<128x128xf32>
    %47 = arith.addf %20, %46 : vector<128x128xf32>
    %48 = vector.extract_strided_slice %8 {offsets = [0, 32], sizes = [128, 32], strides = [1, 1]} : vector<128x128xf32> to vector<128x32xf32>
    %49 = vector.extract_strided_slice %13 {offsets = [0, 32], sizes = [128, 32], strides = [1, 1]} : vector<128x128xf32> to vector<128x32xf32>
    %50 = vector.extract_strided_slice %18 {offsets = [0, 32], sizes = [128, 32], strides = [1, 1]} : vector<128x128xf32> to vector<128x32xf32>
    %cst_34 = arith.constant dense<0.000000e+00> : vector<128x128xf32>
    %51 = tpu.matmul %48, %49, %cst_34 {dimension_numbers = #tpu.dot_dimension_numbers<[1], [1], [0], [0], [0, 0, 1, 0], [], []>} : vector<128x32xf32>, vector<128x32xf32>, vector<128x128xf32> -> vector<128x128xf32>
    %cst_35 = arith.constant 0.176776692 : f32
    %52 = vector.broadcast %cst_35 : f32 to vector<128x128xf32>
    %53 = arith.mulf %51, %52 : vector<128x128xf32>
    %cst_36 = arith.constant 5.000000e-01 : f32
    %54 = vector.broadcast %cst_36 : f32 to vector<128x128xf32>
    %55 = arith.cmpf ogt, %3, %54 : vector<128x128xf32>
    %cst_37 = arith.constant -1.000000e+09 : f32
    %56 = vector.broadcast %cst_37 : f32 to vector<128x128xf32>
    %57 = arith.select %55, %56, %53 : vector<128x128xi1>, vector<128x128xf32>
    %cst_38 = arith.constant dense<0xFF800000> : vector<128xf32>
    %58 = vector.multi_reduction <maximumf>, %57, %cst_38 [1] : vector<128x128xf32> to vector<128xf32>
    %59 = vector.shape_cast %58 : vector<128xf32> to vector<128x1xf32>
    %60 = vector.broadcast %59 : vector<128x1xf32> to vector<128x128xf32>
    %61 = arith.subf %57, %60 : vector<128x128xf32>
    %62 = math.exp %61 : vector<128x128xf32>
    %cst_39 = arith.constant dense<0.000000e+00> : vector<128xf32>
    %63 = vector.multi_reduction <add>, %62, %cst_39 [1] : vector<128x128xf32> to vector<128xf32>
    %64 = vector.shape_cast %63 : vector<128xf32> to vector<128x1xf32>
    %65 = tpu.reciprocal %64 {approx = true} : vector<128x1xf32> -> vector<128x1xf32>
    %66 = vector.broadcast %65 : vector<128x1xf32> to vector<128x128xf32>
    %67 = arith.mulf %62, %66 : vector<128x128xf32>
    %c0_40 = arith.constant 0 : index
    %c1 = arith.constant 1 : index
    %c0_41 = arith.constant 0 : index
    %c0_42 = arith.constant 0 : index
    %68 = vector.load %arg20[%c0_40, %c1, %c0_41, %c0_42] : memref<1x4x128x128xf32, #tpu.memory_space<vmem>>, vector<1x1x128x128xf32>
    %69 = vector.shape_cast %68 : vector<1x1x128x128xf32> to vector<128x128xf32>
    %70 = vector.shape_cast %67 : vector<128x128xf32> to vector<1x1x128x128xf32>
    tpu.vector_store %arg20[%c0_40, %c1, %c0_41, %c0_42], %70 {strides = array<i32>} : memref<1x4x128x128xf32, #tpu.memory_space<vmem>>, vector<1x1x128x128xf32>,
    %cst_43 = arith.constant dense<0.000000e+00> : vector<128x32xf32>
    %71 = tpu.matmul %67, %50, %cst_43 {dimension_numbers = #tpu.dot_dimension_numbers<[1], [0], [0], [1], [0, 0, 1, 1], [], []>} : vector<128x128xf32>, vector<128x32xf32>, vector<128x32xf32> -> vector<128x32xf32>
    %72 = vector.extract_strided_slice %19 {offsets = [32, 0], sizes = [32, 128], strides = [1, 1]} : vector<128x128xf32> to vector<32x128xf32>
    %cst_44 = arith.constant dense<0.000000e+00> : vector<128x128xf32>
    %73 = tpu.matmul %71, %72, %cst_44 {dimension_numbers = #tpu.dot_dimension_numbers<[1], [0], [0], [1], [0, 0, 1, 1], [], []>} : vector<128x32xf32>, vector<32x128xf32>, vector<128x128xf32> -> vector<128x128xf32>
    %74 = arith.addf %47, %73 : vector<128x128xf32>
    %75 = vector.extract_strided_slice %8 {offsets = [0, 64], sizes = [128, 32], strides = [1, 1]} : vector<128x128xf32> to vector<128x32xf32>
    %76 = vector.extract_strided_slice %13 {offsets = [0, 64], sizes = [128, 32], strides = [1, 1]} : vector<128x128xf32> to vector<128x32xf32>
    %77 = vector.extract_strided_slice %18 {offsets = [0, 64], sizes = [128, 32], strides = [1, 1]} : vector<128x128xf32> to vector<128x32xf32>
    %cst_45 = arith.constant dense<0.000000e+00> : vector<128x128xf32>
    %78 = tpu.matmul %75, %76, %cst_45 {dimension_numbers = #tpu.dot_dimension_numbers<[1], [1], [0], [0], [0, 0, 1, 0], [], []>} : vector<128x32xf32>, vector<128x32xf32>, vector<128x128xf32> -> vector<128x128xf32>
    %cst_46 = arith.constant 0.176776692 : f32
    %79 = vector.broadcast %cst_46 : f32 to vector<128x128xf32>
    %80 = arith.mulf %78, %79 : vector<128x128xf32>
    %cst_47 = arith.constant 5.000000e-01 : f32
    %81 = vector.broadcast %cst_47 : f32 to vector<128x128xf32>
    %82 = arith.cmpf ogt, %3, %81 : vector<128x128xf32>
    %cst_48 = arith.constant -1.000000e+09 : f32
    %83 = vector.broadcast %cst_48 : f32 to vector<128x128xf32>
    %84 = arith.select %82, %83, %80 : vector<128x128xi1>, vector<128x128xf32>
    %cst_49 = arith.constant dense<0xFF800000> : vector<128xf32>
    %85 = vector.multi_reduction <maximumf>, %84, %cst_49 [1] : vector<128x128xf32> to vector<128xf32>
    %86 = vector.shape_cast %85 : vector<128xf32> to vector<128x1xf32>
    %87 = vector.broadcast %86 : vector<128x1xf32> to vector<128x128xf32>
    %88 = arith.subf %84, %87 : vector<128x128xf32>
    %89 = math.exp %88 : vector<128x128xf32>
    %cst_50 = arith.constant dense<0.000000e+00> : vector<128xf32>
    %90 = vector.multi_reduction <add>, %89, %cst_50 [1] : vector<128x128xf32> to vector<128xf32>
    %91 = vector.shape_cast %90 : vector<128xf32> to vector<128x1xf32>
    %92 = tpu.reciprocal %91 {approx = true} : vector<128x1xf32> -> vector<128x1xf32>
    %93 = vector.broadcast %92 : vector<128x1xf32> to vector<128x128xf32>
    %94 = arith.mulf %89, %93 : vector<128x128xf32>
    %c0_51 = arith.constant 0 : index
    %c2 = arith.constant 2 : index
    %c0_52 = arith.constant 0 : index
    %c0_53 = arith.constant 0 : index
    %95 = vector.load %arg20[%c0_51, %c2, %c0_52, %c0_53] : memref<1x4x128x128xf32, #tpu.memory_space<vmem>>, vector<1x1x128x128xf32>
    %96 = vector.shape_cast %95 : vector<1x1x128x128xf32> to vector<128x128xf32>
    %97 = vector.shape_cast %94 : vector<128x128xf32> to vector<1x1x128x128xf32>
    tpu.vector_store %arg20[%c0_51, %c2, %c0_52, %c0_53], %97 {strides = array<i32>} : memref<1x4x128x128xf32, #tpu.memory_space<vmem>>, vector<1x1x128x128xf32>,
    %cst_54 = arith.constant dense<0.000000e+00> : vector<128x32xf32>
    %98 = tpu.matmul %94, %77, %cst_54 {dimension_numbers = #tpu.dot_dimension_numbers<[1], [0], [0], [1], [0, 0, 1, 1], [], []>} : vector<128x128xf32>, vector<128x32xf32>, vector<128x32xf32> -> vector<128x32xf32>
    %99 = vector.extract_strided_slice %19 {offsets = [64, 0], sizes = [32, 128], strides = [1, 1]} : vector<128x128xf32> to vector<32x128xf32>
    %cst_55 = arith.constant dense<0.000000e+00> : vector<128x128xf32>
    %100 = tpu.matmul %98, %99, %cst_55 {dimension_numbers = #tpu.dot_dimension_numbers<[1], [0], [0], [1], [0, 0, 1, 1], [], []>} : vector<128x32xf32>, vector<32x128xf32>, vector<128x128xf32> -> vector<128x128xf32>
    %101 = arith.addf %74, %100 : vector<128x128xf32>
    %102 = vector.extract_strided_slice %8 {offsets = [0, 96], sizes = [128, 32], strides = [1, 1]} : vector<128x128xf32> to vector<128x32xf32>
    %103 = vector.extract_strided_slice %13 {offsets = [0, 96], sizes = [128, 32], strides = [1, 1]} : vector<128x128xf32> to vector<128x32xf32>
    %104 = vector.extract_strided_slice %18 {offsets = [0, 96], sizes = [128, 32], strides = [1, 1]} : vector<128x128xf32> to vector<128x32xf32>
    %cst_56 = arith.constant dense<0.000000e+00> : vector<128x128xf32>
    %105 = tpu.matmul %102, %103, %cst_56 {dimension_numbers = #tpu.dot_dimension_numbers<[1], [1], [0], [0], [0, 0, 1, 0], [], []>} : vector<128x32xf32>, vector<128x32xf32>, vector<128x128xf32> -> vector<128x128xf32>
    %cst_57 = arith.constant 0.176776692 : f32
    %106 = vector.broadcast %cst_57 : f32 to vector<128x128xf32>
    %107 = arith.mulf %105, %106 : vector<128x128xf32>
    %cst_58 = arith.constant 5.000000e-01 : f32
    %108 = vector.broadcast %cst_58 : f32 to vector<128x128xf32>
    %109 = arith.cmpf ogt, %3, %108 : vector<128x128xf32>
    %cst_59 = arith.constant -1.000000e+09 : f32
    %110 = vector.broadcast %cst_59 : f32 to vector<128x128xf32>
    %111 = arith.select %109, %110, %107 : vector<128x128xi1>, vector<128x128xf32>
    %cst_60 = arith.constant dense<0xFF800000> : vector<128xf32>
    %112 = vector.multi_reduction <maximumf>, %111, %cst_60 [1] : vector<128x128xf32> to vector<128xf32>
    %113 = vector.shape_cast %112 : vector<128xf32> to vector<128x1xf32>
    %114 = vector.broadcast %113 : vector<128x1xf32> to vector<128x128xf32>
    %115 = arith.subf %111, %114 : vector<128x128xf32>
    %116 = math.exp %115 : vector<128x128xf32>
    %cst_61 = arith.constant dense<0.000000e+00> : vector<128xf32>
    %117 = vector.multi_reduction <add>, %116, %cst_61 [1] : vector<128x128xf32> to vector<128xf32>
    %118 = vector.shape_cast %117 : vector<128xf32> to vector<128x1xf32>
    %119 = tpu.reciprocal %118 {approx = true} : vector<128x1xf32> -> vector<128x1xf32>
    %120 = vector.broadcast %119 : vector<128x1xf32> to vector<128x128xf32>
    %121 = arith.mulf %116, %120 : vector<128x128xf32>
    %c0_62 = arith.constant 0 : index
    %c3 = arith.constant 3 : index
    %c0_63 = arith.constant 0 : index
    %c0_64 = arith.constant 0 : index
    %122 = vector.load %arg20[%c0_62, %c3, %c0_63, %c0_64] : memref<1x4x128x128xf32, #tpu.memory_space<vmem>>, vector<1x1x128x128xf32>
    %123 = vector.shape_cast %122 : vector<1x1x128x128xf32> to vector<128x128xf32>
    %124 = vector.shape_cast %121 : vector<128x128xf32> to vector<1x1x128x128xf32>
    tpu.vector_store %arg20[%c0_62, %c3, %c0_63, %c0_64], %124 {strides = array<i32>} : memref<1x4x128x128xf32, #tpu.memory_space<vmem>>, vector<1x1x128x128xf32>,
    %cst_65 = arith.constant dense<0.000000e+00> : vector<128x32xf32>
    %125 = tpu.matmul %121, %104, %cst_65 {dimension_numbers = #tpu.dot_dimension_numbers<[1], [0], [0], [1], [0, 0, 1, 1], [], []>} : vector<128x128xf32>, vector<128x32xf32>, vector<128x32xf32> -> vector<128x32xf32>
    %126 = vector.extract_strided_slice %19 {offsets = [96, 0], sizes = [32, 128], strides = [1, 1]} : vector<128x128xf32> to vector<32x128xf32>
    %cst_66 = arith.constant dense<0.000000e+00> : vector<128x128xf32>
    %127 = tpu.matmul %125, %126, %cst_66 {dimension_numbers = #tpu.dot_dimension_numbers<[1], [0], [0], [1], [0, 0, 1, 1], [], []>} : vector<128x32xf32>, vector<32x128xf32>, vector<128x128xf32> -> vector<128x128xf32>
    %128 = arith.addf %101, %127 : vector<128x128xf32>
    %c0_67 = arith.constant 0 : index
    %c0_68 = arith.constant 0 : index
    %129 = vector.load %arg10[%c0_67, %c0_68] : memref<1x128xf32, #tpu.memory_space<vmem>>, vector<1x128xf32>
    %130 = vector.broadcast %129 : vector<1x128xf32> to vector<128x128xf32>
    %131 = arith.addf %128, %130 : vector<128x128xf32>
    %132 = arith.addf %1, %131 : vector<128x128xf32>
    %c0_69 = arith.constant 0 : index
    %c0_70 = arith.constant 0 : index
    %133 = vector.load %arg11[%c0_69, %c0_70] : memref<1x128xf32, #tpu.memory_space<vmem>>, vector<1x128xf32>
    %c0_71 = arith.constant 0 : index
    %c0_72 = arith.constant 0 : index
    %134 = vector.load %arg12[%c0_71, %c0_72] : memref<1x128xf32, #tpu.memory_space<vmem>>, vector<1x128xf32>
    %cst_73 = arith.constant dense<0.000000e+00> : vector<128xf32>
    %135 = vector.multi_reduction <add>, %132, %cst_73 [1] : vector<128x128xf32> to vector<128xf32>
    %136 = vector.shape_cast %135 : vector<128xf32> to vector<128x1xf32>
    %cst_74 = arith.constant 1.280000e+02 : f32
    %137 = vector.broadcast %cst_74 : f32 to vector<128x1xf32>
    %138 = arith.divf %136, %137 : vector<128x1xf32>
    %139 = vector.broadcast %138 : vector<128x1xf32> to vector<128x128xf32>
    %140 = arith.subf %132, %139 : vector<128x128xf32>
    %141 = arith.mulf %140, %140 : vector<128x128xf32>
    %cst_75 = arith.constant dense<0.000000e+00> : vector<128xf32>
    %142 = vector.multi_reduction <add>, %141, %cst_75 [1] : vector<128x128xf32> to vector<128xf32>
    %143 = vector.shape_cast %142 : vector<128xf32> to vector<128x1xf32>
    %cst_76 = arith.constant 1.280000e+02 : f32
    %144 = vector.broadcast %cst_76 : f32 to vector<128x1xf32>
    %145 = arith.divf %143, %144 : vector<128x1xf32>
    %cst_77 = arith.constant 9.99999997E-7 : f32
    %146 = vector.broadcast %cst_77 : f32 to vector<128x1xf32>
    %147 = arith.addf %145, %146 : vector<128x1xf32>
    %148 = math.rsqrt %147 : vector<128x1xf32>
    %149 = vector.broadcast %148 : vector<128x1xf32> to vector<128x128xf32>
    %150 = arith.mulf %140, %149 : vector<128x128xf32>
    %151 = vector.broadcast %133 : vector<1x128xf32> to vector<128x128xf32>
    %152 = arith.mulf %150, %151 : vector<128x128xf32>
    %153 = vector.broadcast %134 : vector<1x128xf32> to vector<128x128xf32>
    %154 = arith.addf %152, %153 : vector<128x128xf32>
    %c0_78 = arith.constant 0 : index
    %c0_79 = arith.constant 0 : index
    %155 = vector.load %arg13[%c0_78, %c0_79] : memref<128x256xf32, #tpu.memory_space<vmem>>, vector<128x256xf32>
    %cst_80 = arith.constant dense<0.000000e+00> : vector<128x256xf32>
    %156 = tpu.matmul %154, %155, %cst_80 {dimension_numbers = #tpu.dot_dimension_numbers<[1], [0], [0], [1], [0, 0, 1, 1], [], []>} : vector<128x128xf32>, vector<128x256xf32>, vector<128x256xf32> -> vector<128x256xf32>
    %c0_81 = arith.constant 0 : index
    %c0_82 = arith.constant 0 : index
    %157 = vector.load %arg14[%c0_81, %c0_82] : memref<1x256xf32, #tpu.memory_space<vmem>>, vector<1x256xf32>
    %158 = vector.broadcast %157 : vector<1x256xf32> to vector<128x256xf32>
    %159 = arith.addf %156, %158 : vector<128x256xf32>
    %cst_83 = arith.constant 0.000000e+00 : f32
    %160 = vector.broadcast %cst_83 : f32 to vector<128x256xf32>
    %161 = arith.maximumf %159, %160 : vector<128x256xf32>
    %c0_84 = arith.constant 0 : index
    %c0_85 = arith.constant 0 : index
    %162 = vector.load %arg15[%c0_84, %c0_85] : memref<256x128xf32, #tpu.memory_space<vmem>>, vector<256x128xf32>
    %cst_86 = arith.constant dense<0.000000e+00> : vector<128x128xf32>
    %163 = tpu.matmul %161, %162, %cst_86 {dimension_numbers = #tpu.dot_dimension_numbers<[1], [0], [0], [1], [0, 0, 1, 1], [], []>} : vector<128x256xf32>, vector<256x128xf32>, vector<128x128xf32> -> vector<128x128xf32>
    %c0_87 = arith.constant 0 : index
    %c0_88 = arith.constant 0 : index
    %164 = vector.load %arg16[%c0_87, %c0_88] : memref<1x128xf32, #tpu.memory_space<vmem>>, vector<1x128xf32>
    %165 = vector.broadcast %164 : vector<1x128xf32> to vector<128x128xf32>
    %166 = arith.addf %163, %165 : vector<128x128xf32>
    %167 = arith.addf %154, %166 : vector<128x128xf32>
    %c0_89 = arith.constant 0 : index
    %c0_90 = arith.constant 0 : index
    %168 = vector.load %arg17[%c0_89, %c0_90] : memref<1x128xf32, #tpu.memory_space<vmem>>, vector<1x128xf32>
    %c0_91 = arith.constant 0 : index
    %c0_92 = arith.constant 0 : index
    %169 = vector.load %arg18[%c0_91, %c0_92] : memref<1x128xf32, #tpu.memory_space<vmem>>, vector<1x128xf32>
    %cst_93 = arith.constant dense<0.000000e+00> : vector<128xf32>
    %170 = vector.multi_reduction <add>, %167, %cst_93 [1] : vector<128x128xf32> to vector<128xf32>
    %171 = vector.shape_cast %170 : vector<128xf32> to vector<128x1xf32>
    %cst_94 = arith.constant 1.280000e+02 : f32
    %172 = vector.broadcast %cst_94 : f32 to vector<128x1xf32>
    %173 = arith.divf %171, %172 : vector<128x1xf32>
    %174 = vector.broadcast %173 : vector<128x1xf32> to vector<128x128xf32>
    %175 = arith.subf %167, %174 : vector<128x128xf32>
    %176 = arith.mulf %175, %175 : vector<128x128xf32>
    %cst_95 = arith.constant dense<0.000000e+00> : vector<128xf32>
    %177 = vector.multi_reduction <add>, %176, %cst_95 [1] : vector<128x128xf32> to vector<128xf32>
    %178 = vector.shape_cast %177 : vector<128xf32> to vector<128x1xf32>
    %cst_96 = arith.constant 1.280000e+02 : f32
    %179 = vector.broadcast %cst_96 : f32 to vector<128x1xf32>
    %180 = arith.divf %178, %179 : vector<128x1xf32>
    %cst_97 = arith.constant 9.99999997E-7 : f32
    %181 = vector.broadcast %cst_97 : f32 to vector<128x1xf32>
    %182 = arith.addf %180, %181 : vector<128x1xf32>
    %183 = math.rsqrt %182 : vector<128x1xf32>
    %184 = vector.broadcast %183 : vector<128x1xf32> to vector<128x128xf32>
    %185 = arith.mulf %175, %184 : vector<128x128xf32>
    %186 = vector.broadcast %168 : vector<1x128xf32> to vector<128x128xf32>
    %187 = arith.mulf %185, %186 : vector<128x128xf32>
    %188 = vector.broadcast %169 : vector<1x128xf32> to vector<128x128xf32>
    %189 = arith.addf %187, %188 : vector<128x128xf32>
    %c0_98 = arith.constant 0 : index
    %c0_99 = arith.constant 0 : index
    %c0_100 = arith.constant 0 : index
    %190 = vector.load %arg19[%c0_98, %c0_99, %c0_100] : memref<1x128x128xf32, #tpu.memory_space<vmem>>, vector<1x128x128xf32>
    %191 = vector.shape_cast %190 : vector<1x128x128xf32> to vector<128x128xf32>
    %192 = vector.shape_cast %189 : vector<128x128xf32> to vector<1x128x128xf32>
    tpu.vector_store %arg19[%c0_98, %c0_99, %c0_100], %192 {strides = array<i32>} : memref<1x128x128xf32, #tpu.memory_space<vmem>>, vector<1x128x128xf32>,
    return
  }
  func.func @transform_0(%arg0: i32) -> (i32, i32, i32) {
    %c0_i32 = arith.constant 0 : i32
    %c0_i32_0 = arith.constant 0 : i32
    %c0_i32_1 = arith.constant 0 : i32
    return %arg0, %c0_i32, %c0_i32_0 : i32, i32, i32
  }
  func.func @transform_1(%arg0: i32) -> (i32, i32, i32) {
    %c0_i32 = arith.constant 0 : i32
    %c0_i32_0 = arith.constant 0 : i32
    %c0_i32_1 = arith.constant 0 : i32
    return %arg0, %c0_i32, %c0_i32_0 : i32, i32, i32
  }
  func.func @transform_2(%arg0: i32) -> (i32, i32) {
    %c0_i32 = arith.constant 0 : i32
    %c0_i32_0 = arith.constant 0 : i32
    %c0_i32_1 = arith.constant 0 : i32
    return %c0_i32, %c0_i32_0 : i32, i32
  }
  func.func @transform_3(%arg0: i32) -> (i32, i32) {
    %c0_i32 = arith.constant 0 : i32
    %c0_i32_0 = arith.constant 0 : i32
    %c0_i32_1 = arith.constant 0 : i32
    return %c0_i32, %c0_i32_0 : i32, i32
  }
  func.func @transform_4(%arg0: i32) -> (i32, i32) {
    %c0_i32 = arith.constant 0 : i32
    %c0_i32_0 = arith.constant 0 : i32
    %c0_i32_1 = arith.constant 0 : i32
    return %c0_i32, %c0_i32_0 : i32, i32
  }
  func.func @transform_5(%arg0: i32) -> (i32, i32) {
    %c0_i32 = arith.constant 0 : i32
    %c0_i32_0 = arith.constant 0 : i32
    %c0_i32_1 = arith.constant 0 : i32
    return %c0_i32, %c0_i32_0 : i32, i32
  }
  func.func @transform_6(%arg0: i32) -> (i32, i32) {
    %c0_i32 = arith.constant 0 : i32
    %c0_i32_0 = arith.constant 0 : i32
    %c0_i32_1 = arith.constant 0 : i32
    return %c0_i32, %c0_i32_0 : i32, i32
  }
  func.func @transform_7(%arg0: i32) -> (i32, i32) {
    %c0_i32 = arith.constant 0 : i32
    %c0_i32_0 = arith.constant 0 : i32
    %c0_i32_1 = arith.constant 0 : i32
    return %c0_i32, %c0_i32_0 : i32, i32
  }
  func.func @transform_8(%arg0: i32) -> (i32, i32) {
    %c0_i32 = arith.constant 0 : i32
    %c0_i32_0 = arith.constant 0 : i32
    %c0_i32_1 = arith.constant 0 : i32
    return %c0_i32, %c0_i32_0 : i32, i32
  }
  func.func @transform_9(%arg0: i32) -> (i32, i32) {
    %c0_i32 = arith.constant 0 : i32
    %c0_i32_0 = arith.constant 0 : i32
    %c0_i32_1 = arith.constant 0 : i32
    return %c0_i32, %c0_i32_0 : i32, i32
  }
  func.func @transform_10(%arg0: i32) -> (i32, i32) {
    %c0_i32 = arith.constant 0 : i32
    %c0_i32_0 = arith.constant 0 : i32
    %c0_i32_1 = arith.constant 0 : i32
    return %c0_i32, %c0_i32_0 : i32, i32
  }
  func.func @transform_11(%arg0: i32) -> (i32, i32) {
    %c0_i32 = arith.constant 0 : i32
    %c0_i32_0 = arith.constant 0 : i32
    %c0_i32_1 = arith.constant 0 : i32
    return %c0_i32, %c0_i32_0 : i32, i32
  }
  func.func @transform_12(%arg0: i32) -> (i32, i32) {
    %c0_i32 = arith.constant 0 : i32
    %c0_i32_0 = arith.constant 0 : i32
    %c0_i32_1 = arith.constant 0 : i32
    return %c0_i32, %c0_i32_0 : i32, i32
  }
  func.func @transform_13(%arg0: i32) -> (i32, i32) {
    %c0_i32 = arith.constant 0 : i32
    %c0_i32_0 = arith.constant 0 : i32
    %c0_i32_1 = arith.constant 0 : i32
    return %c0_i32, %c0_i32_0 : i32, i32
  }
  func.func @transform_14(%arg0: i32) -> (i32, i32) {
    %c0_i32 = arith.constant 0 : i32
    %c0_i32_0 = arith.constant 0 : i32
    %c0_i32_1 = arith.constant 0 : i32
    return %c0_i32, %c0_i32_0 : i32, i32
  }
  func.func @transform_15(%arg0: i32) -> (i32, i32) {
    %c0_i32 = arith.constant 0 : i32
    %c0_i32_0 = arith.constant 0 : i32
    %c0_i32_1 = arith.constant 0 : i32
    return %c0_i32, %c0_i32_0 : i32, i32
  }
  func.func @transform_16(%arg0: i32) -> (i32, i32) {
    %c0_i32 = arith.constant 0 : i32
    %c0_i32_0 = arith.constant 0 : i32
    %c0_i32_1 = arith.constant 0 : i32
    return %c0_i32, %c0_i32_0 : i32, i32
  }
  func.func @transform_17(%arg0: i32) -> (i32, i32) {
    %c0_i32 = arith.constant 0 : i32
    %c0_i32_0 = arith.constant 0 : i32
    %c0_i32_1 = arith.constant 0 : i32
    return %c0_i32, %c0_i32_0 : i32, i32
  }
  func.func @transform_18(%arg0: i32) -> (i32, i32, i32) {
    %c0_i32 = arith.constant 0 : i32
    %c0_i32_0 = arith.constant 0 : i32
    %c0_i32_1 = arith.constant 0 : i32
    return %arg0, %c0_i32, %c0_i32_0 : i32, i32, i32
  }
  func.func @transform_19(%arg0: i32) -> (i32, i32, i32, i32) {
    %c0_i32 = arith.constant 0 : i32
    %c0_i32_0 = arith.constant 0 : i32
    %c0_i32_1 = arith.constant 0 : i32
    %c0_i32_2 = arith.constant 0 : i32
    return %arg0, %c0_i32, %c0_i32_0, %c0_i32_1 : i32, i32, i32, i32
  }
}

</mosaic_0001>

<bundles_post_ra>
// kernel: tpu_custom_call.1
= control target key start
LH: loop header
LB: loop body
LE: loop exit
PB: predicated region body
PF: predicated region fallthrough
CT: control target
= control target key end

     0   :  { %s11922_s0 = inlined_call_operand.hbm [shape: f32[2,128,128], index: 0, kind: input, shape index: {}]   ;;  %s11923_s1 = inlined_call_operand.hbm [shape: f32[2,128,128], index: 1, kind: input, shape index: {}]   ;;  %s11924_s2 = inlined_call_operand.hbm [shape: f32[128,128], index: 2, kind: input, shape index: {}]   ;;  %s11925_s3 = inlined_call_operand.vmem [shape: f32[1,128], index: 3, kind: input, shape index: {}]   ;;  %s11926_s4 = inlined_call_operand.hbm [shape: f32[128,128], index: 4, kind: input, shape index: {}]   ;;  %s11927_s5 = inlined_call_operand.vmem [shape: f32[1,128], index: 5, kind: input, shape index: {}]   ;;  %s11928_s6 = inlined_call_operand.hbm [shape: f32[128,128], index: 6, kind: input, shape index: {}]   ;;  %s11929_s7 = inlined_call_operand.vmem [shape: f32[1,128], index: 7, kind: input, shape index: {}]   ;;  %s11930_s8 = inlined_call_operand.hbm [shape: f32[128,128], index: 8, kind: input, shape index: {}]   ;;  %s11931_s9 = inlined_call_operand.vmem [shape: f32[1,128], index: 9, kind: input, shape index: {}]   ;;  %s11932_s10 = inlined_call_operand.vmem [shape: f32[1,128], index: 10, kind: input, shape index: {}]   ;;  %s11933_s11 = inlined_call_operand.vmem [shape: f32[1,128], index: 11, kind: input, shape index: {}]   ;;  %s11934_s12 = inlined_call_operand.hbm [shape: f32[128,256], index: 12, kind: input, shape index: {}]   ;;  %s11935_s13 = inlined_call_operand.vmem [shape: f32[1,256], index: 13, kind: input, shape index: {}]   ;;  %s11936_s14 = inlined_call_operand.hbm [shape: f32[256,128], index: 14, kind: input, shape index: {}]   ;;  %s11937_s15 = inlined_call_operand.vmem [shape: f32[1,128], index: 15, kind: input, shape index: {}]   ;;  %s11938_s16 = inlined_call_operand.vmem [shape: f32[1,128], index: 16, kind: input, shape index: {}]   ;;  %s11939_s17 = inlined_call_operand.vmem [shape: f32[1,128], index: 17, kind: input, shape index: {}]   ;;  %s11940_s18 = inlined_call_operand.hbm [shape: f32[2,128,128], index: 18, kind: output, shape index: {0}]   ;;  %s11941_s19 = inlined_call_operand.hbm [shape: f32[2,4,128,128], index: 19, kind: output, shape index: {1}]  }
   0x1   :  { %12020 = sst [smem:[#allocation67_spill]] %s11922_s0 }
   0x2   :  { %12021 = sst [smem:[#allocation68_spill]] %s11923_s1 }
   0x3   :  { %12022 = sst [smem:[#allocation69_spill]] %s11924_s2 }
   0x4   :  { %12023 = sst [smem:[#allocation70_spill]] %s11925_s3 }
   0x5   :  { %12024 = sst [smem:[#allocation71_spill]] %s11926_s4 }
   0x6   :  { %12025 = sst [smem:[#allocation72_spill]] %s11928_s6 }
   0x7   :  { %12026 = sst [smem:[#allocation73_spill]] %s11930_s8 }
   0x8   :  { %12027 = sst [smem:[#allocation74_spill]] %s11932_s10 }
   0x9   :  { %12028 = sst [smem:[#allocation75_spill]] %s11933_s11 }
   0xa   :  { %12029 = sst [smem:[#allocation76_spill]] %s11934_s12 }
   0xb   :  { %12030 = sst [smem:[#allocation77_spill]] %s11935_s13 }
   0xc   :  { %12031 = sst [smem:[#allocation78_spill]] %s11936_s14 }
   0xd   :  { %12032 = sst [smem:[#allocation79_spill]] %s11937_s15 }
   0xe   :  { %12033 = sst [smem:[#allocation80_spill]] %s11938_s16 }
   0xf   :  { %12034 = sst [smem:[#allocation81_spill]] %s11939_s17 }
  0x10   :  { %12035 = sst [smem:[#allocation82_spill]] %s11940_s18 }
  0x11   :  { %12036 = sst [smem:[#allocation83_spill]] %s11941_s19 }
  0x12   :  { %25 = vsyncpa [#allocation3], 0 }
  0x13   :  { %27 = vsyncpa [#allocation3 + $0x1], 0 }
  0x14   :  { %28 = vsyncpa [#allocation6], 0 }
  0x15   :  { %30 = vsyncpa [#allocation6 + $0x1], 0 }
  0x16   :  { %31 = vsyncpa [#allocation9], 0 }
  0x17   :  { %32 = vsyncpa [#allocation12], 0 }
  0x18   :  { %33 = vsyncpa [#allocation15], 0 }
  0x19   :  { %34 = vsyncpa [#allocation4], 0 }
  0x1a   :  { %36 = vsyncpa [#allocation4 + $0x1], 0 }
  0x1b   :  { %37 = vsyncpa [#allocation18], 0 }
  0x1c   :  { %39 = vsyncpa [#allocation18 + $0x1], 0  ;;  %s9150_s0 = smov 0   ;;  %s9152_s30 = smov 0  }
  0x1d   :  { %s9154_s20 = smov 0   ;;  %s9156_s21 = smov 0  }
  0x1e LB: > { %s9030_s1 = smov [#allocation7]   ;;  %s9171_s2 = sadd.s32 4294967295, %s9028_s21   ;;  %s9028_s21 = sphi %s9156_s21, %s12208_s21   ;;  %s9024_s20 = sphi %s9154_s20, %s12207_s20   ;;  %s9020_s30 = sphi %s9152_s30, %s12206_s30   ;;  %s9016_s0 = sphi %s9150_s0, %s12205_s0  }
  0x1f   : > { %s502_s22 = sshll.u32 %s9030_s1, 4  ;;  %p5861_p0 = scmp.ge.s32.totalorder %s9028_s21, 1  ;;  %s9176_s22 = int_to_ptr.vmem [resolvable:$true] %s502_s22 }
  0x20   : > { %p11948_p1 = scmp.eq.s32.totalorder %s9171_s2, 0  ;;  %p490_p2 = scmp.lt.s32.totalorder %s9028_s21, 3 }
  0x21   : > { %s9031_s24 = smov [#allocation8]   ;;  %s9032_s26 = smov [#allocation11]  }
  0x22   : > { %p9178_p3 = pnand %p5861_p0, %p490_p2  ;;  %s518_s25 = sshll.u32 %s9031_s24, 4  ;;  %s9191_s25 = int_to_ptr.vmem [resolvable:$true] %s518_s25 }
  0x23   : > { %s550_s27 = sshll.u32 %s9032_s26, 4  ;;  %s12039_s1 = sld [smem:[#allocation69_spill]]  ;;  %s9193_s27 = int_to_ptr.vmem [resolvable:$true] %s550_s27 }
  0x24   : > { %s12037_s23 = scalar_select %p9178_p3, 1, 0 }
  0x25   : > { %p8011_p5 = pneg %p9178_p3 }
  0x27   : > { %p9187_p6 = pnand %p8011_p5, %p11948_p1 }
  0x29   : > { %s8682_s18 = scalar_lea.hbm %s12039_s1, 2048  ;;  %p9203_p8 = pneg %p9187_p6 }
  0x2a   : > { %p8683_p7 = scmp.ne.s32.totalorder %s12039_s1, %s8682_s18  ;;  %p8689_p11 = scmp.lt.u32.totalorder %s8682_s18, %s12039_s1 }
  0x2c   : > { %p8685_p9 = pnand %p9203_p8, %p8683_p7 }
  0x2e   : > { %p8686_p10 = pneg %p8685_p9 }
  0x30   : > { %p8691_p12 = pnand %p8689_p11, %p8686_p10 }
  0x32   : > { %8694 = shalt.err (!%p8691_p12)
}
  0x33   : > { %s8695_s16 = scalar_lea.vmem %s9176_s22, 2048  ;;  %p8703_p5 = scmp.lt.s32.totalorder %s9176_s22, %s9176_s22 }
  0x34   : > { %p8696_p13 = scmp.ne.s32.totalorder %s9176_s22, %s8695_s16  ;;  %p8704_p4 = scmp.lt.s32.totalorder %s8695_s16, %s8695_s16 }
  0x36   : > { %p8698_p0 = pnand %p8696_p13, %p9203_p8  ;;  %p8705_p7 = por %p8704_p4, %p8703_p5 }
  0x38   : > { %p8699_p2 = pneg %p8698_p0 }
  0x3a   : > { %p8706_p9 = pnand %p8705_p7, %p8699_p2 }
  0x3c   : > { %8709 = shalt.err (!%p8706_p9)
}
  0x3d   : > { %s11950_s17 = smov 128   ;;  %s11952_s18 = smov 8  }
  0x3e   : > { %8014 = dma.hbm_to_vmem [thread:$0]  (!%p9187_p6), %s12039_s1, 2048, %s9176_s22, [#allocation6], %s11950_s17, %s11950_s17, %s11952_s18  }
  0x3f   : > { %s12041_s4 = sld [smem:[#allocation71_spill]] }
  0x45   : > { %s8710_s16 = scalar_lea.hbm %s12041_s4, 2048 }
  0x46   : > { %p8711_p4 = scmp.ne.s32.totalorder %s12041_s4, %s8710_s16  ;;  %p8717_p12 = scmp.lt.u32.totalorder %s8710_s16, %s12041_s4 }
  0x48   : > { %p8713_p10 = pnand %p8711_p4, %p9203_p8 }
  0x4a   : > { %p8714_p11 = pneg %p8713_p10 }
  0x4c   : > { %p8719_p13 = pnand %p8717_p12, %p8714_p11 }
  0x4e   : > { %8722 = shalt.err (!%p8719_p13)
}
  0x4f   : > { %s8723_s22 = scalar_lea.vmem %s9191_s25, 2048  ;;  %p8731_p7 = scmp.lt.s32.totalorder %s9191_s25, %s9191_s25 }
  0x50   : > { %p8724_p0 = scmp.ne.s32.totalorder %s9191_s25, %s8723_s22  ;;  %p8732_p9 = scmp.lt.s32.totalorder %s8723_s22, %s8723_s22 }
  0x52   : > { %p8726_p2 = pnand %p8724_p0, %p9203_p8  ;;  %p8733_p4 = por %p8732_p9, %p8731_p7 }
  0x54   : > { %p8727_p5 = pneg %p8726_p2 }
  0x56   : > { %p8734_p10 = pnand %p8733_p4, %p8727_p5 }
  0x58   : > { %8737 = shalt.err (!%p8734_p10)
}
  0x59   : > { %8017 = dma.hbm_to_vmem [thread:$0]  (!%p9187_p6), %s12041_s4, 2048, %s9191_s25, [#allocation9], %s11950_s17, %s11950_s17, %s11952_s18  }
  0x5a   : > { %s12042_s8 = sld [smem:[#allocation73_spill]] }
  0x60   : > { %s8738_s19 = scalar_lea.hbm %s12042_s8, 2048 }
  0x61   : > { %p8739_p11 = scmp.ne.s32.totalorder %s12042_s8, %s8738_s19  ;;  %p8745_p0 = scmp.lt.u32.totalorder %s8738_s19, %s12042_s8 }
  0x63   : > { %p8741_p12 = pnand %p8739_p11, %p9203_p8 }
  0x65   : > { %p8742_p13 = pneg %p8741_p12 }
  0x67   : > { %p8747_p2 = pnand %p8745_p0, %p8742_p13 }
  0x69   : > { %8750 = shalt.err (!%p8747_p2)
}
  0x6a   : > { %s8751_s25 = scalar_lea.vmem %s9193_s27, 2048  ;;  %p8759_p4 = scmp.lt.s32.totalorder %s9193_s27, %s9193_s27 }
  0x6b   : > { %p8752_p5 = scmp.ne.s32.totalorder %s9193_s27, %s8751_s25  ;;  %p8760_p10 = scmp.lt.s32.totalorder %s8751_s25, %s8751_s25 }
  0x6d   : > { %p8754_p7 = pnand %p8752_p5, %p9203_p8  ;;  %p8761_p11 = por %p8760_p10, %p8759_p4 }
  0x6f   : > { %p8755_p9 = pneg %p8754_p7 }
  0x71   : > { %p8762_p12 = pnand %p8761_p11, %p8755_p9 }
  0x73   : > { %8765 = shalt.err (!%p8762_p12)
}
  0x74   : > { %8023 = dma.hbm_to_vmem [thread:$0]  (!%p9187_p6), %s12042_s8, 2048, %s9193_s27, [#allocation12], %s11950_s17, %s11950_s17, %s11952_s18  }
  0x75   : > { %s9035_s11 = smov [#allocation10]   ;;  %s9036_s15 = smov [#allocation13]  }
  0x76   : > { %s534_s13 = sshll.u32 %s9035_s11, 4  ;;  %s572_s19 = sshll.u32 %s9036_s15, 4  ;;  %s535_s13 = int_to_ptr.vmem [resolvable:$true] %s534_s13  ;;  %s573_s19 = int_to_ptr.vmem [resolvable:$true] %s572_s19 }
  0x77   : > { %s12043_s6 = sld [smem:[#allocation72_spill]] }
  0x7d   : > { %s8766_s26 = scalar_lea.hbm %s12043_s6, 2048 }
  0x7e   : > { %p8767_p13 = scmp.ne.s32.totalorder %s12043_s6, %s8766_s26  ;;  %p8773_p5 = scmp.lt.u32.totalorder %s8766_s26, %s12043_s6 }
  0x80   : > { %p8769_p0 = pnand %p8767_p13, %p9203_p8 }
  0x82   : > { %p8770_p2 = pneg %p8769_p0 }
  0x84   : > { %p8775_p7 = pnand %p8773_p5, %p8770_p2 }
  0x86   : > { %8778 = shalt.err (!%p8775_p7)
}
  0x87   : > { %s8779_s27 = scalar_lea.vmem %s535_s13, 2048  ;;  %p8787_p11 = scmp.lt.s32.totalorder %s535_s13, %s535_s13 }
  0x88   : > { %p8780_p9 = scmp.ne.s32.totalorder %s535_s13, %s8779_s27  ;;  %p8788_p12 = scmp.lt.s32.totalorder %s8779_s27, %s8779_s27 }
  0x8a   : > { %p8782_p4 = pnand %p8780_p9, %p9203_p8  ;;  %p8789_p1 = por %p8788_p12, %p8787_p11 }
  0x8c   : > { %p8783_p10 = pneg %p8782_p4 }
  0x8e   : > { %p8790_p3 = pnand %p8789_p1, %p8783_p10 }
  0x90   : > { %8793 = shalt.err (!%p8790_p3)
}
  0x91   : > { %8020 = dma.hbm_to_vmem [thread:$0]  (!%p9187_p6), %s12043_s6, 2048, %s535_s13, [#allocation9], %s11950_s17, %s11950_s17, %s11952_s18  }
  0x92   : > { %s12044_s12 = sld [smem:[#allocation76_spill]] }
  0x98   : > { %s8794_s28 = scalar_lea.hbm %s12044_s12, 4096 }
  0x99   : > { %p8795_p1 = scmp.ne.s32.totalorder %s12044_s12, %s8794_s28  ;;  %p8801_p0 = scmp.lt.u32.totalorder %s8794_s28, %s12044_s12 }
  0x9b   : > { %p8797_p3 = pnand %p8795_p1, %p9203_p8 }
  0x9d   : > { %p8798_p13 = pneg %p8797_p3 }
  0x9f   : > { %p8803_p2 = pnand %p8801_p0, %p8798_p13 }
  0xa1   : > { %8806 = shalt.err (!%p8803_p2)
}
  0xa2   : > { %s8807_s22 = scalar_lea.vmem %s573_s19, 4096  ;;  %p8815_p4 = scmp.lt.s32.totalorder %s573_s19, %s573_s19 }
  0xa3   : > { %p8808_p5 = scmp.ne.s32.totalorder %s573_s19, %s8807_s22  ;;  %p8816_p10 = scmp.lt.s32.totalorder %s8807_s22, %s8807_s22 }
  0xa5   : > { %p8810_p7 = pnand %p8808_p5, %p9203_p8  ;;  %p8817_p11 = por %p8816_p10, %p8815_p4 }
  0xa7   : > { %p8811_p9 = pneg %p8810_p7 }
  0xa9   : > { %p8818_p12 = pnand %p8817_p11, %p8811_p9 }
  0xab   : > { %8821 = shalt.err (!%p8818_p12)
}
  0xac   : > { %s9037_s13 = smov 256   ;;  %s9038_s27 = smov 16  }
  0xad   : > { %8026 = dma.hbm_to_vmem [thread:$0]  (!%p9187_p6), %s12044_s12, 4096, %s573_s19, [#allocation12], %s9037_s13, %s9037_s13, %s9038_s27  }
  0xae   : > { %s9039_s11 = smov [#allocation14]   ;;  %s12045_s14 = sld [smem:[#allocation78_spill]] }
  0xaf   : > { %s588_s15 = sshll.u32 %s9039_s11, 4  ;;  %s589_s15 = int_to_ptr.vmem [resolvable:$true] %s588_s15 }
  0xb4   : > { %s8822_s26 = scalar_lea.hbm %s12045_s14, 4096 }
  0xb5   : > { %p8823_p1 = scmp.ne.s32.totalorder %s12045_s14, %s8822_s26  ;;  %p8829_p0 = scmp.lt.u32.totalorder %s8822_s26, %s12045_s14 }
  0xb7   : > { %p8825_p3 = pnand %p8823_p1, %p9203_p8 }
  0xb9   : > { %p8826_p13 = pneg %p8825_p3 }
  0xbb   : > { %p8831_p2 = pnand %p8829_p0, %p8826_p13 }
  0xbd   : > { %8834 = shalt.err (!%p8831_p2)
}
  0xbe   : > { %s8835_s19 = scalar_lea.vmem %s589_s15, 4096  ;;  %p8843_p4 = scmp.lt.s32.totalorder %s589_s15, %s589_s15 }
  0xbf   : > { %p8836_p5 = scmp.ne.s32.totalorder %s589_s15, %s8835_s19  ;;  %p8844_p10 = scmp.lt.s32.totalorder %s8835_s19, %s8835_s19 }
  0xc1   : > { %p8838_p7 = pnand %p8836_p5, %p9203_p8  ;;  %p8845_p11 = por %p8844_p10, %p8843_p4 }
  0xc3   : > { %p8839_p9 = pneg %p8838_p7 }
  0xc5   : > { %p8846_p12 = pnand %p8845_p11, %p8839_p9 }
  0xc7   : > { %8849 = shalt.err (!%p8846_p12)
}
  0xc8   : > { %s12046_s13 = smov 128   ;;  %s5860_s3 = sadd.s32 4294967294, %s9028_s21  }
  0xc9   : > { %8029 = dma.hbm_to_vmem [thread:$0]  (!%p9187_p6), %s12045_s14, 4096, %s589_s15, [#allocation15], %s12046_s13, %s12046_s13, %s11952_s18  }
  0xca   : > { %s9341_s24 = sadd.s32 1, %s9028_s21   ;;  %s52_s10 = sadd.s32 1, %s9024_s20 }
  0xcb   : > { %s49_s1 = ssub.s32 %s9028_s21, %s9341_s24  ;;  %p59_p1 = scmp.ne.s32.totalorder %s9024_s20, %s9020_s30 }
  0xcc   : > { %p50_p8 = scmp.eq.s32.totalorder %s49_s1, 0  ;;  %p60_p3 = scmp.eq.s32.totalorder %s9028_s21, 0 }
  0xcd   : > { %p65_p13 = scmp.ne.s32.totalorder %s9020_s30, %s9016_s0  ;;  %p12049_p2 = scmp.eq.s32.totalorder %s9171_s2, 0 }
  0xce   : > { %s9352_s11 = scalar_select %p50_p8, %s9024_s20, %s52_s10  }
  0xcf   : > { %p9354_p0 = por %p60_p3, %p59_p1  ;;  %p9360_p6 = por %p12049_p2, %p65_p13 }
  0xd0   : > { %12047 = sst [smem:[#allocation27_spill]] %s9352_s11  ;;  %p451_p5 = scmp.eq.s32.totalorder %s9171_s2, 1 }
  0xd1   : > { %p457_p7 = scmp.eq.s32.totalorder %s5860_s3, 1  ;;  %p8050_p9 = scmp.lt.s32.totalorder %s9028_s21, 2 }
  0xd2   : > { %s611_s29 = sand.u32 1, %s9024_s20   ;;  %p9367_p4 = por %p451_p5, %p59_p1 }
  0xd3   : > { %p9371_p10 = por %p457_p7, %p65_p13  ;;  %s5869_s25 = sshll.u32 %s611_s29, 7 }
  0xd4   : > { %s12051_s26 = scalar_select %p9367_p4, 1, 0 }
  0xd5   : > { %s12052_s16 = scalar_select %p9371_p10, 1, 0 }
  0xd6   : > { %s6143_s22 = sshll.u32 %s9028_s21, 11  ;;  %s12053_s27 = sld [smem:[#allocation67_spill]] }
  0xd7   : > { %s615_s3 = scalar_lea.vmem [#allocation2], %s5869_s25  ;;  %p9385_p11 = pnand %p8050_p9, %p9354_p0 }
  0xd8   : > { %s622_s10 = sshll.u32 %s615_s3, 4  ;;  %s12055_s8 = sld [smem:[#allocation68_spill]]  ;;  %s9381_s10 = int_to_ptr.vmem [resolvable:$true] %s622_s10 }
  0xd9   : > { %s636_s17 = scalar_lea.vmem [#allocation5], %s5869_s25  ;;  %s9396_s14 = scalar_lea.sflag [#allocation3], %s611_s29 }
  0xda   : > { %s9394_s12 = sshll.u32 %s636_s17, 4  ;;  %p8852_p8 = pneg %p9385_p11  ;;  %s9428_s12 = int_to_ptr.vmem [resolvable:$true] %s9394_s12 }
  0xdc   : > { %s9379_s1 = scalar_lea.hbm %s12053_s27, %s6143_s22  ;;  %s8855_s4 = scalar_lea.hbm %s12053_s27, 4096 }
  0xdd   : > { %s8850_s3 = scalar_lea.hbm %s9379_s1, 2048  ;;  %p8856_p13 = scmp.lt.u32.totalorder %s9379_s1, %s12053_s27 }
  0xde   : > { %s9392_s19 = scalar_lea.hbm %s12055_s8, %s6143_s22  ;;  %p8851_p12 = scmp.ne.s32.totalorder %s9379_s1, %s8850_s3 }
  0xdf   : > { %p8857_p0 = scmp.lt.u32.totalorder %s8855_s4, %s8850_s3  ;;  %p8859_p5 = scmp.lt.u32.totalorder %s8850_s3, %s9379_s1 }
  0xe0   : > { %p8853_p1 = pnand %p8852_p8, %p8851_p12 }
  0xe1   : > { %p8858_p2 = por %p8857_p0, %p8856_p13 }
  0xe2   : > { %p8854_p3 = pneg %p8853_p1 }
  0xe3   : > { %p8860_p7 = por %p8859_p5, %p8858_p2 }
  0xe5   : > { %p8861_p9 = pnand %p8860_p7, %p8854_p3 }
  0xe7   : > { %8864 = shalt.err (!%p8861_p9)
}
  0xe8   : > { %s8865_s29 = scalar_lea.vmem %s9381_s10, 2048  ;;  %s9040_s11 = smov [#allocation2]  }
  0xe9   : > { %p8866_p12 = scmp.ne.s32.totalorder %s9381_s10, %s8865_s29  ;;  %s8870_s25 = sshll.u32 %s9040_s11, 4  ;;  %s8871_s25 = int_to_ptr.vmem [resolvable:$false] %s8870_s25 }
  0xea   : > { %s8872_s17 = scalar_lea.vmem %s8871_s25, 4096  ;;  %p8873_p4 = scmp.lt.s32.totalorder %s9381_s10, %s8871_s25 }
  0xeb   : > { %p8868_p1 = pnand %p8866_p12, %p8852_p8  ;;  %p8874_p13 = scmp.lt.s32.totalorder %s8872_s17, %s8865_s29 }
  0xed   : > { %p8869_p10 = pneg %p8868_p1  ;;  %p8875_p0 = por %p8874_p13, %p8873_p4 }
  0xef   : > { %p8876_p2 = pnand %p8875_p0, %p8869_p10 }
  0xf1   : > { %8879 = shalt.err (!%p8876_p2)
}
  0xf2   : > { %s12056_s3 = smov 8   ;;  %s632_s28 = sand.u32 1, %s9028_s21  }
  0xf3   : > { %8033 = dma.hbm_to_vmem [thread:$0]  (!%p9385_p11), %s9379_s1, 2048, %s9381_s10, %s9396_s14, %s12046_s13, %s12046_s13, %s12056_s3  }
  0xf4   : > { %s9431_s4 = scalar_lea.sflag [#allocation6], %s632_s28  ;;  %s8880_s6 = scalar_lea.hbm %s9392_s19, 2048 }
  0xf5   : > { %p8881_p4 = scmp.ne.s32.totalorder %s9392_s19, %s8880_s6  ;;  %s8885_s11 = scalar_lea.hbm %s12055_s8, 4096 }
  0xf6   : > { %p8886_p5 = scmp.lt.u32.totalorder %s9392_s19, %s12055_s8  ;;  %p8887_p7 = scmp.lt.u32.totalorder %s8885_s11, %s8880_s6 }
  0xf7   : > { %p8883_p10 = pnand %p8881_p4, %p8852_p8  ;;  %p8889_p12 = scmp.lt.u32.totalorder %s8880_s6, %s9392_s19 }
  0xf8   : > { %p8888_p9 = por %p8887_p7, %p8886_p5 }
  0xf9   : > { %p8884_p3 = pneg %p8883_p10 }
  0xfa   : > { %p8890_p1 = por %p8889_p12, %p8888_p9 }
  0xfc   : > { %p8891_p13 = pnand %p8890_p1, %p8884_p3 }
  0xfe   : > { %8894 = shalt.err (!%p8891_p13)
}
  0xff   : > { %s8895_s14 = scalar_lea.vmem %s9428_s12, 2048  ;;  %s9041_s1 = smov [#allocation5]  }
 0x100   : > { %p8896_p0 = scmp.ne.s32.totalorder %s9428_s12, %s8895_s14  ;;  %s8900_s10 = sshll.u32 %s9041_s1, 4  ;;  %s8901_s10 = int_to_ptr.vmem [resolvable:$false] %s8900_s10 }
 0x101   : > { %s8902_s28 = scalar_lea.vmem %s8901_s10, 4096  ;;  %p8903_p10 = scmp.lt.s32.totalorder %s9428_s12, %s8901_s10 }
 0x102   : > { %p8898_p2 = pnand %p8896_p0, %p8852_p8  ;;  %p8904_p5 = scmp.lt.s32.totalorder %s8902_s28, %s8895_s14 }
 0x104   : > { %p8899_p4 = pneg %p8898_p2  ;;  %p8905_p7 = por %p8904_p5, %p8903_p10 }
 0x106   : > { %p8906_p9 = pnand %p8905_p7, %p8899_p4 }
 0x108   : > { %8909 = shalt.err (!%p8906_p9)
}
 0x109   : > { %8036 = dma.hbm_to_vmem [thread:$0]  (!%p9385_p11), %s9392_s19, 2048, %s9428_s12, %s9431_s4, %s12046_s13, %s12046_s13, %s12056_s3  }
 0x10a   : > { %p12057_p8 = scmp.ne.s32.totalorder %s12037_s23, 0 }
 0x10c   : > { %655 = sbr.rel (%p12057_p8) target bundleno = 4040 (0xfc8), region = 92 }
 0x113   : > { %s9463_s6 = sand.u32 1, %s9020_s30  }
 0x114   : > { %s9466_s22 = sshll.u32 %s9463_s6, 7  ;;  %s658_s18 = scalar_lea.sflag [#allocation3], %s9463_s6 }
 0x115   : > { %s9470_s29 = scalar_lea.vmem [#allocation2], %s9466_s22 }
 0x116   : > { %8983 = dma.done.wait (%p9360_p6), %s658_s18, 2048  }
 0x117   : > { %8985 = vsyncadd (%p9360_p6), %s658_s18, 4294965248  ;;  %s666_s12 = sand.u32 1, %s9171_s2   ;;  %s9478_s13 = scalar_lea.vmem [#allocation5], %s9466_s22 }
 0x118   : > { %s667_s23 = scalar_lea.sflag [#allocation6], %s666_s12 }
 0x119   : > { %8987 = dma.done.wait (%p9360_p6), %s667_s23, 2048  }
 0x11a   : > { %8989 = vsyncadd (%p9360_p6), %s667_s23, 4294965248  ;;  %p12058_p11 = scmp.eq.s32.totalorder %s9171_s2, 0 }
 0x11c   : > { %8991 = dma.done.wait (%p12058_p11), [#allocation6], 2048   ;;  %p12059_p3 = pmov %p12058_p11 }
 0x11e   : > { %8993 = vsyncadd (%p12059_p3), [#allocation6], 4294965248  ;;  %p12060_p12 = pmov %p12059_p3 }
 0x11f   : > { %p12061_p1 = pmov %p12059_p3 }
 0x120   : > { %8995 = dma.done.wait (%p12060_p12), [#allocation9], 4096  }
 0x121   : > { %8997 = vsyncadd (%p12061_p1), [#allocation9], 4294963200  ;;  %p12062_p13 = pmov %p12061_p1 }
 0x122   : > { %p12063_p0 = pmov %p12061_p1 }
 0x123   : > { %8999 = dma.done.wait (%p12062_p13), [#allocation12], 6144  }
 0x124   : > { %9001 = vsyncadd (%p12063_p0), [#allocation12], 4294961152  ;;  %p12064_p6 = pmov %p12063_p0 }
 0x125   : > { %p12065_p2 = pmov %p12063_p0 }
 0x126   : > { %9003 = dma.done.wait (%p12064_p6), [#allocation15], 4096  }
 0x127   : > { %9005 = vsyncadd (%p12065_p2), [#allocation15], 4294963200  ;;  %v959_v0 = vld [vmem:[#allocation8] sm:$0xff]  ;;  %v960_v1 = vld [vmem:[#allocation8 + $0x8] sm:$0xff]  ;;  %vm1311_vm0 = vcmask 261120   ;;  %s9042_s3 = smov 96  }
 0x128   : > { %v961_v2 = vld [vmem:[#allocation8 + $0x10] sm:$0xff]  ;;  %v7435_v3 = vpack.c.bf16 %v960_v1, %v959_v0  ;;  %v962_v4 = vld [vmem:[#allocation8 + $0x18] sm:$0xff]  ;;  %v963_v6 = vld [vmem:[#allocation8 + $0x20] sm:$0xff]  ;;  %s12068_s25 = sld [smem:[#allocation70_spill]]  ;;  %s9043_s1 = smov 64  }
 0x129   : > { %v7439_v5 = vpack.c.bf16 %v962_v4, %v961_v2  ;;  %v964_v7 = vld [vmem:[#allocation8 + $0x28] sm:$0xff]  ;;  %v9501_v9 = vld [vmem:[%s9470_s29] sm:$0xff]  ;;  %v965_v10 = vld [vmem:[#allocation8 + $0x30] sm:$0xff]  ;;  %s5885_s10 = sshll.u32 %s9463_s6, 9  ;;  %s9044_s18 = smov 32  }
 0x12a   : > { %7436 = vmatprep.subr.bf16.mxu1 %v7435_v3  ;;  %v7443_v8 = vpack.c.bf16 %v964_v7, %v963_v6  ;;  %v966_v11 = vld [vmem:[#allocation8 + $0x38] sm:$0xff]  ;;  %6747 = vmatprep.mubr.f32.mxu1 %v9501_v9  ;;  %v791_v12 = vld [vmem:[#allocation7] sm:$0xff]  ;;  %v792_v13 = vld [vmem:[#allocation7 + $0x8] sm:$0xff]  ;;  %s10083_s28 = scalar_lea.vmem [#allocation17], %s5885_s10  ;;  %s12193_s15 = sld [smem:[#allocation74_spill]] }
 0x12b   : > { %7438 = vmatpush3.bf16.msra.mxu1 %v7435_v3  ;;  %6691 = vmatprep.mubr.f32.mxu0 %v9501_v9  ;;  %v793_v14 = vld [vmem:[#allocation7 + $0x10] sm:$0xff]  ;;  %v7447_v15 = vpack.c.bf16 %v966_v11, %v965_v10  ;;  %v967_v16 = vld [vmem:[#allocation8 + $0x40] sm:$0xff]  ;;  %v7403_v17 = vpack.c.bf16 %v792_v13, %v791_v12  ;;  %v794_v18 = vld [vmem:[#allocation7 + $0x18] sm:$0xff]  ;;  %s12194_s4 = sld [smem:[#allocation75_spill]]  ;;  %s12195_s17 = sld [smem:[#allocation77_spill]] }
 0x12c   : > { %7440 = vmatprep.subr.bf16.mxu1 %v7439_v5  ;;  %v968_v19 = vld [vmem:[#allocation8 + $0x48] sm:$0xff]  ;;  %v7407_v20 = vpack.c.bf16 %v794_v18, %v793_v14  ;;  %v795_v21 = vld [vmem:[#allocation7 + $0x20] sm:$0xff]  ;;  %v969_v24 = vld [vmem:[#allocation8 + $0x50] sm:$0xff]  ;;  %s12196_s10 = sld [smem:[#allocation79_spill]]  ;;  %s5675_s12 = sshll.u32 %s10083_s28, 4  ;;  %s11762_s12 = int_to_ptr.vmem [resolvable:$true] %s5675_s12 }
 0x12d   : > { %v796_v22 = vld [vmem:[#allocation7 + $0x28] sm:$0xff]  ;;  %7404 = vmatprep.subr.bf16.mxu0 %v7403_v17  ;;  %v7451_v23 = vpack.c.bf16 %v968_v19, %v967_v16  ;;  %v970_v26 = vld [vmem:[#allocation8 + $0x58] sm:$0xff]  ;;  %v797_v27 = vld [vmem:[#allocation7 + $0x30] sm:$0xff]  ;;  %s5646_s19 = scalar_lea.sflag [#allocation18], %s9463_s6  ;;  %p12198_p10 = scmp.ne.s32.totalorder %s12051_s26, 0 }
 0x12e   : > { %7406 = vmatpush3.bf16.msra.mxu0 %v7403_v17  ;;  %v7411_v25 = vpack.c.bf16 %v796_v22, %v795_v21  ;;  %v798_v28 = vld [vmem:[#allocation7 + $0x38] sm:$0xff]  ;;  %v7455_v29 = vpack.c.bf16 %v970_v26, %v969_v24  ;;  %v971_v30 = vld [vmem:[#allocation8 + $0x60] sm:$0xff]  ;;  %v972_v32 = vld [vmem:[#allocation8 + $0x68] sm:$0xff] }
 0x12f   : > { %7442 = vmatpush3.bf16.msra.mxu1 %v7439_v5  ;;  %7408 = vmatprep.subr.bf16.mxu0 %v7407_v20  ;;  %v7415_v31 = vpack.c.bf16 %v798_v28, %v797_v27  ;;  %v799_v33 = vld [vmem:[#allocation7 + $0x40] sm:$0xff]  ;;  %v800_v34 = vld [vmem:[#allocation7 + $0x48] sm:$0xff]  ;;  %v7459_v35 = vpack.c.bf16 %v972_v32, %v971_v30  ;;  %v973_v36 = vld [vmem:[#allocation8 + $0x70] sm:$0xff] }
 0x130   : > { %7444 = vmatprep.subr.bf16.mxu1 %v7443_v8  ;;  %v7419_v37 = vpack.c.bf16 %v800_v34, %v799_v33  ;;  %v974_v38 = vld [vmem:[#allocation8 + $0x78] sm:$0xff]  ;;  %v801_v39 = vld [vmem:[#allocation7 + $0x50] sm:$0xff]  ;;  %v803_v43 = vld [vmem:[#allocation7 + $0x60] sm:$0xff] }
 0x131   : > { %v802_v40 = vld [vmem:[#allocation7 + $0x58] sm:$0xff]  ;;  %v7463_v41 = vpack.c.bf16 %v974_v38, %v973_v36  ;;  %v804_v44 = vld [vmem:[#allocation7 + $0x68] sm:$0xff]  ;;  %v805_v46 = vld [vmem:[#allocation7 + $0x70] sm:$0xff] }
 0x132   : > { %7410 = vmatpush3.bf16.msra.mxu0 %v7407_v20  ;;  %v7423_v42 = vpack.c.bf16 %v802_v40, %v801_v39  ;;  %v7427_v45 = vpack.c.bf16 %v804_v44, %v803_v43  ;;  %v806_v47 = vld [vmem:[#allocation7 + $0x78] sm:$0xff]  ;;  %v9506_v48 = vld [vmem:[%s9470_s29 + $0x8] sm:$0xff]  ;;  %v9509_v49 = vld [vmem:[%s9470_s29 + $0x10] sm:$0xff] }
 0x133   : > { %7446 = vmatpush3.bf16.msra.mxu1 %v7443_v8  ;;  %7412 = vmatprep.subr.bf16.mxu0 %v7411_v25  ;;  %v7431_v50 = vpack.c.bf16 %v806_v47, %v805_v46  ;;  %v1127_v51 = vld [vmem:[#allocation10] sm:$0xff]  ;;  %v1128_v52 = vld [vmem:[#allocation10 + $0x8] sm:$0xff]  ;;  %v9514_v53 = vld [vmem:[%s9470_s29 + $0x18] sm:$0xff] }
 0x134   : > { %7448 = vmatprep.subr.bf16.mxu1 %v7447_v15  ;;  %v9517_v54 = vld [vmem:[%s9470_s29 + $0x20] sm:$0xff]  ;;  %v7467_v55 = vpack.c.bf16 %v1128_v52, %v1127_v51  ;;  %v1129_v56 = vld [vmem:[#allocation10 + $0x10] sm:$0xff]  ;;  %v1130_v57 = vld [vmem:[#allocation10 + $0x18] sm:$0xff] }
 0x135   : > { %v9522_v58 = vld [vmem:[%s9470_s29 + $0x28] sm:$0xff]  ;;  %v9525_v59 = vld [vmem:[%s9470_s29 + $0x30] sm:$0xff]  ;;  %v7471_v60 = vpack.c.bf16 %v1130_v57, %v1129_v56  ;;  %v1131_v61 = vld [vmem:[#allocation10 + $0x20] sm:$0xff] }
 0x136   : > { %7414 = vmatpush3.bf16.msra.mxu0 %v7411_v25  ;;  %v1132_v62 = vld [vmem:[#allocation10 + $0x28] sm:$0xff]  ;;  %v9531_v63 = vld [vmem:[%s9470_s29 + $0x38] sm:$0xff]  ;;  %v9534_v0 = vld [vmem:[%s9470_s29 + $0x40] sm:$0xff] }
 0x137   : > { %7450 = vmatpush3.bf16.msra.mxu1 %v7447_v15  ;;  %7416 = vmatprep.subr.bf16.mxu0 %v7415_v31  ;;  %v7475_v1 = vpack.c.bf16 %v1132_v62, %v1131_v61  ;;  %v1133_v2 = vld [vmem:[#allocation10 + $0x30] sm:$0xff]  ;;  %v1134_v3 = vld [vmem:[#allocation10 + $0x38] sm:$0xff]  ;;  %v768_v4 = vld [vmem:[%s9470_s29 + $0x48] sm:$0xff] }
 0x138   : > { %7452 = vmatprep.subr.bf16.mxu1 %v7451_v23  ;;  %v769_v5 = vld [vmem:[%s9470_s29 + $0x50] sm:$0xff]  ;;  %v7479_v6 = vpack.c.bf16 %v1134_v3, %v1133_v2  ;;  %v1135_v7 = vld [vmem:[#allocation10 + $0x40] sm:$0xff]  ;;  %v1136_v8 = vld [vmem:[#allocation10 + $0x48] sm:$0xff] }
 0x139   : > { %v770_v10 = vld [vmem:[%s9470_s29 + $0x58] sm:$0xff]  ;;  %v771_v11 = vld [vmem:[%s9470_s29 + $0x60] sm:$0xff]  ;;  %v7483_v12 = vpack.c.bf16 %v1136_v8, %v1135_v7  ;;  %v1137_v13 = vld [vmem:[#allocation10 + $0x50] sm:$0xff] }
 0x13a   : > { %7418 = vmatpush3.bf16.msra.mxu0 %v7415_v31  ;;  %v1138_v14 = vld [vmem:[#allocation10 + $0x58] sm:$0xff]  ;;  %v772_v15 = vld [vmem:[%s9470_s29 + $0x68] sm:$0xff]  ;;  %v773_v16 = vld [vmem:[%s9470_s29 + $0x70] sm:$0xff] }
 0x13b   : > { %7454 = vmatpush3.bf16.msra.mxu1 %v7451_v23  ;;  %7420 = vmatprep.subr.bf16.mxu0 %v7419_v37  ;;  %v7487_v17 = vpack.c.bf16 %v1138_v14, %v1137_v13  ;;  %v1139_v18 = vld [vmem:[#allocation10 + $0x60] sm:$0xff]  ;;  %v1140_v19 = vld [vmem:[#allocation10 + $0x68] sm:$0xff]  ;;  %v774_v20 = vld [vmem:[%s9470_s29 + $0x78] sm:$0xff] }
 0x13c   : > { %7456 = vmatprep.subr.bf16.mxu1 %v7455_v29  ;;  %v7491_v21 = vpack.c.bf16 %v1140_v19, %v1139_v18  ;;  %v1141_v22 = vld [vmem:[#allocation10 + $0x70] sm:$0xff]  ;;  %v1142_v23 = vld [vmem:[#allocation10 + $0x78] sm:$0xff]  ;;  %vm9570_vm1 = vmpackc.low %vm1311_vm0, %vm1311_vm0 }
 0x13d   : > { %v7495_v24 = vpack.c.bf16 %v1142_v23, %v1141_v22  ;;  %v9587_v36 = vld [vmem:[%s12068_s25] ss:$0 sm:$0xff] }
 0x13e   : > { %7422 = vmatpush3.bf16.msra.mxu0 %v7419_v37 }
 0x13f   : > { %7458 = vmatpush3.bf16.msra.mxu1 %v7455_v29  ;;  %7424 = vmatprep.subr.bf16.mxu0 %v7423_v42 }
 0x140   : > { %7460 = vmatprep.subr.bf16.mxu1 %v7459_v35 }
 0x142   : > { %7426 = vmatpush3.bf16.msra.mxu0 %v7423_v42 }
 0x143   : > { %7462 = vmatpush3.bf16.msra.mxu1 %v7459_v35  ;;  %7428 = vmatprep.subr.bf16.mxu0 %v7427_v45 }
 0x144   : > { %7464 = vmatprep.subr.bf16.mxu1 %v7463_v41 }
 0x146   : > { %7430 = vmatpush3.bf16.msra.mxu0 %v7427_v45 }
 0x147   : > { %7466 = vmatpush3.bf16.msra.mxu1 %v7463_v41  ;;  %7432 = vmatprep.subr.bf16.mxu0 %v7431_v50 }
 0x14a   : > { %6748 = vmatmul.mubr.f32.vlgmr.msra.gmra.mrb[0].mxu1 %v9506_v48  ;;  %7434 = vmatpush3.bf16.msra.mxu0 %v7431_v50 }
 0x14b   : > { %6750 = vmatprep.mubr.f32.mxu1 %v9509_v49  ;;  %7468 = vmatprep.subr.bf16.mxu0 %v7467_v55 }
 0x14d   : > { %6692 = vmatmul.mubr.f32.vlgmr.msra.gmra.mrb[0].mxu0 %v9506_v48 }
 0x14e   : > { %6751 = vmatmul.mubr.f32.gmra.mrb[2].mxu1 %v9514_v53  ;;  %7470 = vmatpush3.bf16.msra.mxu0 %v7467_v55 }
 0x14f   : > { %6753 = vmatprep.mubr.f32.mxu1 %v9517_v54  ;;  %6694 = vmatprep.mubr.f32.mxu0 %v9509_v49 }
 0x150   : > { %7472 = vmatprep.subr.bf16.mxu0 %v7471_v60 }
 0x151   : > { %6695 = vmatmul.mubr.f32.gmra.mrb[2].mxu0 %v9514_v53 }
 0x152   : > { %6754 = vmatmul.mubr.f32.gmra.mrb[4].mxu1 %v9522_v58  ;;  %7474 = vmatpush3.bf16.msra.mxu0 %v7471_v60 }
 0x153   : > { %6756 = vmatprep.mubr.f32.mxu1 %v9525_v59  ;;  %6697 = vmatprep.mubr.f32.mxu0 %v9517_v54 }
 0x154   : > { %7476 = vmatprep.subr.bf16.mxu0 %v7475_v1 }
 0x155   : > { %6698 = vmatmul.mubr.f32.gmra.mrb[4].mxu0 %v9522_v58 }
 0x156   : > { %6757 = vmatmul.mubr.f32.gmra.mrb[6].mxu1 %v9531_v63  ;;  %7478 = vmatpush3.bf16.msra.mxu0 %v7475_v1 }
 0x157   : > { %6759 = vmatprep.mubr.f32.mxu1 %v9534_v0  ;;  %6700 = vmatprep.mubr.f32.mxu0 %v9525_v59 }
 0x158   : > { %7480 = vmatprep.subr.bf16.mxu0 %v7479_v6 }
 0x159   : > { %6701 = vmatmul.mubr.f32.gmra.mrb[6].mxu0 %v9531_v63 }
 0x15a   : > { %6760 = vmatmul.mubr.f32.gmra.mrb[8].mxu1 %v768_v4  ;;  %7482 = vmatpush3.bf16.msra.mxu0 %v7479_v6 }
 0x15b   : > { %6762 = vmatprep.mubr.f32.mxu1 %v769_v5  ;;  %6703 = vmatprep.mubr.f32.mxu0 %v9534_v0 }
 0x15c   : > { %7484 = vmatprep.subr.bf16.mxu0 %v7483_v12 }
 0x15d   : > { %6704 = vmatmul.mubr.f32.gmra.mrb[8].mxu0 %v768_v4 }
 0x15e   : > { %6763 = vmatmul.mubr.f32.gmra.mrb[10].mxu1 %v770_v10  ;;  %7486 = vmatpush3.bf16.msra.mxu0 %v7483_v12 }
 0x15f   : > { %6765 = vmatprep.mubr.f32.mxu1 %v771_v11  ;;  %6706 = vmatprep.mubr.f32.mxu0 %v769_v5 }
 0x160   : > { %7488 = vmatprep.subr.bf16.mxu0 %v7487_v17 }
 0x161   : > { %6707 = vmatmul.mubr.f32.gmra.mrb[10].mxu0 %v770_v10 }
 0x162   : > { %6766 = vmatmul.mubr.f32.gmra.mrb[12].mxu1 %v772_v15  ;;  %7490 = vmatpush3.bf16.msra.mxu0 %v7487_v17 }
 0x163   : > { %6768 = vmatprep.mubr.f32.mxu1 %v773_v16  ;;  %6709 = vmatprep.mubr.f32.mxu0 %v771_v11 }
 0x164   : > { %7492 = vmatprep.subr.bf16.mxu0 %v7491_v21 }
 0x165   : > { %6710 = vmatmul.mubr.f32.gmra.mrb[12].mxu0 %v772_v15 }
 0x166   : > { %6769 = vmatmul.mubr.f32.gmra.mrb[14].mxu1 %v774_v20  ;;  %7494 = vmatpush3.bf16.msra.mxu0 %v7491_v21 }
 0x167   : > { %6712 = vmatprep.mubr.f32.mxu0 %v773_v16  ;;  %7496 = vmatprep.subr.bf16.mxu0 %v7495_v24 }
 0x169   : > { %6713 = vmatmul.mubr.f32.gmra.mrb[14].mxu0 %v774_v20 }
 0x16a   : > { %7498 = vmatpush3.bf16.msra.mxu0 %v7495_v24  ;;  %6803 = vmatprep.mubr.f32.mxu0 %v9501_v9  ;;  %v9564_v9 = vld [vmem:[%s11927_s5] ss:$0 sm:$0xff] }
 0x16d   : > { %6804 = vmatmul.mubr.f32.vlgmr.msra.gmra.mrb[16].mxu0 %v9506_v48 }
 0x16e   : > { %6806 = vmatprep.mubr.f32.mxu0 %v9509_v49 }
 0x171   : > { %6807 = vmatmul.mubr.f32.gmra.mrb[18].mxu0 %v9514_v53 }
 0x172   : > { %6809 = vmatprep.mubr.f32.mxu0 %v9517_v54 }
 0x175   : > { %6810 = vmatmul.mubr.f32.gmra.mrb[20].mxu0 %v9522_v58 }
 0x176   : > { %6812 = vmatprep.mubr.f32.mxu0 %v9525_v59 }
 0x179   : > { %6813 = vmatmul.mubr.f32.gmra.mrb[22].mxu0 %v9531_v63 }
 0x17a   : > { %6815 = vmatprep.mubr.f32.mxu0 %v9534_v0 }
 0x17d   : > { %6816 = vmatmul.mubr.f32.gmra.mrb[24].mxu0 %v768_v4 }
 0x17e   : > { %6818 = vmatprep.mubr.f32.mxu0 %v769_v5 }
 0x181   : > { %6819 = vmatmul.mubr.f32.gmra.mrb[26].mxu0 %v770_v10 }
 0x182   : > { %6821 = vmatprep.mubr.f32.mxu0 %v771_v11 }
 0x185   : > { %6822 = vmatmul.mubr.f32.gmra.mrb[28].mxu0 %v772_v15 }
 0x186   : > { %6824 = vmatprep.mubr.f32.mxu0 %v773_v16 }
 0x189   : > { %6825 = vmatmul.mubr.f32.gmra.mrb[30].mxu0 %v774_v20 }
 0x21d   : > { %v6749_v25 = vpop.f32.mrb[0].mxu1 }
 0x21e   : > { %v1054_v26 = vadd.f32 %v6749_v25, %v9564_v9  ;;  %v1048_v27 = vpop.f32.mrb[1].mxu1 }
 0x21f   : > { %v1049_v28 = vadd.f32 %v9564_v9, %v1048_v27 }
 0x220   : > { %v9591_v40 = vpop.f32.mrb[0].mxu0 }
 0x221   : > { %v9574_v30 = vpack.i.bf16 %v1054_v26, %v1049_v28  ;;  %v7499_v31 = vpack.c.bf16 %v1054_v26, %v1049_v28  ;;  %v6752_v32 = vpop.f32.mrb[2].mxu1  ;;  %v880_v43 = vpop.f32.mrb[1].mxu0 }
 0x222   : > { %v1064_v33 = vadd.f32 %v6752_v32, %v9564_v9  ;;  %v1058_v34 = vpop.f32.mrb[3].mxu1  ;;  %v9600_v45 = vadd.f32 %v9587_v36, %v880_v43 }
 0x223   : > { %8107 = vrot.lane.b32.xlu0 %v9574_v30, %s9042_s3  ;;  %7501 = vmatprep.subr.msk.bf16.mxu1 %vm9570_vm1, %v7499_v31  ;;  %v1059_v35 = vadd.f32 %v9564_v9, %v1058_v34 }
 0x224   : > { %7504 = vmatpush3.bf16.xpose.msk.msra.mxu1 %vm9570_vm1, %v7499_v31  ;;  %v9604_v49 = vpop.f32.mrb[2].mxu0  ;;  %6859 = vmatprep.mubr.msk.f32.mxu1 %vm1311_vm0, %v9600_v45 }
 0x225   : > { %v9589_v37 = vpack.i.bf16 %v1064_v33, %v1059_v35  ;;  %v7505_v38 = vpack.c.bf16 %v1064_v33, %v1059_v35  ;;  %v6755_v39 = vpop.f32.mrb[4].mxu1  ;;  %v9609_v52 = vpop.f32.mrb[3].mxu0 }
 0x226   : > { %v1074_v41 = vadd.f32 %v6755_v39, %v9564_v9  ;;  %v1068_v42 = vpop.f32.mrb[5].mxu1 }
 0x227   : > { %8112 = vrot.lane.b32.xlu1 %v9589_v37, %s9042_s3  ;;  %7507 = vmatprep.subr.msk.bf16.mxu1 %vm9570_vm1, %v7505_v38  ;;  %v1069_v44 = vadd.f32 %v9564_v9, %v1068_v42 }
 0x228   : > { %v6699_v57 = vpop.f32.mrb[4].mxu0 }
 0x229   : > { %v9602_v46 = vpack.i.bf16 %v1074_v41, %v1069_v44  ;;  %v7511_v47 = vpack.c.bf16 %v1074_v41, %v1069_v44  ;;  %v6758_v48 = vpop.f32.mrb[6].mxu1  ;;  %v9622_v60 = vadd.f32 %v6699_v57, %v9587_v36  ;;  %v9624_v61 = vpop.f32.mrb[5].mxu0  ;;  %v5888_v44 = vld [vmem:[%s11929_s7] ss:$0 sm:$0xff] }
 0x22a   : > { %v1084_v50 = vadd.f32 %v6758_v48, %v9564_v9  ;;  %v1078_v51 = vpop.f32.mrb[7].mxu1 }
 0x22b   : > { %8117 = vrot.lane.b32.xlu0 %v9602_v46, %s9042_s3  ;;  %v1079_v53 = vadd.f32 %v9564_v9, %v1078_v51 }
 0x22c   : > { %7510 = vmatpush3.bf16.xpose.msk.msra.mxu1 %vm9570_vm1, %v7505_v38  ;;  %v6702_v1 = vpop.f32.mrb[6].mxu0 }
 0x22d   : > { %7513 = vmatprep.subr.msk.bf16.mxu1 %vm9570_vm1, %v7511_v47  ;;  %v9618_v54 = vpack.i.bf16 %v1084_v50, %v1079_v53  ;;  %v7517_v55 = vpack.c.bf16 %v1084_v50, %v1079_v53  ;;  %v6761_v56 = vpop.f32.mrb[8].mxu1  ;;  %v9633_v5 = vadd.f32 %v6702_v1, %v9587_v36  ;;  %v910_v6 = vpop.f32.mrb[7].mxu0 }
 0x22e   : > { %v1094_v58 = vadd.f32 %v6761_v56, %v9564_v9  ;;  %v1088_v59 = vpop.f32.mrb[9].mxu1  ;;  %v9637_v8 = vadd.f32 %v9587_v36, %v910_v6 }
 0x22f   : > { %8122 = vrot.lane.b32.xlu1 %v9618_v54, %s9042_s3  ;;  %v1089_v62 = vadd.f32 %v9564_v9, %v1088_v59 }
 0x230   : > { %v6705_v12 = vpop.f32.mrb[8].mxu0 }
 0x231   : > { %v7523_v63 = vpack.c.bf16 %v1094_v58, %v1089_v62  ;;  %v6764_v0 = vpop.f32.mrb[10].mxu1  ;;  %v9629_v2 = vpack.i.bf16 %v1094_v58, %v1089_v62  ;;  %v9647_v16 = vadd.f32 %v6705_v12, %v9587_v36  ;;  %v920_v17 = vpop.f32.mrb[9].mxu0 }
 0x232   : > { %v1104_v3 = vadd.f32 %v6764_v0, %v9564_v9  ;;  %v1098_v4 = vpop.f32.mrb[11].mxu1  ;;  %v9651_v19 = vadd.f32 %v9587_v36, %v920_v17 }
 0x233   : > { %v1099_v7 = vadd.f32 %v9564_v9, %v1098_v4 }
 0x234   : > { %7516 = vmatpush3.bf16.xpose.msk.msra.mxu1 %vm9570_vm1, %v7511_v47  ;;  %v6708_v22 = vpop.f32.mrb[10].mxu0 }
 0x235   : > { %7519 = vmatprep.subr.msk.bf16.mxu1 %vm9570_vm1, %v7517_v55  ;;  %v7529_v10 = vpack.c.bf16 %v1104_v3, %v1099_v7  ;;  %v6767_v11 = vpop.f32.mrb[12].mxu1  ;;  %v9643_v13 = vpack.i.bf16 %v1104_v3, %v1099_v7  ;;  %v9657_v26 = vadd.f32 %v6708_v22, %v9587_v36  ;;  %v930_v27 = vpop.f32.mrb[11].mxu0 }
 0x236   : > { %v1114_v14 = vadd.f32 %v6767_v11, %v9564_v9  ;;  %v1108_v15 = vpop.f32.mrb[13].mxu1  ;;  %v9661_v31 = vadd.f32 %v9587_v36, %v930_v27 }
 0x237   : > { %v1109_v18 = vadd.f32 %v9564_v9, %v1108_v15 }
 0x238   : > { %v6711_v33 = vpop.f32.mrb[12].mxu0 }
 0x239   : > { %v7535_v20 = vpack.c.bf16 %v1114_v14, %v1109_v18  ;;  %v6770_v21 = vpop.f32.mrb[14].mxu1  ;;  %v9653_v23 = vpack.i.bf16 %v1114_v14, %v1109_v18  ;;  %v9670_v35 = vadd.f32 %v6711_v33, %v9587_v36  ;;  %v940_v38 = vpop.f32.mrb[13].mxu0 }
 0x23a   : > { %v1124_v24 = vadd.f32 %v6770_v21, %v9564_v9  ;;  %v1118_v25 = vpop.f32.mrb[15].mxu1  ;;  %v9673_v39 = vadd.f32 %v9587_v36, %v940_v38 }
 0x23b   : > { %v1119_v28 = vadd.f32 %v9564_v9, %v1118_v25 }
 0x23c   : > { %7522 = vmatpush3.bf16.xpose.msk.msra.mxu1 %vm9570_vm1, %v7517_v55  ;;  %v6714_v9 = vpop.f32.mrb[14].mxu0 }
 0x23d   : > { %7525 = vmatprep.subr.msk.bf16.mxu1 %vm9570_vm1, %v7523_v63  ;;  %v7541_v32 = vpack.c.bf16 %v1124_v24, %v1119_v28  ;;  %v9667_v34 = vpack.i.bf16 %v1124_v24, %v1119_v28  ;;  %v9676_v41 = vadd.f32 %v6714_v9, %v9587_v36  ;;  %v950_v42 = vpop.f32.mrb[15].mxu0  ;;  %v9740_v9 = vadd.f32 %v9587_v36, %v9609_v52 }
 0x23e   : > { %v9679_v43 = vadd.f32 %v9587_v36, %v950_v42  ;;  %v9744_v42 = vadd.f32 %v9591_v40, %v9587_v36  ;;  %v9758_v40 = vadd.f32 %v9587_v36, %v9624_v61  ;;  %v9762_v52 = vadd.f32 %v9604_v49, %v9587_v36 }
 0x240   : > { %v6805_v47 = vpop.f32.mrb[16].mxu0 }
 0x241   : > { %v9688_v48 = vadd.f32 %v6805_v47, %v5888_v44  ;;  %v1216_v50 = vpop.f32.mrb[17].mxu0 }
 0x242   : > { %v9690_v51 = vadd.f32 %v5888_v44, %v1216_v50 }
 0x244   : > { %7528 = vmatpush3.bf16.xpose.msk.msra.mxu1 %vm9570_vm1, %v7523_v63  ;;  %v6808_v53 = vpop.f32.mrb[18].mxu0  ;;  %v7547_v55 = vpack.c.bf16 %v9688_v48, %v9690_v51 }
 0x245   : > { %7531 = vmatprep.subr.msk.bf16.mxu1 %vm9570_vm1, %v7529_v10  ;;  %v9694_v56 = vadd.f32 %v6808_v53, %v5888_v44  ;;  %v1226_v57 = vpop.f32.mrb[19].mxu0 }
 0x246   : > { %v9696_v58 = vadd.f32 %v5888_v44, %v1226_v57  ;;  %7548 = vmatprep.subr.bf16.mxu0 %v7547_v55 }
 0x247   : > { %7550 = vmatpush3.bf16.msra.mxu0 %v7547_v55 }
 0x248   : > { %v6811_v59 = vpop.f32.mrb[20].mxu0  ;;  %v7551_v62 = vpack.c.bf16 %v9694_v56, %v9696_v58 }
 0x249   : > { %v9704_v63 = vadd.f32 %v6811_v59, %v5888_v44  ;;  %v1236_v0 = vpop.f32.mrb[21].mxu0  ;;  %v9798_v59 = vld [vmem:[%s9478_s13 + $0x8] sm:$0xff] }
 0x24a   : > { %v9706_v1 = vadd.f32 %v5888_v44, %v1236_v0  ;;  %7552 = vmatprep.subr.bf16.mxu0 %v7551_v62  ;;  %12081 = vst [vmem:[#allocation40_spill] sm:$0xff] %v9798_v59  ;;  %vm1570_vm2 = vcmp.gt.f32.partialorder %v9798_v59, 0.5 }
 0x24b   : > { %12069 = vst [vmem:[#allocation28_spill] sm:$0xff] %v9704_v63  ;;  %7554 = vmatpush3.bf16.msra.mxu0 %v7551_v62 }
 0x24c   : > { %7534 = vmatpush3.bf16.xpose.msk.msra.mxu1 %vm9570_vm1, %v7529_v10  ;;  %12070 = vst [vmem:[#allocation29_spill] sm:$0xff] %v9706_v1  ;;  %v6814_v3 = vpop.f32.mrb[22].mxu0  ;;  %v7555_v4 = vpack.c.bf16 %v9704_v63, %v9706_v1 }
 0x24d   : > { %7537 = vmatprep.subr.msk.bf16.mxu1 %vm9570_vm1, %v7535_v20  ;;  %v9710_v6 = vadd.f32 %v6814_v3, %v5888_v44  ;;  %v1246_v7 = vpop.f32.mrb[23].mxu0 }
 0x24e   : > { %v9712_v10 = vadd.f32 %v5888_v44, %v1246_v7  ;;  %7556 = vmatprep.subr.bf16.mxu0 %v7555_v4  ;;  %v9805_v7 = vld [vmem:[%s9478_s13 + $0x18] sm:$0xff] }
 0x24f   : > { %12071 = vst [vmem:[#allocation30_spill] sm:$0xff] %v9710_v6  ;;  %7558 = vmatpush3.bf16.msra.mxu0 %v7555_v4  ;;  %v9802_v4 = vld [vmem:[%s9478_s13] sm:$0xff]  ;;  %12083 = vst [vmem:[#allocation42_spill] sm:$0xff] %v9805_v7  ;;  %vm1572_vm4 = vcmp.gt.f32.partialorder %v9805_v7, 0.5 }
 0x250   : > { %12072 = vst [vmem:[#allocation31_spill] sm:$0xff] %v9712_v10  ;;  %v6817_v11 = vpop.f32.mrb[24].mxu0  ;;  %v7559_v12 = vpack.c.bf16 %v9710_v6, %v9712_v10  ;;  %12082 = vst [vmem:[#allocation41_spill] sm:$0xff] %v9802_v4  ;;  %vm1569_vm3 = vcmp.gt.f32.partialorder %v9802_v4, 0.5 }
 0x251   : > { %v9720_v14 = vadd.f32 %v6817_v11, %v5888_v44  ;;  %v1256_v15 = vpop.f32.mrb[25].mxu0 }
 0x252   : > { %v9722_v17 = vadd.f32 %v5888_v44, %v1256_v15  ;;  %7560 = vmatprep.subr.bf16.mxu0 %v7559_v12 }
 0x253   : > { %12073 = vst [vmem:[#allocation32_spill] sm:$0xff] %v9720_v14  ;;  %7562 = vmatpush3.bf16.msra.mxu0 %v7559_v12 }
 0x254   : > { %7540 = vmatpush3.bf16.xpose.msk.msra.mxu1 %vm9570_vm1, %v7535_v20  ;;  %12074 = vst [vmem:[#allocation33_spill] sm:$0xff] %v9722_v17  ;;  %v6820_v18 = vpop.f32.mrb[26].mxu0  ;;  %v7563_v21 = vpack.c.bf16 %v9720_v14, %v9722_v17 }
 0x255   : > { %7543 = vmatprep.subr.msk.bf16.mxu1 %vm9570_vm1, %v7541_v32  ;;  %v9726_v20 = vadd.f32 %v6820_v18, %v5888_v44  ;;  %v1266_v22 = vpop.f32.mrb[27].mxu0 }
 0x256   : > { %v9728_v24 = vadd.f32 %v5888_v44, %v1266_v22  ;;  %7564 = vmatprep.subr.bf16.mxu0 %v7563_v21  ;;  %v9815_v22 = vld [vmem:[%s9478_s13 + $0x10] sm:$0xff] }
 0x257   : > { %12075 = vst [vmem:[#allocation34_spill] sm:$0xff] %v9726_v20  ;;  %7566 = vmatpush3.bf16.msra.mxu0 %v7563_v21  ;;  %12084 = vst [vmem:[#allocation43_spill] sm:$0xff] %v9815_v22  ;;  %vm1571_vm5 = vcmp.gt.f32.partialorder %v9815_v22, 0.5 }
 0x258   : > { %12076 = vst [vmem:[#allocation35_spill] sm:$0xff] %v9728_v24  ;;  %v6823_v25 = vpop.f32.mrb[28].mxu0  ;;  %v7567_v27 = vpack.c.bf16 %v9726_v20, %v9728_v24 }
 0x259   : > { %v9734_v28 = vadd.f32 %v6823_v25, %v5888_v44  ;;  %v1276_v33 = vpop.f32.mrb[29].mxu0  ;;  %v9818_v25 = vld [vmem:[%s9478_s13 + $0x20] sm:$0xff] }
 0x25a   : > { %v9736_v38 = vadd.f32 %v5888_v44, %v1276_v33  ;;  %7568 = vmatprep.subr.bf16.mxu0 %v7567_v27  ;;  %12085 = vst [vmem:[#allocation44_spill] sm:$0xff] %v9818_v25  ;;  %vm1573_vm6 = vcmp.gt.f32.partialorder %v9818_v25, 0.5 }
 0x25b   : > { %12077 = vst [vmem:[#allocation36_spill] sm:$0xff] %v9734_v28  ;;  %7570 = vmatpush3.bf16.msra.mxu0 %v7567_v27 }
 0x25c   : > { %7546 = vmatpush3.bf16.xpose.msk.msra.mxu1 %vm9570_vm1, %v7541_v32  ;;  %12078 = vst [vmem:[#allocation37_spill] sm:$0xff] %v9736_v38  ;;  %v6826_v32 = vpop.f32.mrb[30].mxu0  ;;  %v7571_v47 = vpack.c.bf16 %v9734_v28, %v9736_v38 }
 0x25d   : > { %v9748_v50 = vadd.f32 %v6826_v32, %v5888_v44  ;;  %v1286_v53 = vpop.f32.mrb[31].mxu0 }
 0x25e   : > { %v9752_v55 = vadd.f32 %v5888_v44, %v1286_v53  ;;  %7572 = vmatprep.subr.bf16.mxu0 %v7571_v47 }
 0x25f   : > { %12079 = vst [vmem:[#allocation38_spill] sm:$0xff] %v9748_v50  ;;  %7574 = vmatpush3.bf16.msra.mxu0 %v7571_v47 }
 0x260   : > { %12080 = vst [vmem:[#allocation39_spill] sm:$0xff] %v9752_v55  ;;  %v7575_v57 = vpack.c.bf16 %v9748_v50, %v9752_v55  ;;  %v9913_v50 = vld [vmem:[%s9478_s13 + $0x70] sm:$0xff]  ;;  %v9916_v55 = vld [vmem:[%s9478_s13 + $0x78] sm:$0xff] }
 0x261   : > { %12095 = vst [vmem:[#allocation54_spill] sm:$0xff] %v9913_v50  ;;  %12096 = vst [vmem:[#allocation55_spill] sm:$0xff] %v9916_v55 }
 0x262   : > { %7576 = vmatprep.subr.bf16.mxu0 %v7575_v57 }
 0x263   : > { %6860 = vmatmul.mubr.msk.f32.vlgmr.msra.gmra.mrb[16].mxu1 %vm1311_vm0, %v9744_v42  ;;  %7578 = vmatpush3.bf16.msra.mxu0 %v7575_v57  ;;  %v9833_v57 = vld [vmem:[%s9478_s13 + $0x28] sm:$0xff] }
 0x264   : > { %6862 = vmatprep.mubr.msk.f32.mxu1 %vm1311_vm0, %v9740_v9  ;;  %12086 = vst [vmem:[#allocation45_spill] sm:$0xff] %v9833_v57  ;;  %vm1574_vm7 = vcmp.gt.f32.partialorder %v9833_v57, 0.5 }
 0x267   : > { %6863 = vmatmul.mubr.msk.f32.gmra.mrb[18].mxu1 %vm1311_vm0, %v9762_v52 }
 0x268   : > { %6865 = vmatprep.mubr.msk.f32.mxu1 %vm1311_vm0, %v9758_v40 }
 0x26b   : > { %6866 = vmatmul.mubr.msk.f32.gmra.mrb[20].mxu1 %vm1311_vm0, %v9622_v60 }
 0x26c   : > { %6868 = vmatprep.mubr.msk.f32.mxu1 %vm1311_vm0, %v9637_v8 }
 0x26f   : > { %6869 = vmatmul.mubr.msk.f32.gmra.mrb[22].mxu1 %vm1311_vm0, %v9633_v5 }
 0x270   : > { %6871 = vmatprep.mubr.msk.f32.mxu1 %vm1311_vm0, %v9651_v19 }
 0x273   : > { %6872 = vmatmul.mubr.msk.f32.gmra.mrb[24].mxu1 %vm1311_vm0, %v9647_v16 }
 0x274   : > { %6874 = vmatprep.mubr.msk.f32.mxu1 %vm1311_vm0, %v9661_v31 }
 0x277   : > { %6875 = vmatmul.mubr.msk.f32.gmra.mrb[26].mxu1 %vm1311_vm0, %v9657_v26 }
 0x278   : > { %6877 = vmatprep.mubr.msk.f32.mxu1 %vm1311_vm0, %v9673_v39 }
 0x27b   : > { %6878 = vmatmul.mubr.msk.f32.gmra.mrb[28].mxu1 %vm1311_vm0, %v9670_v35 }
 0x27c   : > { %6880 = vmatprep.mubr.msk.f32.mxu1 %vm1311_vm0, %v9679_v43 }
 0x27f   : > { %6881 = vmatmul.mubr.msk.f32.gmra.mrb[30].mxu1 %vm1311_vm0, %v9676_v41 }
 0x295   : > { %v8108_v36 = vpop.permute.xlu0 %8107 }
 0x296   : > { %v8110_v49 = vunpack.i.h.bf16 %v8108_v36  ;;  %v8109_v61 = vunpack.i.l.bf16 %v8108_v36 }
 0x298   : > { %v9792_v44 = vpack.c.bf16 %v8110_v49, %v8109_v61  ;;  %v9836_v49 = vld [vmem:[%s9478_s13 + $0x30] sm:$0xff] }
 0x299   : > { %12087 = vst [vmem:[#allocation46_spill] sm:$0xff] %v9836_v49  ;;  %vm1575_vm8 = vcmp.gt.f32.partialorder %v9836_v49, 0.5 }
 0x29a   : > { %7581 = vmatprep.subr.msk.bf16.mxu0 %vm9570_vm1, %v9792_v44 }
 0x336   : > { %v6861_v62 = vpop.f32.mrb[16].mxu1 }
 0x337   : > { %v1554_v0 = vmul.f32 0.17677669, %v6861_v62  ;;  %v1474_v3 = vpop.f32.mrb[17].mxu1 }
 0x338   : > { %v1553_v11 = vmul.f32 0.17677669, %v1474_v3 }
 0x339   : > { %v9809_v12 = vsel %vm1570_vm2, -1e+09, %v1554_v0 }
 0x33a   : > { %1603 = vmax.xlane.f32.xlu0 %v9809_v12  ;;  %v6864_v15 = vpop.f32.mrb[18].mxu1  ;;  %v9822_v33 = vsel %vm1569_vm3, -1e+09, %v1553_v11 }
 0x33b   : > { %v1556_v18 = vmul.f32 0.17677669, %v6864_v15  ;;  %v1484_v21 = vpop.f32.mrb[19].mxu1  ;;  %v9851_v15 = vld [vmem:[%s9478_s13 + $0x38] sm:$0xff] }
 0x33c   : > { %v1555_v27 = vmul.f32 0.17677669, %v1484_v21  ;;  %12088 = vst [vmem:[#allocation47_spill] sm:$0xff] %v9851_v15  ;;  %v9854_v21 = vld [vmem:[%s9478_s13 + $0x40] sm:$0xff]  ;;  %vm1576_vm9 = vcmp.gt.f32.partialorder %v9851_v15, 0.5 }
 0x33d   : > { %v9826_v32 = vsel %vm1572_vm4, -1e+09, %v1556_v18  ;;  %12089 = vst [vmem:[#allocation48_spill] sm:$0xff] %v9854_v21  ;;  %vm12001_vm10 = vcmp.gt.f32.partialorder %v9854_v21, 0.5  ;;  %v9895_v15 = vld [vmem:[%s9478_s13 + $0x60] sm:$0xff]  ;;  %v9898_v21 = vld [vmem:[%s9478_s13 + $0x68] sm:$0xff] }
 0x33e   : > { %1601 = vmax.xlane.f32.xlu0 %v9822_v33  ;;  %1607 = vmax.xlane.f32.xlu1 %v9826_v32  ;;  %v6867_v47 = vpop.f32.mrb[20].mxu1  ;;  %v9840_v62 = vsel %vm1571_vm5, -1e+09, %v1555_v27  ;;  %12093 = vst [vmem:[#allocation52_spill] sm:$0xff] %v9895_v15  ;;  %12094 = vst [vmem:[#allocation53_spill] sm:$0xff] %v9898_v21  ;;  %vm1581_vm14 = vcmp.gt.f32.partialorder %v9895_v15, 0.5 }
 0x33f   : > { %v1494_v53 = vpop.f32.mrb[21].mxu1  ;;  %v1558_v61 = vmul.f32 0.17677669, %v6867_v47  ;;  %vm1582_vm15 = vcmp.gt.f32.partialorder %v9898_v21, 0.5 }
 0x340   : > { %v1557_v36 = vmul.f32 0.17677669, %v1494_v53  ;;  %v9861_v53 = vld [vmem:[%s9478_s13 + $0x48] sm:$0xff] }
 0x341   : > { %v9858_v47 = vsel %vm1574_vm7, -1e+09, %v1558_v61  ;;  %12090 = vst [vmem:[#allocation49_spill] sm:$0xff] %v9861_v53  ;;  %vm1578_vm11 = vcmp.gt.f32.partialorder %v9861_v53, 0.5 }
 0x342   : > { %1605 = vmax.xlane.f32.xlu1 %v9840_v62  ;;  %v6870_v0 = vpop.f32.mrb[22].mxu1  ;;  %v9845_v3 = vsel %vm1573_vm6, -1e+09, %v1557_v36 }
 0x343   : > { %1609 = vmax.xlane.f32.xlu0 %v9845_v3  ;;  %v1504_v11 = vpop.f32.mrb[23].mxu1  ;;  %v1560_v27 = vmul.f32 0.17677669, %v6870_v0  ;;  %v9873_v0 = vld [vmem:[%s9478_s13 + $0x50] sm:$0xff] }
 0x344   : > { %v1559_v18 = vmul.f32 0.17677669, %v1504_v11  ;;  %12091 = vst [vmem:[#allocation50_spill] sm:$0xff] %v9873_v0  ;;  %vm11982_vm12 = vcmp.gt.f32.partialorder %v9873_v0, 0.5 }
 0x345   : > { %v9877_v49 = vsel %vm1576_vm9, -1e+09, %v1560_v27 }
 0x346   : > { %1611 = vmax.xlane.f32.xlu1 %v9858_v47  ;;  %v6873_v36 = vpop.f32.mrb[24].mxu1  ;;  %v9866_v25 = vsel %vm1575_vm8, -1e+09, %v1559_v18  ;;  %v9880_v18 = vld [vmem:[%s9478_s13 + $0x58] sm:$0xff]  ;;  %s12197_s13 = sld [smem:[#allocation83_spill]] }
 0x347   : > { %v1562_v11 = vmul.f32 0.17677669, %v6873_v36  ;;  %1613 = vmax.xlane.f32.xlu0 %v9866_v25  ;;  %v1514_v22 = vpop.f32.mrb[25].mxu1  ;;  %12092 = vst [vmem:[#allocation51_spill] sm:$0xff] %v9880_v18  ;;  %vm11979_vm13 = vcmp.gt.f32.partialorder %v9880_v18, 0.5 }
 0x348   : > { %v1561_v61 = vmul.f32 0.17677669, %v1514_v22 }
 0x349   : > { %v9890_v4 = vsel %vm1578_vm11, -1e+09, %v1562_v11 }
 0x34a   : > { %1615 = vmax.xlane.f32.xlu1 %v9877_v49  ;;  %v6876_v36 = vpop.f32.mrb[26].mxu1  ;;  %v9885_v57 = vsel %vm12001_vm10, -1e+09, %v1561_v61 }
 0x34b   : > { %v1564_v7 = vmul.f32 0.17677669, %v6876_v36  ;;  %1617 = vmax.xlane.f32.xlu0 %v9885_v57  ;;  %v1524_v22 = vpop.f32.mrb[27].mxu1 }
 0x34c   : > { %v1563_v27 = vmul.f32 0.17677669, %v1524_v22 }
 0x34d   : > { %v9908_v22 = vsel %vm11979_vm13, -1e+09, %v1564_v7  ;;  %vm1583_vm13 = vcmp.gt.f32.partialorder %v9913_v50, 0.5 }
 0x34e   : > { %1619 = vmax.xlane.f32.xlu1 %v9890_v4  ;;  %v6879_v61 = vpop.f32.mrb[28].mxu1  ;;  %v9903_v36 = vsel %vm11982_vm12, -1e+09, %v1563_v27  ;;  %vm1584_vm12 = vcmp.gt.f32.partialorder %v9916_v55, 0.5 }
 0x34f   : > { %v1566_v11 = vmul.f32 0.17677669, %v6879_v61  ;;  %1621 = vmax.xlane.f32.xlu0 %v9903_v36  ;;  %v1534_v53 = vpop.f32.mrb[29].mxu1 }
 0x350   : > { %v1565_v59 = vmul.f32 0.17677669, %v1534_v53 }
 0x351   : > { %v9926_v53 = vsel %vm1582_vm15, -1e+09, %v1566_v11  ;;  %v9945_v11 = vpop.permute.xlu1 %8112 }
 0x352   : > { %1623 = vmax.xlane.f32.xlu1 %v9908_v22  ;;  %v6882_v27 = vpop.f32.mrb[30].mxu1  ;;  %v9921_v61 = vsel %vm1581_vm14, -1e+09, %v1565_v59 }
 0x353   : > { %v1568_v0 = vmul.f32 0.17677669, %v6882_v27  ;;  %1625 = vmax.xlane.f32.xlu0 %v9921_v61  ;;  %v1544_v7 = vpop.f32.mrb[31].mxu1  ;;  %v9947_v27 = vpop.permute.xlu0 %8117 }
 0x354   : > { %v1567_v18 = vmul.f32 0.17677669, %v1544_v7 }
 0x355   : > { %v9938_v59 = vsel %vm1584_vm12, -1e+09, %v1568_v0 }
 0x356   : > { %1627 = vmax.xlane.f32.xlu1 %v9926_v53  ;;  %v9933_v15 = vsel %vm1583_vm13, -1e+09, %v1567_v18  ;;  %v9949_v18 = vpop.permute.xlu1 %8122 }
 0x357   : > { %1629 = vmax.xlane.f32.xlu0 %v9933_v15 }
 0x35a   : > { %1631 = vmax.xlane.f32.xlu1 %v9938_v59 }
 0x36b   : > { %8132 = vrot.lane.b32.xlu1 %v9643_v13, %s9042_s3 }
 0x36d   : > { %8127 = vrot.lane.b32.xlu0 %v9629_v2, %s9042_s3 }
 0x3c7   : > { %v1604_v7 = vpop.xlane.xlu0 %1603 }
 0x3c8   : > { %v1634_v50 = vsub.f32 %v9809_v12, %v1604_v7 }
 0x3ca   : > { %v1651_v55 = vmul.f32 1.442695, %v1634_v50 }
 0x3cb   : > { %v1602_v0 = vpop.xlane.xlu0 %1601  ;;  %v1608_v21 = vpop.xlane.xlu1 %1607 }
 0x3cc   : > { %8346 = vpow2.f32 %v1651_v55  ;;  %v1633_v20 = vsub.f32 %v9822_v33, %v1602_v0 }
 0x3ce   : > { %v1649_v24 = vmul.f32 1.442695, %v1633_v20 }
 0x3cf   : > { %v1606_v28 = vpop.xlane.xlu1 %1605 }
 0x3d0   : > { %8348 = vpow2.f32 %v1649_v24  ;;  %v1635_v38 = vsub.f32 %v9840_v62, %v1606_v28  ;;  %v1610_v6 = vpop.xlane.xlu0 %1609 }
 0x3d2   : > { %v1653_v10 = vmul.f32 1.442695, %v1635_v38 }
 0x3d3   : > { %v1612_v14 = vpop.xlane.xlu1 %1611 }
 0x3d4   : > { %8350 = vpow2.f32 %v1653_v10  ;;  %v1638_v17 = vsub.f32 %v9858_v47, %v1612_v14  ;;  %v1614_v63 = vpop.xlane.xlu0 %1613 }
 0x3d5   : > { %v1639_v20 = vsub.f32 %v9866_v25, %v1614_v63 }
 0x3d6   : > { %v9955_v1 = vpop.eup %8346  ;;  %v1659_v50 = vmul.f32 1.442695, %v1638_v17 }
 0x3d7   : > { %v1616_v12 = vpop.xlane.xlu1 %1615  ;;  %1683 = vadd.xlane.f32.xlu1 %v9955_v1  ;;  %v1661_v10 = vmul.f32 1.442695, %v1639_v20  ;;  %v1636_v20 = vsub.f32 %v9826_v32, %v1608_v21 }
 0x3d8   : > { %8352 = vpow2.f32 %v1659_v50  ;;  %v1640_v24 = vsub.f32 %v9877_v49, %v1616_v12  ;;  %v1618_v33 = vpop.xlane.xlu0 %1617 }
 0x3d9   : > { %v1641_v63 = vsub.f32 %v9885_v57, %v1618_v33 }
 0x3da   : > { %v9960_v55 = vpop.eup %8348  ;;  %v1663_v28 = vmul.f32 1.442695, %v1640_v24  ;;  %v1655_v24 = vmul.f32 1.442695, %v1636_v20 }
 0x3db   : > { %v1620_v38 = vpop.xlane.xlu1 %1619  ;;  %1681 = vadd.xlane.f32.xlu0 %v9960_v55  ;;  %v1665_v47 = vmul.f32 1.442695, %v1641_v63 }
 0x3dc   : > { %8354 = vpow2.f32 %v1663_v28  ;;  %v1642_v14 = vsub.f32 %v9890_v4, %v1620_v38  ;;  %v1637_v28 = vsub.f32 %v9845_v3, %v1610_v6  ;;  %v1622_v38 = vpop.xlane.xlu0 %1621 }
 0x3dd   : > { %8356 = vpow2.f32 %v1661_v10 }
 0x3de   : > { %v9964_v17 = vpop.eup %8350  ;;  %v1667_v25 = vmul.f32 1.442695, %v1642_v14  ;;  %v1657_v10 = vmul.f32 1.442695, %v1637_v28  ;;  %v1643_v14 = vsub.f32 %v9903_v36, %v1622_v38 }
 0x3df   : > { %1685 = vadd.xlane.f32.xlu1 %v9964_v17  ;;  %v1624_v49 = vpop.xlane.xlu1 %1623 }
 0x3e0   : > { %8358 = vpow2.f32 %v1667_v25  ;;  %v1644_v7 = vsub.f32 %v9908_v22, %v1624_v49  ;;  %v1669_v63 = vmul.f32 1.442695, %v1643_v14  ;;  %v1626_v49 = vpop.xlane.xlu0 %1625 }
 0x3e1   : > { %8360 = vpow2.f32 %v1665_v47  ;;  %v1645_v32 = vsub.f32 %v9921_v61, %v1626_v49 }
 0x3e2   : > { %v9968_v62 = vpop.eup %8352  ;;  %v1671_v4 = vmul.f32 1.442695, %v1644_v7 }
 0x3e3   : > { %1691 = vadd.xlane.f32.xlu1 %v9968_v62  ;;  %v1628_v33 = vpop.xlane.xlu1 %1627  ;;  %v1673_v6 = vmul.f32 1.442695, %v1645_v32 }
 0x3e4   : > { %8362 = vpow2.f32 %v1671_v4  ;;  %v1646_v25 = vsub.f32 %v9926_v53, %v1628_v33  ;;  %v1630_v61 = vpop.xlane.xlu0 %1629 }
 0x3e5   : > { %8364 = vpow2.f32 %v1655_v24  ;;  %v1647_v20 = vsub.f32 %v9933_v15, %v1630_v61 }
 0x3e6   : > { %v9972_v0 = vpop.eup %8354  ;;  %8366 = vpow2.f32 %v1657_v10  ;;  %v1675_v21 = vmul.f32 1.442695, %v1646_v25 }
 0x3e7   : > { %1695 = vadd.xlane.f32.xlu1 %v9972_v0  ;;  %v9975_v50 = vpop.eup %8356  ;;  %8368 = vpow2.f32 %v1669_v63  ;;  %v1632_v36 = vpop.xlane.xlu1 %1631  ;;  %v1677_v38 = vmul.f32 1.442695, %v1647_v20 }
 0x3e8   : > { %8370 = vpow2.f32 %v1675_v21  ;;  %v1648_v53 = vsub.f32 %v9938_v59, %v1632_v36  ;;  %v10063_v14 = vpop.permute.xlu0 %8127  ;;  %v8115_v36 = vunpack.i.h.bf16 %v9945_v11 }
 0x3e9   : > { %8372 = vpow2.f32 %v1673_v6 }
 0x3ea   : > { %v9978_v57 = vpop.eup %8358  ;;  %v1679_v24 = vmul.f32 1.442695, %v1648_v53  ;;  %v8114_v53 = vunpack.i.l.bf16 %v9945_v11 }
 0x3eb   : > { %1693 = vadd.xlane.f32.xlu1 %v9975_v50  ;;  %v9983_v12 = vpop.eup %8360  ;;  %v10057_v15 = vpop.permute.xlu1 %8132 }
 0x3ec   : > { %8374 = vpow2.f32 %v1679_v24  ;;  %v7585_v24 = vpack.c.bf16 %v8115_v36, %v8114_v53 }
 0x3ed   : > { %8376 = vpow2.f32 %v1677_v38 }
 0x3ee   : > { %v9986_v22 = vpop.eup %8362 }
 0x3ef   : > { %1699 = vadd.xlane.f32.xlu1 %v9978_v57  ;;  %v9996_v47 = vpop.eup %8364 }
 0x3f0   : > { %v9999_v3 = vpop.eup %8366 }
 0x3f1   : > { %8137 = vrot.lane.b32.xlu0 %v9653_v23, %s9042_s3  ;;  %v10002_v7 = vpop.eup %8368 }
 0x3f2   : > { %v10006_v4 = vpop.eup %8370 }
 0x3f3   : > { %1697 = vadd.xlane.f32.xlu1 %v9983_v12  ;;  %v10010_v28 = vpop.eup %8372 }
 0x3f6   : > { %v10013_v10 = vpop.eup %8374 }
 0x3f7   : > { %1703 = vadd.xlane.f32.xlu1 %v9986_v22  ;;  %v10016_v59 = vpop.eup %8376 }
 0x408   : > { %1908 = vrot.lane.b32.xlu1 %v9744_v42, %s9042_s3 }
 0x410   : > { %1687 = vadd.xlane.f32.xlu0 %v9996_v47 }
 0x414   : > { %1689 = vadd.xlane.f32.xlu0 %v9999_v3 }
 0x418   : > { %1701 = vadd.xlane.f32.xlu0 %v10002_v7 }
 0x41c   : > { %1707 = vadd.xlane.f32.xlu0 %v10006_v4 }
 0x420   : > { %1705 = vadd.xlane.f32.xlu0 %v10010_v28 }
 0x42c   : > { %1711 = vadd.xlane.f32.xlu1 %v10013_v10 }
 0x430   : > { %1709 = vadd.xlane.f32.xlu1 %v10016_v59 }
 0x436   : > { %8142 = vrot.lane.b32.xlu0 %v9667_v34, %s9042_s3 }
 0x43a   : > { %1906 = vrot.lane.b32.xlu0 %v9600_v45, %s9042_s3 }
 0x43e   : > { %1910 = vrot.lane.b32.xlu0 %v9740_v9, %s9042_s3 }
 0x441   : > { %1912 = vrot.lane.b32.xlu1 %v9762_v52, %s9042_s3 }
 0x442   : > { %1914 = vrot.lane.b32.xlu0 %v9758_v40, %s9042_s3 }
 0x445   : > { %1916 = vrot.lane.b32.xlu1 %v9622_v60, %s9042_s3 }
 0x446   : > { %1918 = vrot.lane.b32.xlu0 %v9637_v8, %s9042_s3 }
 0x449   : > { %1920 = vrot.lane.b32.xlu1 %v9633_v5, %s9042_s3 }
 0x44a   : > { %1922 = vrot.lane.b32.xlu0 %v9651_v19, %s9042_s3 }
 0x44d   : > { %1924 = vrot.lane.b32.xlu1 %v9647_v16, %s9042_s3 }
 0x44e   : > { %1926 = vrot.lane.b32.xlu0 %v9661_v31, %s9042_s3 }
 0x451   : > { %1928 = vrot.lane.b32.xlu1 %v9657_v26, %s9042_s3 }
 0x452   : > { %1930 = vrot.lane.b32.xlu0 %v9673_v39, %s9042_s3 }
 0x455   : > { %1932 = vrot.lane.b32.xlu1 %v9670_v35, %s9042_s3 }
 0x456   : > { %1934 = vrot.lane.b32.xlu0 %v9679_v43, %s9042_s3 }
 0x459   : > { %1936 = vrot.lane.b32.xlu1 %v9676_v41, %s9042_s3 }
 0x45a   : > { %8147 = vrot.lane.b32.xlu0 %v9574_v30, %s9043_s1 }
 0x45d   : > { %8152 = vrot.lane.b32.xlu1 %v9589_v37, %s9043_s1 }
 0x45e   : > { %8157 = vrot.lane.b32.xlu0 %v9602_v46, %s9043_s1 }
 0x461   : > { %8162 = vrot.lane.b32.xlu1 %v9618_v54, %s9043_s1 }
 0x462   : > { %8167 = vrot.lane.b32.xlu0 %v9629_v2, %s9043_s1 }
 0x464   : > { %v1684_v33 = vpop.xlane.xlu1 %1683 }
 0x465   : > { %8378 = vrcp.f32 %v1684_v33  ;;  %8172 = vrot.lane.b32.xlu1 %v9643_v13, %s9043_s1  ;;  %v8120_v33 = vunpack.i.h.bf16 %v9947_v27 }
 0x466   : > { %8177 = vrot.lane.b32.xlu0 %v9653_v23, %s9043_s1 }
 0x468   : > { %v1682_v63 = vpop.xlane.xlu0 %1681 }
 0x469   : > { %8380 = vrcp.f32 %v1682_v63  ;;  %8182 = vrot.lane.b32.xlu1 %v9667_v34, %s9043_s1 }
 0x46a   : > { %2967 = vrot.lane.b32.xlu0 %v9600_v45, %s9043_s1 }
 0x46c   : > { %v1686_v25 = vpop.xlane.xlu1 %1685 }
 0x46d   : > { %8382 = vrcp.f32 %v1686_v25  ;;  %2969 = vrot.lane.b32.xlu1 %v9744_v42, %s9043_s1 }
 0x46e   : > { %2973 = vrot.lane.b32.xlu0 %v9762_v52, %s9043_s1 }
 0x46f   : > { %v8379_v49 = vpop.eup %8378 }
 0x470   : > { %v1692_v32 = vpop.xlane.xlu1 %1691  ;;  %v1730_v21 = vmul.f32 %v8379_v49, %v9955_v1 }
 0x471   : > { %8384 = vrcp.f32 %v1692_v32  ;;  %2971 = vrot.lane.b32.xlu1 %v9740_v9, %s9043_s1 }
 0x472   : > { %2979 = vrot.lane.b32.xlu0 %v9637_v8, %s9043_s1  ;;  %1746 = vst [vmem:[%s10083_s28 + $0x8] sm:$0xff] %v1730_v21 }
 0x473   : > { %v8381_v6 = vpop.eup %8380 }
 0x474   : > { %v1696_v61 = vpop.xlane.xlu1 %1695  ;;  %v1729_v1 = vmul.f32 %v8381_v6, %v9960_v55  ;;  %v8124_v6 = vunpack.i.l.bf16 %v9949_v18 }
 0x475   : > { %8386 = vrcp.f32 %v1696_v61  ;;  %2975 = vrot.lane.b32.xlu1 %v9758_v40, %s9043_s1 }
 0x476   : > { %2983 = vrot.lane.b32.xlu0 %v9651_v19, %s9043_s1  ;;  %1745 = vst [vmem:[%s10083_s28] sm:$0xff] %v1729_v1  ;;  %6915 = vmatprep.mubr.f32.mxu0 %v1729_v1 }
 0x477   : > { %v8383_v20 = vpop.eup %8382  ;;  %6916 = vmatmul.mubr.f32.vlgmr.msra.gmra.mrb[32].mxu0 %v1730_v21  ;;  %v8125_v21 = vunpack.i.h.bf16 %v9949_v18  ;;  %v10144_v18 = vpack.i.bf16 %v9694_v56, %v9696_v58  ;;  %v8129_v56 = vunpack.i.l.bf16 %v10063_v14  ;;  %v10161_v58 = vpack.i.bf16 %v9688_v48, %v9690_v51  ;;  %v12102_v48 = vld [vmem:[#allocation32_spill] sm:$0xff] }
 0x478   : > { %7584 = vmatpush3.bf16.xpose.msk.msra.mxu0 %vm9570_vm1, %v9792_v44  ;;  %v1694_v11 = vpop.xlane.xlu1 %1693  ;;  %v1731_v55 = vmul.f32 %v8383_v20, %v9964_v17  ;;  %v8119_v44 = vunpack.i.l.bf16 %v9947_v27  ;;  %v8130_v20 = vunpack.i.h.bf16 %v10063_v14 }
 0x479   : > { %8388 = vrcp.f32 %v1694_v11  ;;  %7587 = vmatprep.subr.msk.bf16.mxu0 %vm9570_vm1, %v7585_v24  ;;  %2977 = vrot.lane.b32.xlu1 %v9622_v60, %s9043_s1  ;;  %v7597_v61 = vpack.c.bf16 %v8125_v21, %v8124_v6  ;;  %12097 = vst [vmem:[#allocation56_spill] sm:$0xff] %v10144_v18  ;;  %v12108_v21 = vld [vmem:[#allocation36_spill] sm:$0xff] }
 0x47a   : > { %2987 = vrot.lane.b32.xlu0 %v9661_v31, %s9043_s1  ;;  %1747 = vst [vmem:[%s10083_s28 + $0x10] sm:$0xff] %v1731_v55  ;;  %6918 = vmatprep.mubr.f32.mxu0 %v1731_v55  ;;  %v7591_v49 = vpack.c.bf16 %v8120_v33, %v8119_v44  ;;  %v12101_v33 = vld [vmem:[#allocation33_spill] sm:$0xff]  ;;  %v12104_v44 = vld [vmem:[#allocation31_spill] sm:$0xff] }
 0x47b   : > { %v8385_v38 = vpop.eup %8384  ;;  %v10178_v51 = vpack.i.bf16 %v12102_v48, %v12101_v33 }
 0x47c   : > { %v1700_v63 = vpop.xlane.xlu1 %1699  ;;  %v10108_v17 = vmul.f32 %v8385_v38, %v9968_v62  ;;  %v7603_v38 = vpack.c.bf16 %v8130_v20, %v8129_v56  ;;  %v12114_v20 = vld [vmem:[#allocation38_spill] sm:$0xff] }
 0x47d   : > { %8390 = vrcp.f32 %v1700_v63  ;;  %2981 = vrot.lane.b32.xlu1 %v9633_v5, %s9043_s1 }
 0x47e   : > { %2991 = vrot.lane.b32.xlu0 %v9673_v39, %s9043_s1  ;;  %1750 = vst [vmem:[%s10083_s28 + $0x28] sm:$0xff] %v10108_v17 }
 0x47f   : > { %v8387_v25 = vpop.eup %8386 }
 0x480   : > { %7590 = vmatpush3.bf16.xpose.msk.msra.mxu0 %vm9570_vm1, %v7585_v24  ;;  %v1698_v27 = vpop.xlane.xlu1 %1697  ;;  %v10119_v32 = vmul.f32 %v8387_v25, %v9972_v0  ;;  %v12099_v24 = vld [vmem:[#allocation28_spill] sm:$0xff] }
 0x481   : > { %8392 = vrcp.f32 %v1698_v27  ;;  %7593 = vmatprep.subr.msk.bf16.mxu0 %vm9570_vm1, %v7591_v49  ;;  %2985 = vrot.lane.b32.xlu1 %v9647_v16, %s9043_s1  ;;  %12103 = vst [vmem:[#allocation28_spill] sm:$0xff] %v10178_v51  ;;  %v8134_v27 = vunpack.i.l.bf16 %v10057_v15 }
 0x482   : > { %2995 = vrot.lane.b32.xlu0 %v9679_v43, %s9043_s1  ;;  %1752 = vst [vmem:[%s10083_s28 + $0x38] sm:$0xff] %v10119_v32 }
 0x483   : > { %v8389_v62 = vpop.eup %8388 }
 0x484   : > { %v1704_v0 = vpop.xlane.xlu1 %1703  ;;  %v10132_v36 = vmul.f32 %v8389_v62, %v9975_v50  ;;  %v12107_v62 = vld [vmem:[#allocation37_spill] sm:$0xff] }
 0x485   : > { %8394 = vrcp.f32 %v1704_v0  ;;  %2989 = vrot.lane.b32.xlu1 %v9657_v26, %s9043_s1  ;;  %v10201_v6 = vpack.i.bf16 %v12108_v21, %v12107_v62  ;;  %v12111_v0 = vld [vmem:[#allocation34_spill] sm:$0xff] }
 0x486   : > { %2997 = vrot.lane.b32.xlu0 %v9676_v41, %s9043_s1  ;;  %1751 = vst [vmem:[%s10083_s28 + $0x30] sm:$0xff] %v10132_v36 }
 0x487   : > { %v8391_v53 = vpop.eup %8390  ;;  %12109 = vst [vmem:[#allocation32_spill] sm:$0xff] %v10201_v6 }
 0x488   : > { %7596 = vmatpush3.bf16.xpose.msk.msra.mxu0 %vm9570_vm1, %v7591_v49  ;;  %v10147_v50 = vmul.f32 %v8391_v53, %v9978_v57  ;;  %v12098_v57 = vld [vmem:[#allocation29_spill] sm:$0xff]  ;;  %v8135_v49 = vunpack.i.h.bf16 %v10057_v15  ;;  %v12113_v15 = vld [vmem:[#allocation39_spill] sm:$0xff] }
 0x489   : > { %7599 = vmatprep.subr.msk.bf16.mxu0 %vm9570_vm1, %v7597_v61  ;;  %2993 = vrot.lane.b32.xlu1 %v9670_v35, %s9043_s1  ;;  %v10165_v11 = vpack.i.bf16 %v12099_v24, %v12098_v57  ;;  %v10215_v56 = vpack.i.bf16 %v12114_v20, %v12113_v15 }
 0x48a   : > { %8192 = vrot.lane.b32.xlu0 %v10144_v18, %s9042_s3  ;;  %1754 = vst [vmem:[%s10083_s28 + $0x48] sm:$0xff] %v10147_v50 }
 0x48b   : > { %v8393_v1 = vpop.eup %8392  ;;  %12100 = vst [vmem:[#allocation29_spill] sm:$0xff] %v10165_v11 }
 0x48c   : > { %v10168_v55 = vmul.f32 %v8393_v1, %v9983_v12  ;;  %v12105_v12 = vld [vmem:[#allocation30_spill] sm:$0xff]  ;;  %v8138_v1 = vpop.permute.xlu0 %8137 }
 0x48d   : > { %8187 = vrot.lane.b32.xlu1 %v10161_v58, %s9042_s3  ;;  %v10184_v63 = vpack.i.bf16 %v12105_v12, %v12104_v44  ;;  %12115 = vst [vmem:[#allocation30_spill] sm:$0xff] %v10215_v56  ;;  %v8140_v57 = vunpack.i.h.bf16 %v8138_v1  ;;  %v8139_v24 = vunpack.i.l.bf16 %v8138_v1  ;;  %v1909_v12 = vpop.permute.xlu1 %1908 }
 0x48e   : > { %8197 = vrot.lane.b32.xlu0 %v10165_v11, %s9042_s3  ;;  %1753 = vst [vmem:[%s10083_s28 + $0x40] sm:$0xff] %v10168_v55 }
 0x48f   : > { %v8395_v14 = vpop.eup %8394  ;;  %12106 = vst [vmem:[#allocation33_spill] sm:$0xff] %v10184_v63 }
 0x490   : > { %7602 = vmatpush3.bf16.xpose.msk.msra.mxu0 %vm9570_vm1, %v7597_v61  ;;  %v10187_v25 = vmul.f32 %v8395_v14, %v9986_v22  ;;  %v12110_v22 = vld [vmem:[#allocation35_spill] sm:$0xff]  ;;  %v7609_v61 = vpack.c.bf16 %v8135_v49, %v8134_v27 }
 0x491   : > { %7605 = vmatprep.subr.msk.bf16.mxu0 %vm9570_vm1, %v7603_v38  ;;  %8207 = vrot.lane.b32.xlu1 %v10178_v51, %s9042_s3  ;;  %v10205_v53 = vpack.i.bf16 %v12111_v0, %v12110_v22 }
 0x492   : > { %8202 = vrot.lane.b32.xlu0 %v10184_v63, %s9042_s3  ;;  %1756 = vst [vmem:[%s10083_s28 + $0x58] sm:$0xff] %v10187_v25 }
 0x493   : > { %12112 = vst [vmem:[#allocation31_spill] sm:$0xff] %v10205_v53 }
 0x495   : > { %8217 = vrot.lane.b32.xlu1 %v10201_v6, %s9042_s3 }
 0x496   : > { %8212 = vrot.lane.b32.xlu0 %v10205_v53, %s9042_s3 }
 0x498   : > { %7608 = vmatpush3.bf16.xpose.msk.msra.mxu0 %vm9570_vm1, %v7603_v38  ;;  %v7615_v38 = vpack.c.bf16 %v8140_v57, %v8139_v24 }
 0x499   : > { %7611 = vmatprep.subr.msk.bf16.mxu0 %vm9570_vm1, %v7609_v61  ;;  %8227 = vrot.lane.b32.xlu1 %v9574_v30, %s9044_s18 }
 0x49a   : > { %8222 = vrot.lane.b32.xlu0 %v10215_v56, %s9042_s3  ;;  %s8910_s3 = scalar_lea.vmem %s11762_s12, 8192 }
 0x49b   : > { %p8911_p4 = scmp.ne.s32.totalorder %s11762_s12, %s8910_s3 }
 0x49d   : > { %8232 = vrot.lane.b32.xlu1 %v9589_v37, %s9044_s18  ;;  %v1688_v14 = vpop.xlane.xlu0 %1687  ;;  %p8912_p5 = pnand %p8911_p4, %p12198_p10 }
 0x49e   : > { %8396 = vrcp.f32 %v1688_v14  ;;  %8237 = vrot.lane.b32.xlu0 %v9602_v46, %s9044_s18 }
 0x49f   : > { %p8913_p7 = pneg %p8912_p5 }
 0x4a0   : > { %7614 = vmatpush3.bf16.xpose.msk.msra.mxu0 %vm9570_vm1, %v7609_v61 }
 0x4a1   : > { %7617 = vmatprep.subr.msk.bf16.mxu0 %vm9570_vm1, %v7615_v38  ;;  %8242 = vrot.lane.b32.xlu1 %v9618_v54, %s9044_s18  ;;  %v1690_v30 = vpop.xlane.xlu0 %1689 }
 0x4a2   : > { %8398 = vrcp.f32 %v1690_v30  ;;  %3837 = vrot.lane.b32.xlu0 %v9744_v42, %s9044_s18 }
 0x4a5   : > { %8247 = vrot.lane.b32.xlu1 %v9629_v2, %s9044_s18  ;;  %v1702_v37 = vpop.xlane.xlu0 %1701 }
 0x4a6   : > { %8400 = vrcp.f32 %v1702_v37  ;;  %3841 = vrot.lane.b32.xlu0 %v9762_v52, %s9044_s18 }
 0x4a8   : > { %v8397_v46 = vpop.eup %8396  ;;  %7620 = vmatpush3.bf16.xpose.msk.msra.mxu0 %vm9570_vm1, %v7615_v38 }
 0x4a9   : > { %8252 = vrot.lane.b32.xlu1 %v9643_v13, %s9044_s18  ;;  %v1708_v54 = vpop.xlane.xlu0 %1707  ;;  %v1732_v33 = vmul.f32 %v8397_v46, %v9996_v47 }
 0x4aa   : > { %8402 = vrcp.f32 %v1708_v54  ;;  %3845 = vrot.lane.b32.xlu0 %v9622_v60, %s9044_s18 }
 0x4ab   : > { %1748 = vst [vmem:[%s10083_s28 + $0x18] sm:$0xff] %v1732_v33  ;;  %6919 = vmatmul.mubr.f32.gmra.mrb[34].mxu0 %v1732_v33 }
 0x4ac   : > { %v8399_v2 = vpop.eup %8398 }
 0x4ad   : > { %8257 = vrot.lane.b32.xlu1 %v9653_v23, %s9044_s18  ;;  %v1706_v42 = vpop.xlane.xlu0 %1705  ;;  %v1733_v52 = vmul.f32 %v8399_v2, %v9999_v3 }
 0x4ae   : > { %8404 = vrcp.f32 %v1706_v42 }
 0x4af   : > { %1749 = vst [vmem:[%s10083_s28 + $0x20] sm:$0xff] %v1733_v52  ;;  %6921 = vmatprep.mubr.f32.mxu0 %v1733_v52 }
 0x4b0   : > { %v8401_v13 = vpop.eup %8400  ;;  %6922 = vmatmul.mubr.f32.gmra.mrb[36].mxu0 %v10108_v17 }
 0x4b1   : > { %8262 = vrot.lane.b32.xlu1 %v9667_v34, %s9044_s18  ;;  %6924 = vmatprep.mubr.f32.mxu0 %v10132_v36  ;;  %v8143_v60 = vpop.permute.xlu0 %8142  ;;  %v1739_v47 = vmul.f32 %v8401_v13, %v10002_v7 }
 0x4b2   : > { %v8145_v48 = vunpack.i.h.bf16 %v8143_v60  ;;  %v8144_v23 = vunpack.i.l.bf16 %v8143_v60 }
 0x4b3   : > { %1755 = vst [vmem:[%s10083_s28 + $0x50] sm:$0xff] %v1739_v47 }
 0x4b4   : > { %v8403_v44 = vpop.eup %8402  ;;  %v7621_v3 = vpack.c.bf16 %v8145_v48, %v8144_v23  ;;  %6925 = vmatmul.mubr.f32.gmra.mrb[38].mxu0 %v10119_v32 }
 0x4b5   : > { %3835 = vrot.lane.b32.xlu1 %v9600_v45, %s9044_s18  ;;  %6927 = vmatprep.mubr.f32.mxu0 %v10168_v55  ;;  %v1907_v34 = vpop.permute.xlu0 %1906  ;;  %v1742_v17 = vmul.f32 %v8403_v44, %v10006_v4 }
 0x4b6   : > { %7623 = vmatprep.subr.msk.bf16.mxu0 %vm9570_vm1, %v7621_v3 }
 0x4b7   : > { %7626 = vmatpush3.bf16.xpose.msk.msra.mxu0 %vm9570_vm1, %v7621_v3  ;;  %1758 = vst [vmem:[%s10083_s28 + $0x68] sm:$0xff] %v1742_v17 }
 0x4b8   : > { %v8405_v7 = vpop.eup %8404  ;;  %6928 = vmatmul.mubr.f32.gmra.mrb[40].mxu0 %v10147_v50 }
 0x4b9   : > { %v1712_v32 = vpop.xlane.xlu1 %1711  ;;  %3839 = vrot.lane.b32.xlu1 %v9740_v9, %s9044_s18  ;;  %6930 = vmatprep.mubr.f32.mxu0 %v1739_v47  ;;  %v1911_v45 = vpop.permute.xlu0 %1910  ;;  %v1741_v36 = vmul.f32 %v8405_v7, %v10010_v28 }
 0x4ba   : > { %8406 = vrcp.f32 %v1712_v32 }
 0x4bb   : > { %1757 = vst [vmem:[%s10083_s28 + $0x60] sm:$0xff] %v1741_v36 }
 0x4bc   : > { %6931 = vmatmul.mubr.f32.gmra.mrb[42].mxu0 %v10187_v25 }
 0x4bd   : > { %3843 = vrot.lane.b32.xlu1 %v9758_v40, %s9044_s18  ;;  %v1710_v4 = vpop.xlane.xlu1 %1709  ;;  %6933 = vmatprep.mubr.f32.mxu0 %v1741_v36  ;;  %v1915_v50 = vpop.permute.xlu0 %1914 }
 0x4be   : > { %8408 = vrcp.f32 %v1710_v4 }
 0x4c0   : > { %6934 = vmatmul.mubr.f32.gmra.mrb[44].mxu0 %v1742_v17 }
 0x4c1   : > { %v1913_v55 = vpop.permute.xlu1 %1912  ;;  %v1919_v9 = vpop.permute.xlu0 %1918 }
 0x4c4   : > { %v8407_v49 = vpop.eup %8406 }
 0x4c5   : > { %v1917_v27 = vpop.permute.xlu1 %1916  ;;  %v1923_v62 = vpop.permute.xlu0 %1922  ;;  %v1744_v28 = vmul.f32 %v8407_v49, %v10013_v10 }
 0x4c7   : > { %1760 = vst [vmem:[%s10083_s28 + $0x78] sm:$0xff] %v1744_v28 }
 0x4c8   : > { %v8409_v21 = vpop.eup %8408 }
 0x4c9   : > { %v1921_v22 = vpop.permute.xlu1 %1920  ;;  %v1927_v25 = vpop.permute.xlu0 %1926  ;;  %v1743_v0 = vmul.f32 %v8409_v21, %v10016_v59 }
 0x4cb   : > { %1759 = vst [vmem:[%s10083_s28 + $0x70] sm:$0xff] %v1743_v0  ;;  %6936 = vmatprep.mubr.f32.mxu0 %v1743_v0 }
 0x4cc   : > { %6937 = vmatmul.mubr.f32.gmra.mrb[46].mxu0 %v1744_v28 }
 0x4cd   : > { %v1925_v40 = vpop.permute.xlu1 %1924  ;;  %6971 = vmatprep.mubr.msk.f32.mxu0 %vm1311_vm0, %v1907_v34  ;;  %v1931_v61 = vpop.permute.xlu0 %1930 }
 0x4d0   : > { %6972 = vmatmul.mubr.msk.f32.vlgmr.msra.gmra.mrb[48].mxu0 %vm1311_vm0, %v1909_v12 }
 0x4d1   : > { %v1929_v1 = vpop.permute.xlu1 %1928  ;;  %v1935_v15 = vpop.permute.xlu0 %1934  ;;  %6974 = vmatprep.mubr.msk.f32.mxu0 %vm1311_vm0, %v1911_v45 }
 0x4d4   : > { %6975 = vmatmul.mubr.msk.f32.gmra.mrb[50].mxu0 %vm1311_vm0, %v1913_v55 }
 0x4d5   : > { %v1933_v10 = vpop.permute.xlu1 %1932  ;;  %v8148_v20 = vpop.permute.xlu0 %8147  ;;  %6977 = vmatprep.mubr.msk.f32.mxu0 %vm1311_vm0, %v1915_v50 }
 0x4d6   : > { %v8150_v59 = vunpack.i.h.bf16 %v8148_v20  ;;  %v8149_v57 = vunpack.i.l.bf16 %v8148_v20 }
 0x4d8   : > { %v7675_v24 = vpack.c.bf16 %v8150_v59, %v8149_v57  ;;  %6978 = vmatmul.mubr.msk.f32.gmra.mrb[52].mxu0 %vm1311_vm0, %v1917_v27 }
 0x4d9   : > { %v1937_v14 = vpop.permute.xlu1 %1936  ;;  %v8158_v38 = vpop.permute.xlu0 %8157  ;;  %6980 = vmatprep.mubr.msk.f32.mxu0 %vm1311_vm0, %v1919_v9 }
 0x4da   : > { %7677 = vmatprep.subr.msk.bf16.mxu0 %vm9570_vm1, %v7675_v24  ;;  %v8160_v46 = vunpack.i.h.bf16 %v8158_v38  ;;  %v8159_v54 = vunpack.i.l.bf16 %v8158_v38 }
 0x4db   : > { %7680 = vmatpush3.bf16.xpose.msk.msra.mxu0 %vm9570_vm1, %v7675_v24 }
 0x4dc   : > { %6981 = vmatmul.mubr.msk.f32.gmra.mrb[54].mxu0 %vm1311_vm0, %v1921_v22  ;;  %v7687_v60 = vpack.c.bf16 %v8160_v46, %v8159_v54 }
 0x4dd   : > { %v8153_v30 = vpop.permute.xlu1 %8152  ;;  %v8168_v37 = vpop.permute.xlu0 %8167  ;;  %6983 = vmatprep.mubr.msk.f32.mxu0 %vm1311_vm0, %v1923_v62 }
 0x4de   : > { %v8155_v33 = vunpack.i.h.bf16 %v8153_v30  ;;  %v8154_v2 = vunpack.i.l.bf16 %v8153_v30  ;;  %v8170_v32 = vunpack.i.h.bf16 %v8168_v37  ;;  %v8169_v45 = vunpack.i.l.bf16 %v8168_v37 }
 0x4e0   : > { %v7681_v42 = vpack.c.bf16 %v8155_v33, %v8154_v2  ;;  %6984 = vmatmul.mubr.msk.f32.gmra.mrb[56].mxu0 %vm1311_vm0, %v1925_v40  ;;  %v7699_v50 = vpack.c.bf16 %v8170_v32, %v8169_v45 }
 0x4e1   : > { %v8163_v52 = vpop.permute.xlu1 %8162  ;;  %v8178_v13 = vpop.permute.xlu0 %8177  ;;  %6986 = vmatprep.mubr.msk.f32.mxu0 %vm1311_vm0, %v1927_v25 }
 0x4e2   : > { %7683 = vmatprep.subr.msk.bf16.mxu0 %vm9570_vm1, %v7681_v42  ;;  %v8165_v23 = vunpack.i.h.bf16 %v8163_v52  ;;  %v8164_v44 = vunpack.i.l.bf16 %v8163_v52  ;;  %v8180_v0 = vunpack.i.h.bf16 %v8178_v13  ;;  %v8179_v40 = vunpack.i.l.bf16 %v8178_v13 }
 0x4e3   : > { %7686 = vmatpush3.bf16.xpose.msk.msra.mxu0 %vm9570_vm1, %v7681_v42 }
 0x4e4   : > { %6987 = vmatmul.mubr.msk.f32.gmra.mrb[58].mxu0 %vm1311_vm0, %v1929_v1  ;;  %7689 = vmatprep.subr.msk.bf16.mxu0 %vm9570_vm1, %v7687_v60  ;;  %v7693_v34 = vpack.c.bf16 %v8165_v23, %v8164_v44 }
 0x4e5   : > { %v8173_v47 = vpop.permute.xlu1 %8172  ;;  %v2968_v48 = vpop.permute.xlu0 %2967  ;;  %6989 = vmatprep.mubr.msk.f32.mxu0 %vm1311_vm0, %v1931_v61 }
 0x4e6   : > { %v8175_v49 = vunpack.i.h.bf16 %v8173_v47  ;;  %v8174_v27 = vunpack.i.l.bf16 %v8173_v47 }
 0x4e8   : > { %6990 = vmatmul.mubr.msk.f32.gmra.mrb[60].mxu0 %vm1311_vm0, %v1933_v10  ;;  %v7705_v21 = vpack.c.bf16 %v8175_v49, %v8174_v27 }
 0x4e9   : > { %v8183_v3 = vpop.permute.xlu1 %8182  ;;  %v10303_v12 = vpop.permute.xlu0 %2973  ;;  %6992 = vmatprep.mubr.msk.f32.mxu0 %vm1311_vm0, %v1935_v15  ;;  %v7711_v15 = vpack.c.bf16 %v8180_v0, %v8179_v40 }
 0x4ea   : > { %v8185_v59 = vunpack.i.h.bf16 %v8183_v3  ;;  %v8184_v57 = vunpack.i.l.bf16 %v8183_v3 }
 0x4eb   : > { %7692 = vmatpush3.bf16.xpose.msk.msra.mxu0 %vm9570_vm1, %v7687_v60 }
 0x4ec   : > { %6993 = vmatmul.mubr.msk.f32.gmra.mrb[62].mxu0 %vm1311_vm0, %v1937_v14  ;;  %7695 = vmatprep.subr.msk.bf16.mxu0 %vm9570_vm1, %v7693_v34  ;;  %v7717_v38 = vpack.c.bf16 %v8185_v59, %v8184_v57 }
 0x4ed   : > { %v10311_v17 = vpop.permute.xlu1 %2969  ;;  %v10313_v7 = vpop.permute.xlu0 %2979  ;;  %7147 = vmatprep.mubr.msk.f32.mxu0 %vm1311_vm0, %v2968_v48 }
 0x4f1   : > { %v10316_v36 = vpop.permute.xlu1 %2971  ;;  %v10318_v4 = vpop.permute.xlu0 %2983 }
 0x4f3   : > { %7698 = vmatpush3.bf16.xpose.msk.msra.mxu0 %vm9570_vm1, %v7693_v34 }
 0x4f4   : > { %7701 = vmatprep.subr.msk.bf16.mxu0 %vm9570_vm1, %v7699_v50 }
 0x4f5   : > { %v10324_v55 = vpop.permute.xlu1 %2975  ;;  %v10326_v9 = vpop.permute.xlu0 %2987 }
 0x4f9   : > { %v10328_v62 = vpop.permute.xlu1 %2977  ;;  %v10330_v28 = vpop.permute.xlu0 %2991 }
 0x4fb   : > { %7704 = vmatpush3.bf16.xpose.msk.msra.mxu0 %vm9570_vm1, %v7699_v50 }
 0x4fc   : > { %7707 = vmatprep.subr.msk.bf16.mxu0 %vm9570_vm1, %v7705_v21 }
 0x4fd   : > { %v10336_v22 = vpop.permute.xlu1 %2981  ;;  %v10338_v25 = vpop.permute.xlu0 %2995 }
 0x501   : > { %v10340_v61 = vpop.permute.xlu1 %2985  ;;  %v10342_v1 = vpop.permute.xlu0 %2997 }
 0x503   : > { %7710 = vmatpush3.bf16.xpose.msk.msra.mxu0 %vm9570_vm1, %v7705_v21 }
 0x504   : > { %7713 = vmatprep.subr.msk.bf16.mxu0 %vm9570_vm1, %v7711_v15 }
 0x505   : > { %v10348_v10 = vpop.permute.xlu1 %2989  ;;  %v8193_v20 = vpop.permute.xlu0 %8192 }
 0x506   : > { %v8195_v37 = vunpack.i.h.bf16 %v8193_v20  ;;  %v8194_v46 = vunpack.i.l.bf16 %v8193_v20 }
 0x508   : > { %v7631_v47 = vpack.c.bf16 %v8195_v37, %v8194_v46 }
 0x509   : > { %v10350_v24 = vpop.permute.xlu1 %2993  ;;  %v8198_v14 = vpop.permute.xlu0 %8197 }
 0x50a   : > { %v8200_v13 = vunpack.i.h.bf16 %v8198_v14  ;;  %v8199_v60 = vunpack.i.l.bf16 %v8198_v14 }
 0x50b   : > { %7716 = vmatpush3.bf16.xpose.msk.msra.mxu0 %vm9570_vm1, %v7711_v15 }
 0x50c   : > { %7719 = vmatprep.subr.msk.bf16.mxu0 %vm9570_vm1, %v7717_v38  ;;  %v7635_v34 = vpack.c.bf16 %v8200_v13, %v8199_v60 }
 0x50d   : > { %v8188_v30 = vpop.permute.xlu1 %8187  ;;  %v8203_v2 = vpop.permute.xlu0 %8202 }
 0x50e   : > { %v8190_v54 = vunpack.i.h.bf16 %v8188_v30  ;;  %v8189_v33 = vunpack.i.l.bf16 %v8188_v30  ;;  %v8205_v23 = vunpack.i.h.bf16 %v8203_v2  ;;  %v8204_v44 = vunpack.i.l.bf16 %v8203_v2 }
 0x510   : > { %v7627_v42 = vpack.c.bf16 %v8190_v54, %v8189_v33  ;;  %v7639_v45 = vpack.c.bf16 %v8205_v23, %v8204_v44 }
 0x511   : > { %v8208_v52 = vpop.permute.xlu1 %8207  ;;  %v8213_v48 = vpop.permute.xlu0 %8212 }
 0x512   : > { %7628 = vmatprep.subr.bf16.mxu1 %v7627_v42  ;;  %v8210_v50 = vunpack.i.h.bf16 %v8208_v52  ;;  %v8209_v49 = vunpack.i.l.bf16 %v8208_v52  ;;  %v8215_v15 = vunpack.i.h.bf16 %v8213_v48  ;;  %v8214_v59 = vunpack.i.l.bf16 %v8213_v48 }
 0x513   : > { %7630 = vmatpush3.bf16.msra.mxu1 %v7627_v42  ;;  %7722 = vmatpush3.bf16.xpose.msk.msra.mxu0 %vm9570_vm1, %v7717_v38 }
 0x514   : > { %7632 = vmatprep.subr.bf16.mxu1 %v7631_v47  ;;  %v7643_v38 = vpack.c.bf16 %v8210_v50, %v8209_v49 }
 0x515   : > { %v8218_v3 = vpop.permute.xlu1 %8217  ;;  %v8223_v27 = vpop.permute.xlu0 %8222 }
 0x516   : > { %v8220_v37 = vunpack.i.h.bf16 %v8218_v3  ;;  %v8219_v46 = vunpack.i.l.bf16 %v8218_v3  ;;  %v8225_v2 = vunpack.i.h.bf16 %v8223_v27  ;;  %v8224_v42 = vunpack.i.l.bf16 %v8223_v27 }
 0x517   : > { %7634 = vmatpush3.bf16.msra.mxu1 %v7631_v47 }
 0x518   : > { %7636 = vmatprep.subr.bf16.mxu1 %v7635_v34  ;;  %v7651_v52 = vpack.c.bf16 %v8220_v37, %v8219_v46 }
 0x519   : > { %v8228_v32 = vpop.permute.xlu1 %8227 }
 0x51a   : > { %v8230_v21 = vunpack.i.h.bf16 %v8228_v32  ;;  %v8229_v0 = vunpack.i.l.bf16 %v8228_v32  ;;  %7148 = vmatmul.mubr.msk.f32.vlgmr.msra.gmra.mrb[64].mxu0 %vm1311_vm0, %v10311_v17  ;;  %v8238_v17 = vpop.permute.xlu0 %8237 }
 0x51b   : > { %7638 = vmatpush3.bf16.msra.mxu1 %v7635_v34  ;;  %7150 = vmatprep.mubr.msk.f32.mxu0 %vm1311_vm0, %v10316_v36  ;;  %v8240_v54 = vunpack.i.h.bf16 %v8238_v17  ;;  %v8239_v33 = vunpack.i.l.bf16 %v8238_v17 }
 0x51c   : > { %v7763_v40 = vpack.c.bf16 %v8230_v21, %v8229_v0  ;;  %7640 = vmatprep.subr.bf16.mxu1 %v7639_v45 }
 0x51d   : > { %v8233_v20 = vpop.permute.xlu1 %8232  ;;  %v7775_v13 = vpack.c.bf16 %v8240_v54, %v8239_v33 }
 0x51e   : > { %v8235_v57 = vunpack.i.h.bf16 %v8233_v20  ;;  %v8234_v14 = vunpack.i.l.bf16 %v8233_v20  ;;  %7151 = vmatmul.mubr.msk.f32.gmra.mrb[66].mxu0 %vm1311_vm0, %v10303_v12  ;;  %7765 = vmatprep.subr.msk.bf16.mxu0 %vm9570_vm1, %v7763_v40  ;;  %v7647_v12 = vpack.c.bf16 %v8215_v15, %v8214_v59  ;;  %v3838_v27 = vpop.permute.xlu0 %3837 }
 0x51f   : > { %7642 = vmatpush3.bf16.msra.mxu1 %v7639_v45  ;;  %7153 = vmatprep.mubr.msk.f32.mxu0 %vm1311_vm0, %v10324_v55 }
 0x520   : > { %v7769_v36 = vpack.c.bf16 %v8235_v57, %v8234_v14  ;;  %7768 = vmatpush3.bf16.xpose.msk.msra.mxu0 %vm9570_vm1, %v7763_v40  ;;  %7644 = vmatprep.subr.bf16.mxu1 %v7643_v38 }
 0x521   : > { %v8243_v30 = vpop.permute.xlu1 %8242 }
 0x522   : > { %7154 = vmatmul.mubr.msk.f32.gmra.mrb[68].mxu0 %vm1311_vm0, %v10328_v62  ;;  %7771 = vmatprep.subr.msk.bf16.mxu0 %vm9570_vm1, %v7769_v36  ;;  %v7655_v62 = vpack.c.bf16 %v8225_v2, %v8224_v42  ;;  %v8245_v60 = vunpack.i.h.bf16 %v8243_v30  ;;  %v3842_v0 = vpop.permute.xlu0 %3841 }
 0x523   : > { %7646 = vmatpush3.bf16.msra.mxu1 %v7643_v38  ;;  %7156 = vmatprep.mubr.msk.f32.mxu0 %vm1311_vm0, %v10313_v7 }
 0x524   : > { %7648 = vmatprep.subr.bf16.mxu1 %v7647_v12 }
 0x525   : > { %v8248_v55 = vpop.permute.xlu1 %8247 }
 0x526   : > { %7157 = vmatmul.mubr.msk.f32.gmra.mrb[70].mxu0 %vm1311_vm0, %v10336_v22  ;;  %v8244_v22 = vunpack.i.l.bf16 %v8243_v30  ;;  %v8249_v48 = vunpack.i.l.bf16 %v8248_v55  ;;  %v3846_v15 = vpop.permute.xlu0 %3845 }
 0x527   : > { %7650 = vmatpush3.bf16.msra.mxu1 %v7647_v12  ;;  %7159 = vmatprep.mubr.msk.f32.mxu0 %vm1311_vm0, %v10318_v4 }
 0x528   : > { %7774 = vmatpush3.bf16.xpose.msk.msra.mxu0 %vm9570_vm1, %v7769_v36  ;;  %7652 = vmatprep.subr.bf16.mxu1 %v7651_v52  ;;  %v7781_v47 = vpack.c.bf16 %v8245_v60, %v8244_v22 }
 0x529   : > { %7777 = vmatprep.subr.msk.bf16.mxu0 %vm9570_vm1, %v7775_v13  ;;  %v8253_v7 = vpop.permute.xlu1 %8252 }
 0x52a   : > { %7160 = vmatmul.mubr.msk.f32.gmra.mrb[72].mxu0 %vm1311_vm0, %v10340_v61  ;;  %v8255_v23 = vunpack.i.h.bf16 %v8253_v7 }
 0x52b   : > { %7654 = vmatpush3.bf16.msra.mxu1 %v7651_v52  ;;  %7162 = vmatprep.mubr.msk.f32.mxu0 %vm1311_vm0, %v10326_v9  ;;  %v8250_v9 = vunpack.i.h.bf16 %v8248_v55 }
 0x52c   : > { %7656 = vmatprep.subr.bf16.mxu1 %v7655_v62 }
 0x52d   : > { %v8258_v4 = vpop.permute.xlu1 %8257 }
 0x52e   : > { %7163 = vmatmul.mubr.msk.f32.gmra.mrb[74].mxu0 %vm1311_vm0, %v10348_v10 }
 0x52f   : > { %7658 = vmatpush3.bf16.msra.mxu1 %v7655_v62  ;;  %7165 = vmatprep.mubr.msk.f32.mxu0 %vm1311_vm0, %v10330_v28  ;;  %v7787_v28 = vpack.c.bf16 %v8250_v9, %v8249_v48 }
 0x530   : > { %7780 = vmatpush3.bf16.xpose.msk.msra.mxu0 %vm9570_vm1, %v7775_v13 }
 0x531   : > { %7783 = vmatprep.subr.msk.bf16.mxu0 %vm9570_vm1, %v7781_v47  ;;  %v8263_v61 = vpop.permute.xlu1 %8262 }
 0x532   : > { %7166 = vmatmul.mubr.msk.f32.gmra.mrb[76].mxu0 %vm1311_vm0, %v10350_v24  ;;  %v8254_v24 = vunpack.i.l.bf16 %v8253_v7  ;;  %v8265_v32 = vunpack.i.h.bf16 %v8263_v61  ;;  %v8264_v45 = vunpack.i.l.bf16 %v8263_v61 }
 0x533   : > { %7168 = vmatprep.mubr.msk.f32.mxu0 %vm1311_vm0, %v10338_v25  ;;  %v8260_v25 = vunpack.i.h.bf16 %v8258_v4 }
 0x534   : > { %v7793_v44 = vpack.c.bf16 %v8255_v23, %v8254_v24  ;;  %v7805_v49 = vpack.c.bf16 %v8265_v32, %v8264_v45 }
 0x535   : > { %v3836_v10 = vpop.permute.xlu1 %3835 }
 0x536   : > { %7169 = vmatmul.mubr.msk.f32.gmra.mrb[78].mxu0 %vm1311_vm0, %v10342_v1  ;;  %v8259_v1 = vunpack.i.l.bf16 %v8258_v4 }
 0x537   : > { %7291 = vmatprep.mubr.msk.f32.mxu0 %vm1311_vm0, %v3836_v10 }
 0x538   : > { %7786 = vmatpush3.bf16.xpose.msk.msra.mxu0 %vm9570_vm1, %v7781_v47  ;;  %v7799_v3 = vpack.c.bf16 %v8260_v25, %v8259_v1 }
 0x539   : > { %7789 = vmatprep.subr.msk.bf16.mxu0 %vm9570_vm1, %v7787_v28  ;;  %v3840_v21 = vpop.permute.xlu1 %3839 }
 0x53d   : > { %v3844_v40 = vpop.permute.xlu1 %3843 }
 0x540   : > { %7792 = vmatpush3.bf16.xpose.msk.msra.mxu0 %vm9570_vm1, %v7787_v28 }
 0x541   : > { %7795 = vmatprep.subr.msk.bf16.mxu0 %vm9570_vm1, %v7793_v44 }
 0x548   : > { %7798 = vmatpush3.bf16.xpose.msk.msra.mxu0 %vm9570_vm1, %v7793_v44 }
 0x549   : > { %7801 = vmatprep.subr.msk.bf16.mxu0 %vm9570_vm1, %v7799_v3 }
 0x54a   : > { %v10415_v34 = vpop.f32.mrb[32].mxu0 }
 0x54b   : > { %12116 = vst [vmem:[#allocation37_spill] sm:$0xff] %v10415_v34  ;;  %v10417_v50 = vpop.f32.mrb[33].mxu0 }
 0x54c   : > { %12117 = vst [vmem:[#allocation36_spill] sm:$0xff] %v10417_v50 }
 0x550   : > { %7804 = vmatpush3.bf16.xpose.msk.msra.mxu0 %vm9570_vm1, %v7799_v3 }
 0x551   : > { %7807 = vmatprep.subr.msk.bf16.mxu0 %vm9570_vm1, %v7805_v49 }
 0x558   : > { %7810 = vmatpush3.bf16.xpose.msk.msra.mxu0 %vm9570_vm1, %v7805_v49 }
 0x55f   : > { %7292 = vmatmul.mubr.msk.f32.vlgmr.msra.gmra.mrb[80].mxu0 %vm1311_vm0, %v3838_v27 }
 0x560   : > { %7294 = vmatprep.mubr.msk.f32.mxu0 %vm1311_vm0, %v3840_v21 }
 0x563   : > { %7295 = vmatmul.mubr.msk.f32.gmra.mrb[82].mxu0 %vm1311_vm0, %v3842_v0 }
 0x564   : > { %7297 = vmatprep.mubr.msk.f32.mxu0 %vm1311_vm0, %v3844_v40 }
 0x567   : > { %7298 = vmatmul.mubr.msk.f32.gmra.mrb[84].mxu0 %vm1311_vm0, %v3846_v15 }
 0x57e   : > { %v10430_v20 = vpop.f32.mrb[34].mxu0 }
 0x57f   : > { %12118 = vst [vmem:[#allocation35_spill] sm:$0xff] %v10430_v20  ;;  %v10432_v59 = vpop.f32.mrb[35].mxu0 }
 0x580   : > { %12119 = vst [vmem:[#allocation34_spill] sm:$0xff] %v10432_v59 }
 0x583   : > { %v10434_v29 = vpop.f32.mrb[36].mxu0 }
 0x584   : > { %12120 = vst [vmem:[#allocation39_spill] sm:$0xff] %v10434_v29  ;;  %v10436_v57 = vpop.f32.mrb[37].mxu0 }
 0x585   : > { %12121 = vst [vmem:[#allocation38_spill] sm:$0xff] %v10436_v57 }
 0x587   : > { %v10438_v14 = vpop.f32.mrb[38].mxu0 }
 0x588   : > { %12122 = vst [vmem:[#allocation57_spill] sm:$0xff] %v10438_v14  ;;  %v10440_v38 = vpop.f32.mrb[39].mxu0 }
 0x589   : > { %12123 = vst [vmem:[#allocation58_spill] sm:$0xff] %v10440_v38 }
 0x58b   : > { %v10442_v17 = vpop.f32.mrb[40].mxu0 }
 0x58c   : > { %12124 = vst [vmem:[#allocation59_spill] sm:$0xff] %v10442_v17  ;;  %v10444_v36 = vpop.f32.mrb[41].mxu0 }
 0x58d   : > { %12125 = vst [vmem:[#allocation60_spill] sm:$0xff] %v10444_v36 }
 0x58f   : > { %v10446_v30 = vpop.f32.mrb[42].mxu0 }
 0x590   : > { %12126 = vst [vmem:[#allocation61_spill] sm:$0xff] %v10446_v30  ;;  %v10448_v37 = vpop.f32.mrb[43].mxu0 }
 0x591   : > { %12127 = vst [vmem:[#allocation62_spill] sm:$0xff] %v10448_v37  ;;  %v1303_v37 = vld [vmem:[#allocation11 + $0x40] sm:$0xff] }
 0x593   : > { %v10450_v46 = vpop.f32.mrb[44].mxu0 }
 0x594   : > { %12128 = vst [vmem:[#allocation63_spill] sm:$0xff] %v10450_v46  ;;  %v10452_v12 = vpop.f32.mrb[45].mxu0 }
 0x595   : > { %12129 = vst [vmem:[#allocation64_spill] sm:$0xff] %v10452_v12 }
 0x59f   : > { %v10454_v54 = vpop.f32.mrb[46].mxu0 }
 0x5a0   : > { %12130 = vst [vmem:[#allocation65_spill] sm:$0xff] %v10454_v54  ;;  %v10456_v33 = vpop.f32.mrb[47].mxu0  ;;  %v12144_v54 = vld [vmem:[#allocation51_spill] sm:$0xff] }
 0x5a1   : > { %12131 = vst [vmem:[#allocation66_spill] sm:$0xff] %v10456_v33 }
 0x5a3   : > { %v6973_v55 = vpop.f32.mrb[48].mxu0 }
 0x5a4   : > { %v2180_v2 = vmul.f32 0.17677669, %v6973_v55  ;;  %v2100_v42 = vpop.f32.mrb[49].mxu0 }
 0x5a5   : > { %v2179_v52 = vmul.f32 0.17677669, %v2100_v42 }
 0x5a6   : > { %v10460_v7 = vsel %vm1570_vm2, -1e+09, %v2180_v2 }
 0x5a7   : > { %2213 = vmax.xlane.f32.xlu1 %v10460_v7  ;;  %v6976_v62 = vpop.f32.mrb[50].mxu0  ;;  %v10465_v22 = vsel %vm1569_vm3, -1e+09, %v2179_v52 }
 0x5a8   : > { %v2182_v4 = vmul.f32 0.17677669, %v6976_v62  ;;  %2211 = vmax.xlane.f32.xlu0 %v10465_v22  ;;  %v2110_v47 = vpop.f32.mrb[51].mxu0 }
 0x5a9   : > { %v2181_v61 = vmul.f32 0.17677669, %v2110_v47 }
 0x5aa   : > { %v10470_v48 = vsel %vm1572_vm4, -1e+09, %v2182_v4 }
 0x5ab   : > { %v6979_v10 = vpop.f32.mrb[52].mxu0  ;;  %v10474_v23 = vsel %vm1571_vm5, -1e+09, %v2181_v61  ;;  %v12140_v61 = vld [vmem:[#allocation48_spill] sm:$0xff] }
 0x5ac   : > { %v2184_v24 = vmul.f32 0.17677669, %v6979_v10  ;;  %2217 = vmax.xlane.f32.xlu0 %v10470_v48  ;;  %2215 = vmax.xlane.f32.xlu1 %v10474_v23  ;;  %v2120_v44 = vpop.f32.mrb[53].mxu0 }
 0x5ad   : > { %v2183_v3 = vmul.f32 0.17677669, %v2120_v44 }
 0x5ae   : > { %v10480_v1 = vsel %vm1574_vm7, -1e+09, %v2184_v24 }
 0x5af   : > { %v6982_v32 = vpop.f32.mrb[54].mxu0  ;;  %v10485_v40 = vsel %vm1573_vm6, -1e+09, %v2183_v3 }
 0x5b0   : > { %2221 = vmax.xlane.f32.xlu1 %v10480_v1  ;;  %v2130_v45 = vpop.f32.mrb[55].mxu0  ;;  %v2186_v27 = vmul.f32 0.17677669, %v6982_v32 }
 0x5b1   : > { %v2185_v49 = vmul.f32 0.17677669, %v2130_v45 }
 0x5b2   : > { %v10495_v62 = vsel %vm1576_vm9, -1e+09, %v2186_v27  ;;  %v12142_v27 = vld [vmem:[#allocation50_spill] sm:$0xff] }
 0x5b3   : > { %v6985_v21 = vpop.f32.mrb[56].mxu0  ;;  %v10489_v55 = vsel %vm1575_vm8, -1e+09, %v2185_v49  ;;  %vm12143_vm1 = vcmp.gt.f32.partialorder %v12142_v27, 0.5 }
 0x5b4   : > { %2219 = vmax.xlane.f32.xlu1 %v10485_v40  ;;  %2223 = vmax.xlane.f32.xlu0 %v10489_v55  ;;  %v2140_v2 = vpop.f32.mrb[57].mxu0  ;;  %v2188_v4 = vmul.f32 0.17677669, %v6985_v21 }
 0x5b5   : > { %v2187_v42 = vmul.f32 0.17677669, %v2140_v2 }
 0x5b6   : > { %v10505_v49 = vsel %vm1578_vm11, -1e+09, %v2188_v4 }
 0x5b7   : > { %v6988_v47 = vpop.f32.mrb[58].mxu0  ;;  %v10499_v10 = vsel %vm12001_vm10, -1e+09, %v2187_v42  ;;  %vm12145_vm10 = vcmp.gt.f32.partialorder %v12144_v54, 0.5 }
 0x5b8   : > { %2225 = vmax.xlane.f32.xlu1 %v10495_v62  ;;  %2227 = vmax.xlane.f32.xlu0 %v10499_v10  ;;  %v2150_v24 = vpop.f32.mrb[59].mxu0  ;;  %v2190_v3 = vmul.f32 0.17677669, %v6988_v47 }
 0x5b9   : > { %v2189_v44 = vmul.f32 0.17677669, %v2150_v24 }
 0x5ba   : > { %v10515_v33 = vsel %vm12145_vm10, -1e+09, %v2190_v3  ;;  %vm12156_vm10 = vcmp.gt.f32.partialorder %v12140_v61, 0.5 }
 0x5bb   : > { %v6991_v32 = vpop.f32.mrb[60].mxu0  ;;  %v10509_v21 = vsel %vm12143_vm1, -1e+09, %v2189_v44 }
 0x5bc   : > { %2229 = vmax.xlane.f32.xlu1 %v10505_v49  ;;  %2231 = vmax.xlane.f32.xlu0 %v10509_v21  ;;  %v2160_v2 = vpop.f32.mrb[61].mxu0  ;;  %v2192_v47 = vmul.f32 0.17677669, %v6991_v32 }
 0x5bd   : > { %v2191_v42 = vmul.f32 0.17677669, %v2160_v2 }
 0x5be   : > { %v10525_v2 = vsel %vm1582_vm15, -1e+09, %v2192_v47 }
 0x5bf   : > { %v6994_v24 = vpop.f32.mrb[62].mxu0  ;;  %v10519_v4 = vsel %vm1581_vm14, -1e+09, %v2191_v42 }
 0x5c0   : > { %2233 = vmax.xlane.f32.xlu1 %v10515_v33  ;;  %2235 = vmax.xlane.f32.xlu0 %v10519_v4  ;;  %v2170_v44 = vpop.f32.mrb[63].mxu0  ;;  %v2194_v30 = vmul.f32 0.17677669, %v6994_v24 }
 0x5c1   : > { %v2193_v12 = vmul.f32 0.17677669, %v2170_v44 }
 0x5c2   : > { %v10535_v42 = vsel %vm1584_vm12, -1e+09, %v2194_v30 }
 0x5c3   : > { %v10529_v3 = vsel %vm1583_vm13, -1e+09, %v2193_v12 }
 0x5c4   : > { %2237 = vmax.xlane.f32.xlu1 %v10525_v2  ;;  %2239 = vmax.xlane.f32.xlu0 %v10529_v3 }
 0x5c8   : > { %2241 = vmax.xlane.f32.xlu1 %v10535_v42 }
 0x5d9   : > { %3847 = vrot.lane.b32.xlu1 %v9637_v8, %s9044_s18 }
 0x5da   : > { %3849 = vrot.lane.b32.xlu0 %v9633_v5, %s9044_s18 }
 0x5ed   : > { %v7149_v47 = vpop.f32.mrb[64].mxu0 }
 0x5ee   : > { %v3161_v24 = vpop.f32.mrb[65].mxu0  ;;  %v3241_v36 = vmul.f32 0.17677669, %v7149_v47 }
 0x5ef   : > { %v3240_v30 = vmul.f32 0.17677669, %v3161_v24 }
 0x5f0   : > { %v10552_v29 = vsel %vm1570_vm2, -1e+09, %v3241_v36 }
 0x5f1   : > { %v10542_v12 = vpop.f32.mrb[66].mxu0  ;;  %12150 = vst [vmem:[#allocation42_spill] sm:$0xff] %v10552_v29  ;;  %v10561_v57 = vsel %vm1569_vm3, -1e+09, %v3240_v30 }
 0x5f2   : > { %v10544_v44 = vpop.f32.mrb[67].mxu0  ;;  %12151 = vst [vmem:[#allocation43_spill] sm:$0xff] %v10561_v57 }
 0x5f5   : > { %v10546_v14 = vpop.f32.mrb[68].mxu0 }
 0x5f6   : > { %v10548_v38 = vpop.f32.mrb[69].mxu0 }
 0x5f9   : > { %v10554_v8 = vpop.f32.mrb[70].mxu0  ;;  %3274 = vmax.xlane.f32.xlu0 %v10552_v29 }
 0x5fa   : > { %v10557_v5 = vpop.f32.mrb[71].mxu0 }
 0x5fd   : > { %3272 = vmax.xlane.f32.xlu1 %v10561_v57  ;;  %v10564_v47 = vpop.f32.mrb[72].mxu0 }
 0x5fe   : > { %v10566_v20 = vpop.f32.mrb[73].mxu0 }
 0x601   : > { %v10568_v24 = vpop.f32.mrb[74].mxu0 }
 0x602   : > { %v10570_v36 = vpop.f32.mrb[75].mxu0 }
 0x605   : > { %v10572_v13 = vpop.f32.mrb[76].mxu0 }
 0x606   : > { %v10574_v59 = vpop.f32.mrb[77].mxu0 }
 0x609   : > { %v10576_v34 = vpop.f32.mrb[78].mxu0 }
 0x60a   : > { %12152 = vst [vmem:[#allocation45_spill] sm:$0xff] %v10576_v34  ;;  %v10578_v50 = vpop.f32.mrb[79].mxu0 }
 0x632   : > { %v10580_v30 = vpop.f32.mrb[80].mxu0 }
 0x633   : > { %12153 = vst [vmem:[#allocation44_spill] sm:$0xff] %v10580_v30  ;;  %v10582_v60 = vpop.f32.mrb[81].mxu0 }
 0x634   : > { %12154 = vst [vmem:[#allocation46_spill] sm:$0xff] %v10582_v60  ;;  %v2214_v29 = vpop.xlane.xlu1 %2213 }
 0x635   : > { %v2244_v6 = vsub.f32 %v10460_v7, %v2214_v29  ;;  %v2212_v51 = vpop.xlane.xlu0 %2211 }
 0x636   : > { %v2243_v11 = vsub.f32 %v10465_v22, %v2212_v51  ;;  %v10586_v57 = vpop.f32.mrb[82].mxu0 }
 0x637   : > { %v2261_v32 = vmul.f32 1.442695, %v2244_v6  ;;  %v10588_v56 = vpop.f32.mrb[83].mxu0 }
 0x638   : > { %12155 = vst [vmem:[#allocation47_spill] sm:$0xff] %v10588_v56  ;;  %v2259_v53 = vmul.f32 1.442695, %v2243_v11 }
 0x639   : > { %8410 = vpow2.f32 %v2261_v32  ;;  %v2218_v34 = vpop.xlane.xlu0 %2217  ;;  %v2216_v63 = vpop.xlane.xlu1 %2215 }
 0x63a   : > { %8412 = vpow2.f32 %v2259_v53  ;;  %v2246_v30 = vsub.f32 %v10470_v48, %v2218_v34  ;;  %v2245_v60 = vsub.f32 %v10474_v23, %v2216_v63  ;;  %v10592_v18 = vpop.f32.mrb[84].mxu0 }
 0x63b   : > { %v10594_v29 = vpop.f32.mrb[85].mxu0 }
 0x63c   : > { %v2265_v7 = vmul.f32 1.442695, %v2246_v30  ;;  %v2263_v51 = vmul.f32 1.442695, %v2245_v60 }
 0x63d   : > { %v2222_v22 = vpop.xlane.xlu1 %2221 }
 0x63e   : > { %8414 = vpow2.f32 %v2265_v7  ;;  %v2248_v6 = vsub.f32 %v10480_v1, %v2222_v22 }
 0x63f   : > { %8416 = vpow2.f32 %v2263_v51 }
 0x640   : > { %v2269_v56 = vmul.f32 1.442695, %v2248_v6 }
 0x641   : > { %v2220_v11 = vpop.xlane.xlu1 %2219  ;;  %v2224_v32 = vpop.xlane.xlu0 %2223 }
 0x642   : > { %8418 = vpow2.f32 %v2269_v56  ;;  %v2247_v53 = vsub.f32 %v10485_v40, %v2220_v11  ;;  %v2249_v34 = vsub.f32 %v10489_v55, %v2224_v32 }
 0x643   : > { %v10599_v63 = vpop.eup %8410 }
 0x644   : > { %v10601_v48 = vpop.eup %8412  ;;  %v2267_v23 = vmul.f32 1.442695, %v2247_v53  ;;  %2293 = vadd.xlane.f32.xlu1 %v10599_v63  ;;  %v2271_v60 = vmul.f32 1.442695, %v2249_v34 }
 0x645   : > { %v2226_v30 = vpop.xlane.xlu1 %2225  ;;  %v2228_v7 = vpop.xlane.xlu0 %2227  ;;  %2291 = vadd.xlane.f32.xlu0 %v10601_v48 }
 0x646   : > { %8420 = vpow2.f32 %v2267_v23  ;;  %v2250_v1 = vsub.f32 %v10495_v62, %v2226_v30  ;;  %v2251_v56 = vsub.f32 %v10499_v10, %v2228_v7 }
 0x647   : > { %8422 = vpow2.f32 %v2271_v60 }
 0x648   : > { %v10607_v40 = vpop.eup %8414  ;;  %v2273_v55 = vmul.f32 1.442695, %v2250_v1  ;;  %v2275_v51 = vmul.f32 1.442695, %v2251_v56 }
 0x649   : > { %v2230_v22 = vpop.xlane.xlu1 %2229  ;;  %v2232_v6 = vpop.xlane.xlu0 %2231  ;;  %2297 = vadd.xlane.f32.xlu1 %v10607_v40 }
 0x64a   : > { %8424 = vpow2.f32 %v2273_v55  ;;  %v2252_v11 = vsub.f32 %v10505_v49, %v2230_v22  ;;  %v2253_v32 = vsub.f32 %v10509_v21, %v2232_v6  ;;  %v10612_v53 = vpop.eup %8416 }
 0x64b   : > { %8426 = vpow2.f32 %v2275_v51 }
 0x64c   : > { %v10614_v34 = vpop.eup %8418  ;;  %v2277_v62 = vmul.f32 1.442695, %v2252_v11  ;;  %v2279_v10 = vmul.f32 1.442695, %v2253_v32 }
 0x64d   : > { %v2234_v23 = vpop.xlane.xlu1 %2233  ;;  %2295 = vadd.xlane.f32.xlu1 %v10612_v53  ;;  %2301 = vadd.xlane.f32.xlu0 %v10614_v34  ;;  %v2236_v30 = vpop.xlane.xlu0 %2235 }
 0x64e   : > { %8428 = vpow2.f32 %v2277_v62  ;;  %v2254_v60 = vsub.f32 %v10515_v33, %v2234_v23  ;;  %v2255_v1 = vsub.f32 %v10519_v4, %v2236_v30 }
 0x64f   : > { %8430 = vpow2.f32 %v2279_v10 }
 0x650   : > { %v10619_v7 = vpop.eup %8420  ;;  %v2281_v49 = vmul.f32 1.442695, %v2254_v60  ;;  %v2283_v11 = vmul.f32 1.442695, %v2255_v1 }
 0x651   : > { %v2238_v21 = vpop.xlane.xlu1 %2237  ;;  %2299 = vadd.xlane.f32.xlu1 %v10619_v7  ;;  %v10624_v55 = vpop.eup %8422 }
 0x652   : > { %8432 = vpow2.f32 %v2281_v49  ;;  %v2256_v56 = vsub.f32 %v10525_v2, %v2238_v21  ;;  %v2240_v6 = vpop.xlane.xlu0 %2239  ;;  %v3242_v49 = vmul.f32 0.17677669, %v10544_v44 }
 0x653   : > { %v2257_v10 = vsub.f32 %v10529_v3, %v2240_v6  ;;  %v3243_v6 = vmul.f32 0.17677669, %v10542_v12 }
 0x654   : > { %v10626_v51 = vpop.eup %8424  ;;  %v2285_v22 = vmul.f32 1.442695, %v2256_v56  ;;  %v10651_v3 = vsel %vm1571_vm5, -1e+09, %v3242_v49  ;;  %v3250_v49 = vmul.f32 0.17677669, %v10570_v36 }
 0x655   : > { %v2242_v33 = vpop.xlane.xlu1 %2241  ;;  %2303 = vadd.xlane.f32.xlu1 %v10624_v55  ;;  %2305 = vadd.xlane.f32.xlu0 %v10626_v51  ;;  %v10631_v62 = vpop.eup %8426  ;;  %v2287_v21 = vmul.f32 1.442695, %v2257_v10 }
 0x656   : > { %8434 = vpow2.f32 %v2285_v22  ;;  %v2258_v32 = vsub.f32 %v10535_v42, %v2242_v33  ;;  %v3850_v60 = vpop.permute.xlu0 %3849  ;;  %v3245_v33 = vmul.f32 0.17677669, %v10546_v14  ;;  %v10722_v36 = vsel %vm12143_vm1, -1e+09, %v3250_v49 }
 0x657   : > { %8436 = vpow2.f32 %v2283_v11  ;;  %v10672_v11 = vsel %vm1572_vm4, -1e+09, %v3243_v6 }
 0x658   : > { %v10633_v4 = vpop.eup %8428  ;;  %v2289_v23 = vmul.f32 1.442695, %v2258_v32  ;;  %v10677_v32 = vsel %vm1574_vm7, -1e+09, %v3245_v33 }
 0x659   : > { %v3848_v2 = vpop.permute.xlu1 %3847  ;;  %2307 = vadd.xlane.f32.xlu1 %v10631_v62  ;;  %2309 = vadd.xlane.f32.xlu0 %v10633_v4  ;;  %v10639_v30 = vpop.eup %8430 }
 0x65a   : > { %7300 = vmatprep.mubr.msk.f32.mxu0 %vm1311_vm0, %v3848_v2  ;;  %8438 = vpow2.f32 %v2289_v23  ;;  %v3249_v2 = vmul.f32 0.17677669, %v10564_v47 }
 0x65b   : > { %7301 = vmatmul.mubr.msk.f32.gmra.mrb[86].mxu0 %vm1311_vm0, %v3850_v60  ;;  %8440 = vpow2.f32 %v2287_v21 }
 0x65c   : > { %v10642_v42 = vpop.eup %8432 }
 0x65d   : > { %2311 = vadd.xlane.f32.xlu1 %v10639_v30  ;;  %2313 = vadd.xlane.f32.xlu0 %v10642_v42 }
 0x660   : > { %v10647_v1 = vpop.eup %8434 }
 0x661   : > { %3276 = vmax.xlane.f32.xlu1 %v10651_v3  ;;  %2317 = vadd.xlane.f32.xlu0 %v10647_v1  ;;  %v10655_v56 = vpop.eup %8436 }
 0x664   : > { %v10658_v44 = vpop.eup %8438 }
 0x665   : > { %2315 = vadd.xlane.f32.xlu1 %v10655_v56  ;;  %v10661_v22 = vpop.eup %8440 }
 0x669   : > { %2321 = vadd.xlane.f32.xlu1 %v10658_v44 }
 0x66d   : > { %2319 = vadd.xlane.f32.xlu1 %v10661_v22 }
 0x677   : > { %3851 = vrot.lane.b32.xlu0 %v9651_v19, %s9044_s18  ;;  %v3244_v19 = vmul.f32 0.17677669, %v10548_v38  ;;  %v3247_v38 = vmul.f32 0.17677669, %v10554_v8  ;;  %v3248_v8 = vmul.f32 0.17677669, %v10566_v20 }
 0x679   : > { %v10684_v12 = vsel %vm1573_vm6, -1e+09, %v3244_v19  ;;  %v10704_v23 = vsel %vm1576_vm9, -1e+09, %v3247_v38  ;;  %v10716_v33 = vsel %vm12156_vm10, -1e+09, %v3248_v8 }
 0x67a   : > { %vm12157_vm10 = vcmp.gt.f32.partialorder %v12144_v54, 0.5 }
 0x67e   : > { %3853 = vrot.lane.b32.xlu1 %v9647_v16, %s9044_s18  ;;  %v3246_v16 = vmul.f32 0.17677669, %v10557_v5 }
 0x680   : > { %v10689_v14 = vsel %vm1575_vm8, -1e+09, %v3246_v16 }
 0x686   : > { %v10700_v10 = vpop.xlane.xlu0 %3274 }
 0x68a   : > { %v10697_v5 = vpop.xlane.xlu1 %3272 }
 0x696   : > { %3278 = vmax.xlane.f32.xlu0 %v10672_v11 }
 0x69a   : > { %3282 = vmax.xlane.f32.xlu0 %v10677_v32 }
 0x6a2   : > { %3280 = vmax.xlane.f32.xlu1 %v10684_v12 }
 0x6a6   : > { %3284 = vmax.xlane.f32.xlu1 %v10689_v14 }
 0x6b0   : > { %3855 = vrot.lane.b32.xlu0 %v9661_v31, %s9044_s18 }
 0x6b7   : > { %3857 = vrot.lane.b32.xlu1 %v9657_v26, %s9044_s18  ;;  %v10709_v26 = vsel %vm1578_vm11, -1e+09, %v3249_v2 }
 0x6cf   : > { %3286 = vmax.xlane.f32.xlu0 %v10704_v23 }
 0x6d1   : > { %v2294_v60 = vpop.xlane.xlu1 %2293 }
 0x6d2   : > { %8442 = vrcp.f32 %v2294_v60  ;;  %v2292_v31 = vpop.xlane.xlu0 %2291 }
 0x6d3   : > { %8444 = vrcp.f32 %v2292_v31  ;;  %3290 = vmax.xlane.f32.xlu0 %v10709_v26 }
 0x6d6   : > { %v2298_v47 = vpop.xlane.xlu1 %2297 }
 0x6d7   : > { %8446 = vrcp.f32 %v2298_v47 }
 0x6da   : > { %v2296_v21 = vpop.xlane.xlu1 %2295  ;;  %v2302_v6 = vpop.xlane.xlu0 %2301 }
 0x6db   : > { %8448 = vrcp.f32 %v2296_v21  ;;  %3288 = vmax.xlane.f32.xlu1 %v10716_v33 }
 0x6dc   : > { %v8443_v19 = vpop.eup %8442  ;;  %8450 = vrcp.f32 %v2302_v6 }
 0x6dd   : > { %v8445_v16 = vpop.eup %8444  ;;  %v2340_v20 = vmul.f32 %v8443_v19, %v10599_v63 }
 0x6de   : > { %v2300_v38 = vpop.xlane.xlu1 %2299  ;;  %v2339_v2 = vmul.f32 %v8445_v16, %v10601_v48 }
 0x6df   : > { %8452 = vrcp.f32 %v2300_v38  ;;  %3292 = vmax.xlane.f32.xlu1 %v10722_v36  ;;  %5954 = vst [vmem:[%s10083_s28 + $0x88] sm:$0xff] %v2340_v20 }
 0x6e0   : > { %5953 = vst [vmem:[%s10083_s28 + $0x80] sm:$0xff] %v2339_v2  ;;  %7027 = vmatprep.mubr.f32.mxu1 %v2339_v2 }
 0x6e1   : > { %v8447_v60 = vpop.eup %8446  ;;  %7028 = vmatmul.mubr.f32.vlgmr.msra.gmra.mrb[32].mxu1 %v2340_v20 }
 0x6e2   : > { %v2304_v31 = vpop.xlane.xlu1 %2303  ;;  %v2306_v8 = vpop.xlane.xlu0 %2305  ;;  %v2342_v63 = vmul.f32 %v8447_v60, %v10607_v40 }
 0x6e3   : > { %8454 = vrcp.f32 %v2304_v31 }
 0x6e4   : > { %8456 = vrcp.f32 %v2306_v8  ;;  %5956 = vst [vmem:[%s10083_s28 + $0x98] sm:$0xff] %v2342_v63 }
 0x6e5   : > { %v8449_v47 = vpop.eup %8448 }
 0x6e6   : > { %v8451_v49 = vpop.eup %8450  ;;  %v2308_v48 = vpop.xlane.xlu1 %2307  ;;  %v2341_v6 = vmul.f32 %v8449_v47, %v10612_v53 }
 0x6e7   : > { %v2310_v21 = vpop.xlane.xlu0 %2309  ;;  %8458 = vrcp.f32 %v2308_v48  ;;  %v2344_v19 = vmul.f32 %v8451_v49, %v10614_v34 }
 0x6e8   : > { %8460 = vrcp.f32 %v2310_v21  ;;  %5955 = vst [vmem:[%s10083_s28 + $0x90] sm:$0xff] %v2341_v6  ;;  %7030 = vmatprep.mubr.f32.mxu1 %v2341_v6 }
 0x6e9   : > { %v8453_v16 = vpop.eup %8452  ;;  %3859 = vrot.lane.b32.xlu0 %v9673_v39, %s9044_s18  ;;  %7031 = vmatmul.mubr.f32.gmra.mrb[34].mxu1 %v2342_v63  ;;  %5958 = vst [vmem:[%s10083_s28 + $0xa8] sm:$0xff] %v2344_v19 }
 0x6ea   : > { %v2312_v40 = vpop.xlane.xlu1 %2311  ;;  %v2343_v38 = vmul.f32 %v8453_v16, %v10619_v7 }
 0x6eb   : > { %v2314_v20 = vpop.xlane.xlu0 %2313  ;;  %8462 = vrcp.f32 %v2312_v40 }
 0x6ec   : > { %8464 = vrcp.f32 %v2314_v20  ;;  %5957 = vst [vmem:[%s10083_s28 + $0xa0] sm:$0xff] %v2343_v38  ;;  %7033 = vmatprep.mubr.f32.mxu1 %v2343_v38  ;;  %v3251_v38 = vmul.f32 0.17677669, %v10568_v24  ;;  %v3252_v24 = vmul.f32 0.17677669, %v10574_v59  ;;  %v1299_v59 = vld [vmem:[#allocation11 + $0x20] sm:$0xff] }
 0x6ed   : > { %v8455_v53 = vpop.eup %8454  ;;  %7034 = vmatmul.mubr.f32.gmra.mrb[36].mxu1 %v2344_v19 }
 0x6ee   : > { %v8457_v34 = vpop.eup %8456  ;;  %v10738_v2 = vpop.xlane.xlu1 %3276  ;;  %v2345_v39 = vmul.f32 %v8455_v53, %v10624_v55 }
 0x6ef   : > { %v2318_v60 = vpop.xlane.xlu0 %2317  ;;  %v2346_v31 = vmul.f32 %v8457_v34, %v10626_v51  ;;  %v3253_v34 = vmul.f32 0.17677669, %v10572_v13  ;;  %v10780_v13 = vsel %vm1581_vm14, -1e+09, %v3252_v24  ;;  %v3306_v24 = vsub.f32 %v10651_v3, %v10738_v2 }
 0x6f0   : > { %8466 = vrcp.f32 %v2318_v60  ;;  %3861 = vrot.lane.b32.xlu1 %v9670_v35, %s9044_s18  ;;  %5959 = vst [vmem:[%s10083_s28 + $0xb0] sm:$0xff] %v2345_v39  ;;  %7036 = vmatprep.mubr.f32.mxu1 %v2345_v39  ;;  %v10767_v60 = vsel %vm12157_vm10, -1e+09, %v3251_v38  ;;  %v12164_v38 = vld [vmem:[#allocation43_spill] sm:$0xff] }
 0x6f1   : > { %v8459_v7 = vpop.eup %8458  ;;  %5960 = vst [vmem:[%s10083_s28 + $0xb8] sm:$0xff] %v2346_v31  ;;  %7037 = vmatmul.mubr.f32.gmra.mrb[38].mxu1 %v2346_v31 }
 0x6f2   : > { %v8461_v8 = vpop.eup %8460  ;;  %v2316_v63 = vpop.xlane.xlu1 %2315  ;;  %v2347_v49 = vmul.f32 %v8459_v7, %v10631_v62  ;;  %v1300_v7 = vld [vmem:[#allocation11 + $0x28] sm:$0xff] }
 0x6f3   : > { %v3852_v47 = vpop.permute.xlu0 %3851  ;;  %v2348_v55 = vmul.f32 %v8461_v8, %v10633_v4  ;;  %8468 = vrcp.f32 %v2316_v63  ;;  %v7659_v8 = vpack.c.bf16 %v1300_v7, %v1299_v59  ;;  %v3324_v59 = vmul.f32 1.442695, %v3306_v24 }
 0x6f4   : > { %7303 = vmatprep.mubr.msk.f32.mxu0 %vm1311_vm0, %v3852_v47  ;;  %5961 = vst [vmem:[%s10083_s28 + $0xc0] sm:$0xff] %v2347_v49  ;;  %7039 = vmatprep.mubr.f32.mxu1 %v2347_v49 }
 0x6f5   : > { %v8463_v35 = vpop.eup %8462  ;;  %5962 = vst [vmem:[%s10083_s28 + $0xc8] sm:$0xff] %v2348_v55  ;;  %7040 = vmatmul.mubr.f32.gmra.mrb[40].mxu1 %v2348_v55  ;;  %7660 = vmatprep.subr.bf16.mxu1 %v7659_v8  ;;  %v1302_v55 = vld [vmem:[#allocation11 + $0x38] sm:$0xff] }
 0x6f6   : > { %v8465_v51 = vpop.eup %8464  ;;  %v2322_v48 = vpop.xlane.xlu1 %2321  ;;  %v2349_v21 = vmul.f32 %v8463_v35, %v10639_v30  ;;  %7662 = vmatpush3.bf16.msra.mxu1 %v7659_v8  ;;  %v12166_v8 = vld [vmem:[#allocation28_spill] sm:$0xff] }
 0x6f7   : > { %8470 = vrcp.f32 %v2322_v48  ;;  %v2350_v62 = vmul.f32 %v8465_v51, %v10642_v42  ;;  %v1295_v48 = vld [vmem:[#allocation11] sm:$0xff] }
 0x6f8   : > { %5963 = vst [vmem:[%s10083_s28 + $0xd0] sm:$0xff] %v2349_v21  ;;  %7042 = vmatprep.mubr.f32.mxu1 %v2349_v21  ;;  %v1296_v21 = vld [vmem:[#allocation11 + $0x8] sm:$0xff] }
 0x6f9   : > { %5964 = vst [vmem:[%s10083_s28 + $0xd8] sm:$0xff] %v2350_v62  ;;  %7043 = vmatmul.mubr.f32.gmra.mrb[42].mxu1 %v2350_v62  ;;  %v12159_v62 = vld [vmem:[#allocation33_spill] sm:$0xff] }
 0x6fa   : > { %v8467_v6 = vpop.eup %8466  ;;  %v2320_v4 = vpop.xlane.xlu1 %2319 }
 0x6fb   : > { %v2352_v19 = vmul.f32 %v8467_v6, %v10647_v1  ;;  %8472 = vrcp.f32 %v2320_v4  ;;  %v10805_v6 = vpack.c.bf16 %v1296_v21, %v1295_v48  ;;  %v12168_v48 = vld [vmem:[#allocation42_spill] sm:$0xff] }
 0x6fc   : > { %v3305_v21 = vsub.f32 %v12168_v48, %v10700_v10 }
 0x6fd   : > { %5966 = vst [vmem:[%s10083_s28 + $0xe8] sm:$0xff] %v2352_v19  ;;  %v8469_v16 = vpop.eup %8468 }
 0x6fe   : > { %v3854_v40 = vpop.permute.xlu1 %3853  ;;  %v2351_v30 = vmul.f32 %v8469_v16, %v10655_v56  ;;  %v10773_v56 = vsel %vm1582_vm15, -1e+09, %v3253_v34  ;;  %v12161_v16 = vld [vmem:[#allocation45_spill] sm:$0xff] }
 0x6ff   : > { %7304 = vmatmul.mubr.msk.f32.gmra.mrb[88].mxu0 %vm1311_vm0, %v3854_v40  ;;  %v3255_v40 = vmul.f32 0.17677669, %v12161_v16 }
 0x700   : > { %5965 = vst [vmem:[%s10083_s28 + $0xe0] sm:$0xff] %v2351_v30  ;;  %7045 = vmatprep.mubr.f32.mxu1 %v2351_v30  ;;  %v12162_v30 = vld [vmem:[#allocation30_spill] sm:$0xff] }
 0x701   : > { %v8471_v20 = vpop.eup %8470  ;;  %7046 = vmatmul.mubr.f32.gmra.mrb[44].mxu1 %v2352_v19  ;;  %v12160_v19 = vld [vmem:[#allocation31_spill] sm:$0xff] }
 0x702   : > { %v2354_v42 = vmul.f32 %v8471_v20, %v10658_v44  ;;  %v3254_v44 = vmul.f32 0.17677669, %v10578_v50 }
 0x704   : > { %5968 = vst [vmem:[%s10083_s28 + $0xf8] sm:$0xff] %v2354_v42 }
 0x705   : > { %v8473_v53 = vpop.eup %8472 }
 0x706   : > { %v2353_v1 = vmul.f32 %v8473_v53, %v10661_v22  ;;  %v10785_v22 = vsel %vm1583_vm13, -1e+09, %v3254_v44  ;;  %v3304_v53 = vsub.f32 %v12164_v38, %v10697_v5 }
 0x708   : > { %3294 = vmax.xlane.f32.xlu0 %v10767_v60  ;;  %5967 = vst [vmem:[%s10083_s28 + $0xf0] sm:$0xff] %v2353_v1  ;;  %7048 = vmatprep.mubr.f32.mxu1 %v2353_v1  ;;  %v3320_v1 = vmul.f32 1.442695, %v3304_v53  ;;  %v3322_v53 = vmul.f32 1.442695, %v3305_v21 }
 0x709   : > { %7049 = vmatmul.mubr.f32.gmra.mrb[46].mxu1 %v2354_v42  ;;  %v10816_v42 = vsel %vm1584_vm12, -1e+09, %v3255_v40 }
 0x70a   : > { %8474 = vpow2.f32 %v3320_v1 }
 0x70c   : > { %3298 = vmax.xlane.f32.xlu0 %v10773_v56 }
 0x714   : > { %3296 = vmax.xlane.f32.xlu1 %v10780_v13  ;;  %v10832_v3 = vpop.eup %8474 }
 0x718   : > { %3300 = vmax.xlane.f32.xlu1 %v10785_v22 }
 0x722   : > { %3863 = vrot.lane.b32.xlu0 %v9679_v43, %s9044_s18  ;;  %v1301_v43 = vld [vmem:[#allocation11 + $0x30] sm:$0xff] }
 0x723   : > { %v3279_v39 = vpop.xlane.xlu0 %3278  ;;  %v7663_v35 = vpack.c.bf16 %v1302_v55, %v1301_v43 }
 0x724   : > { %v3307_v34 = vsub.f32 %v10672_v11, %v3279_v39  ;;  %v12167_v39 = vld [vmem:[#allocation32_spill] sm:$0xff] }
 0x725   : > { %7664 = vmatprep.subr.bf16.mxu1 %v7663_v35 }
 0x726   : > { %7666 = vmatpush3.bf16.msra.mxu1 %v7663_v35  ;;  %v3326_v44 = vmul.f32 1.442695, %v3307_v34 }
 0x727   : > { %v3283_v31 = vpop.xlane.xlu0 %3282  ;;  %7668 = vmatprep.subr.bf16.mxu1 %v10805_v6 }
 0x728   : > { %8476 = vpow2.f32 %v3326_v44  ;;  %v3309_v7 = vsub.f32 %v10677_v32, %v3283_v31 }
 0x729   : > { %3865 = vrot.lane.b32.xlu1 %v9676_v41, %s9044_s18  ;;  %v12158_v41 = vld [vmem:[#allocation56_spill] sm:$0xff]  ;;  %8478 = vpow2.f32 %v3324_v59 }
 0x72a   : > { %v3330_v5 = vmul.f32 1.442695, %v3309_v7 }
 0x72b   : > { %v3856_v50 = vpop.permute.xlu0 %3855 }
 0x72c   : > { %7306 = vmatprep.mubr.msk.f32.mxu0 %vm1311_vm0, %v3856_v50  ;;  %v12165_v50 = vld [vmem:[#allocation29_spill] sm:$0xff]  ;;  %8480 = vpow2.f32 %v3330_v5 }
 0x72d   : > { %8267 = vrot.lane.b32.xlu1 %v10161_v58, %s9043_s1 }
 0x72e   : > { %v10795_v63 = vpop.f32.mrb[86].mxu0 }
 0x72f   : > { %v10797_v47 = vpop.xlane.xlu1 %3280  ;;  %v10799_v49 = vpop.f32.mrb[87].mxu0 }
 0x730   : > { %v3308_v1 = vsub.f32 %v10684_v12, %v10797_v47 }
 0x731   : > { %8272 = vrot.lane.b32.xlu1 %v12158_v41, %s9043_s1 }
 0x732   : > { %v10835_v35 = vpop.eup %8476  ;;  %v3328_v10 = vmul.f32 1.442695, %v3308_v1 }
 0x733   : > { %v3285_v51 = vpop.xlane.xlu1 %3284  ;;  %v10839_v31 = vpop.eup %8478 }
 0x734   : > { %v3310_v11 = vsub.f32 %v10689_v14, %v3285_v51 }
 0x735   : > { %8282 = vrot.lane.b32.xlu1 %v12159_v62, %s9043_s1 }
 0x736   : > { %v3332_v55 = vmul.f32 1.442695, %v3310_v11  ;;  %v10845_v16 = vpop.eup %8480 }
 0x737   : > { %v3858_v4 = vpop.permute.xlu1 %3857 }
 0x738   : > { %7307 = vmatmul.mubr.msk.f32.gmra.mrb[90].mxu0 %vm1311_vm0, %v3858_v4  ;;  %8482 = vpow2.f32 %v3332_v55 }
 0x739   : > { %8292 = vrot.lane.b32.xlu1 %v12160_v19, %s9043_s1 }
 0x73d   : > { %8302 = vrot.lane.b32.xlu1 %v12162_v30, %s9043_s1 }
 0x741   : > { %3302 = vmax.xlane.f32.xlu0 %v10816_v42 }
 0x757   : > { %8277 = vrot.lane.b32.xlu0 %v12165_v50, %s9043_s1 }
 0x75b   : > { %8287 = vrot.lane.b32.xlu0 %v12166_v8, %s9043_s1 }
 0x75c   : > { %v3287_v43 = vpop.xlane.xlu0 %3286 }
 0x75d   : > { %v3311_v44 = vsub.f32 %v10704_v23, %v3287_v43 }
 0x75f   : > { %8297 = vrot.lane.b32.xlu0 %v12167_v39, %s9043_s1  ;;  %v3334_v59 = vmul.f32 1.442695, %v3311_v44  ;;  %v1298_v44 = vld [vmem:[#allocation11 + $0x18] sm:$0xff] }
 0x760   : > { %v3291_v2 = vpop.xlane.xlu0 %3290 }
 0x761   : > { %3352 = vadd.xlane.f32.xlu1 %v10832_v3  ;;  %v3313_v7 = vsub.f32 %v10709_v26, %v3291_v2 }
 0x763   : > { %v3338_v47 = vmul.f32 1.442695, %v3313_v7 }
 0x764   : > { %v3860_v32 = vpop.permute.xlu0 %3859 }
 0x765   : > { %3358 = vadd.xlane.f32.xlu1 %v10835_v35  ;;  %7309 = vmatprep.mubr.msk.f32.mxu0 %vm1311_vm0, %v3860_v32 }
 0x768   : > { %v3289_v14 = vpop.xlane.xlu1 %3288 }
 0x769   : > { %v3312_v51 = vsub.f32 %v10716_v33, %v3289_v14  ;;  %3356 = vadd.xlane.f32.xlu1 %v10839_v31  ;;  %v10851_v33 = vpop.eup %8482 }
 0x76b   : > { %v3336_v4 = vmul.f32 1.442695, %v3312_v51 }
 0x76c   : > { %v3293_v40 = vpop.xlane.xlu1 %3292 }
 0x76d   : > { %8484 = vpow2.f32 %v3336_v4  ;;  %v3314_v38 = vsub.f32 %v10722_v36, %v3293_v40  ;;  %3362 = vadd.xlane.f32.xlu1 %v10845_v16 }
 0x76f   : > { %v3340_v34 = vmul.f32 1.442695, %v3314_v38 }
 0x770   : > { %v3862_v24 = vpop.permute.xlu1 %3861 }
 0x771   : > { %8486 = vpow2.f32 %v3340_v34  ;;  %3364 = vadd.xlane.f32.xlu1 %v10851_v33  ;;  %7310 = vmatmul.mubr.msk.f32.gmra.mrb[92].mxu0 %vm1311_vm0, %v3862_v24 }
 0x772   : > { %8488 = vpow2.f32 %v3322_v53 }
 0x773   : > { %8490 = vpow2.f32 %v3328_v10  ;;  %v1297_v10 = vld [vmem:[#allocation11 + $0x10] sm:$0xff] }
 0x774   : > { %8492 = vpow2.f32 %v3334_v59 }
 0x775   : > { %8494 = vpow2.f32 %v3338_v47 }
 0x777   : > { %v10856_v36 = vpop.eup %8484 }
 0x778   : > { %3368 = vadd.xlane.f32.xlu1 %v10856_v36 }
 0x77b   : > { %v10860_v12 = vpop.eup %8486 }
 0x77c   : > { %3372 = vadd.xlane.f32.xlu1 %v10860_v12  ;;  %v10863_v5 = vpop.eup %8488 }
 0x77d   : > { %v10866_v23 = vpop.eup %8490 }
 0x77e   : > { %3354 = vadd.xlane.f32.xlu0 %v10863_v5  ;;  %v10869_v43 = vpop.eup %8492 }
 0x77f   : > { %v10872_v26 = vpop.eup %8494 }
 0x782   : > { %3360 = vadd.xlane.f32.xlu0 %v10866_v23 }
 0x786   : > { %3366 = vadd.xlane.f32.xlu0 %v10869_v43 }
 0x78a   : > { %3370 = vadd.xlane.f32.xlu0 %v10872_v26 }
 0x795   : > { %v3295_v11 = vpop.xlane.xlu0 %3294 }
 0x796   : > { %v3315_v2 = vsub.f32 %v10767_v60, %v3295_v11 }
 0x798   : > { %v3342_v55 = vmul.f32 1.442695, %v3315_v2 }
 0x799   : > { %v3299_v32 = vpop.xlane.xlu0 %3298 }
 0x79a   : > { %8496 = vpow2.f32 %v3342_v55  ;;  %v3317_v14 = vsub.f32 %v10773_v56, %v3299_v32 }
 0x79c   : > { %v3346_v51 = vmul.f32 1.442695, %v3317_v14 }
 0x79d   : > { %v3864_v48 = vpop.permute.xlu0 %3863 }
 0x79e   : > { %8498 = vpow2.f32 %v3346_v51  ;;  %7312 = vmatprep.mubr.msk.f32.mxu0 %vm1311_vm0, %v3864_v48 }
 0x7a1   : > { %v3297_v21 = vpop.xlane.xlu1 %3296 }
 0x7a2   : > { %v3316_v4 = vsub.f32 %v10780_v13, %v3297_v21  ;;  %v4111_v13 = vmul.f32 0.17677669, %v10586_v57  ;;  %v7671_v57 = vpack.c.bf16 %v1298_v44, %v1297_v10 }
 0x7a4   : > { %v10879_v40 = vpop.eup %8496  ;;  %v3344_v38 = vmul.f32 1.442695, %v3316_v4  ;;  %v10896_v11 = vsel %vm1572_vm4, -1e+09, %v4111_v13  ;;  %vm12192_vm4 = vmmov %vm12143_vm1 }
 0x7a5   : > { %v3301_v53 = vpop.xlane.xlu1 %3300  ;;  %3374 = vadd.xlane.f32.xlu0 %v10879_v40 }
 0x7a6   : > { %8500 = vpow2.f32 %v3344_v38  ;;  %v3318_v60 = vsub.f32 %v10785_v22, %v3301_v53  ;;  %v4113_v22 = vmul.f32 0.17677669, %v10592_v18  ;;  %v4115_v18 = vmul.f32 0.17677669, %v10795_v63 }
 0x7a8   : > { %v10883_v1 = vpop.eup %8498  ;;  %v3348_v56 = vmul.f32 1.442695, %v3318_v60  ;;  %v10906_v9 = vsel %vm1574_vm7, -1e+09, %v4113_v22  ;;  %v10911_v48 = vsel %vm1576_vm9, -1e+09, %v4115_v18 }
 0x7a9   : > { %v3866_v34 = vpop.permute.xlu1 %3865  ;;  %3378 = vadd.xlane.f32.xlu0 %v10883_v1 }
 0x7aa   : > { %8502 = vpow2.f32 %v3348_v56  ;;  %7313 = vmatmul.mubr.msk.f32.gmra.mrb[94].mxu0 %vm1311_vm0, %v3866_v34 }
 0x7ad   : > { %v8268_v7 = vpop.permute.xlu1 %8267 }
 0x7ae   : > { %v8270_v55 = vunpack.i.h.bf16 %v8268_v7  ;;  %v8269_v32 = vunpack.i.l.bf16 %v8268_v7 }
 0x7b0   : > { %v10887_v24 = vpop.eup %8500  ;;  %v7723_v14 = vpack.c.bf16 %v8270_v55, %v8269_v32  ;;  %v12169_v32 = vld [vmem:[#allocation46_spill] sm:$0xff] }
 0x7b1   : > { %3376 = vadd.xlane.f32.xlu1 %v10887_v24  ;;  %v4108_v18 = vmul.f32 0.17677669, %v12169_v32 }
 0x7b4   : > { %v10891_v59 = vpop.eup %8502  ;;  %v7029_v47 = vpop.f32.mrb[32].mxu1 }
 0x7b5   : > { %v2502_v2 = vpop.f32.mrb[33].mxu1  ;;  %4146 = vmax.xlane.f32.xlu1 %v10896_v11  ;;  %3380 = vadd.xlane.f32.xlu0 %v10891_v59 }
 0x7b6   : > { %7059 = vmatprep.mubr.msk.f32.mxu1 %vm1311_vm0, %v2502_v2 }
 0x7b7   : > { %7060 = vmatmul.mubr.msk.f32.vlgmr.msra.gmra.mrb[48].mxu1 %vm1311_vm0, %v7029_v47 }
 0x7b8   : > { %7670 = vmatpush3.bf16.msra.mxu1 %v10805_v6 }
 0x7b9   : > { %4150 = vmax.xlane.f32.xlu1 %v10906_v9  ;;  %7672 = vmatprep.subr.bf16.mxu1 %v7671_v57 }
 0x7bc   : > { %7674 = vmatpush3.bf16.msra.mxu1 %v7671_v57  ;;  %v7032_v51 = vpop.f32.mrb[34].mxu1  ;;  %v8273_v57 = vpop.permute.xlu1 %8272 }
 0x7bd   : > { %7724 = vmatprep.subr.bf16.mxu1 %v7723_v14  ;;  %v2512_v21 = vpop.f32.mrb[35].mxu1  ;;  %4154 = vmax.xlane.f32.xlu1 %v10911_v48  ;;  %v8275_v45 = vunpack.i.h.bf16 %v8273_v57 }
 0x7be   : > { %7062 = vmatprep.mubr.msk.f32.mxu1 %vm1311_vm0, %v2512_v21 }
 0x7bf   : > { %7063 = vmatmul.mubr.msk.f32.gmra.mrb[50].mxu1 %vm1311_vm0, %v7032_v51 }
 0x7c0   : > { %v7035_v25 = vpop.f32.mrb[36].mxu1  ;;  %v8283_v21 = vpop.permute.xlu1 %8282 }
 0x7c1   : > { %v2522_v63 = vpop.f32.mrb[37].mxu1  ;;  %v8285_v32 = vunpack.i.h.bf16 %v8283_v21 }
 0x7c2   : > { %7065 = vmatprep.mubr.msk.f32.mxu1 %vm1311_vm0, %v2522_v63 }
 0x7c3   : > { %7066 = vmatmul.mubr.msk.f32.gmra.mrb[52].mxu1 %vm1311_vm0, %v7035_v25  ;;  %v8274_v25 = vunpack.i.l.bf16 %v8273_v57 }
 0x7c4   : > { %v7038_v6 = vpop.f32.mrb[38].mxu1 }
 0x7c5   : > { %v2532_v4 = vpop.f32.mrb[39].mxu1 }
 0x7c6   : > { %7068 = vmatprep.mubr.msk.f32.mxu1 %vm1311_vm0, %v2532_v4  ;;  %v12171_v4 = vld [vmem:[#allocation44_spill] sm:$0xff] }
 0x7c7   : > { %7069 = vmatmul.mubr.msk.f32.gmra.mrb[54].mxu1 %vm1311_vm0, %v7038_v6  ;;  %v12170_v6 = vld [vmem:[#allocation36_spill] sm:$0xff] }
 0x7c8   : > { %v7041_v52 = vpop.f32.mrb[40].mxu1 }
 0x7c9   : > { %v2542_v38 = vpop.f32.mrb[41].mxu1 }
 0x7ca   : > { %7071 = vmatprep.mubr.msk.f32.mxu1 %vm1311_vm0, %v2542_v38  ;;  %v12179_v38 = vld [vmem:[#allocation39_spill] sm:$0xff] }
 0x7cb   : > { %7072 = vmatmul.mubr.msk.f32.gmra.mrb[56].mxu1 %vm1311_vm0, %v7041_v52  ;;  %v4109_v52 = vmul.f32 0.17677669, %v12171_v4 }
 0x7cc   : > { %v7044_v53 = vpop.f32.mrb[42].mxu1 }
 0x7cd   : > { %v2552_v60 = vpop.f32.mrb[43].mxu1 }
 0x7ce   : > { %7074 = vmatprep.mubr.msk.f32.mxu1 %vm1311_vm0, %v2552_v60  ;;  %v3303_v56 = vpop.xlane.xlu0 %3302 }
 0x7cf   : > { %v3319_v34 = vsub.f32 %v10816_v42, %v3303_v56  ;;  %7075 = vmatmul.mubr.msk.f32.gmra.mrb[58].mxu1 %vm1311_vm0, %v7044_v53  ;;  %v10945_v53 = vsel %vm1569_vm3, -1e+09, %v4108_v18  ;;  %v8284_v18 = vunpack.i.l.bf16 %v8283_v21  ;;  %vm12191_vm3 = vmmov %vm12157_vm10 }
 0x7d1   : > { %v3350_v13 = vmul.f32 1.442695, %v3319_v34  ;;  %v12173_v34 = vld [vmem:[#allocation37_spill] sm:$0xff] }
 0x7d2   : > { %v7305_v10 = vpop.f32.mrb[88].mxu0  ;;  %v8278_v63 = vpop.permute.xlu0 %8277 }
 0x7d3   : > { %8504 = vpow2.f32 %v3350_v13  ;;  %v4117_v44 = vmul.f32 0.17677669, %v7305_v10  ;;  %v10925_v22 = vpop.f32.mrb[89].mxu0  ;;  %v8280_v60 = vunpack.i.h.bf16 %v8278_v63  ;;  %v8279_v56 = vunpack.i.l.bf16 %v8278_v63  ;;  %v8293_v10 = vpop.permute.xlu1 %8292 }
 0x7d4   : > { %v7047_v7 = vpop.f32.mrb[44].mxu1  ;;  %v7727_v13 = vpack.c.bf16 %v8275_v45, %v8274_v25  ;;  %v4112_v63 = vmul.f32 0.17677669, %v10594_v29  ;;  %v4114_v29 = vmul.f32 0.17677669, %v10799_v49 }
 0x7d5   : > { %v10929_v47 = vsel %vm1578_vm11, -1e+09, %v4117_v44  ;;  %v2562_v2 = vpop.f32.mrb[45].mxu1  ;;  %v12174_v44 = vld [vmem:[#allocation34_spill] sm:$0xff]  ;;  %v7731_v45 = vpack.c.bf16 %v8280_v60, %v8279_v56  ;;  %v7735_v60 = vpack.c.bf16 %v8285_v32, %v8284_v18  ;;  %v12182_v32 = vld [vmem:[#allocation60_spill] sm:$0xff] }
 0x7d6   : > { %4158 = vmax.xlane.f32.xlu1 %v10929_v47  ;;  %7077 = vmatprep.mubr.msk.f32.mxu1 %vm1311_vm0, %v2562_v2  ;;  %v8288_v25 = vpop.permute.xlu0 %8287  ;;  %v12180_v56 = vld [vmem:[#allocation58_spill] sm:$0xff]  ;;  %v10975_v28 = vsel %vm1573_vm6, -1e+09, %v4112_v63  ;;  %v4116_v49 = vmul.f32 0.17677669, %v10925_v22 }
 0x7d7   : > { %7078 = vmatmul.mubr.msk.f32.gmra.mrb[60].mxu1 %vm1311_vm0, %v7047_v7  ;;  %v12175_v7 = vld [vmem:[#allocation47_spill] sm:$0xff]  ;;  %v8303_v4 = vpop.permute.xlu1 %8302  ;;  %v8290_v21 = vunpack.i.h.bf16 %v8288_v25  ;;  %v10985_v0 = vsel %vm1575_vm8, -1e+09, %v4114_v29 }
 0x7d8   : > { %v4110_v2 = vmul.f32 0.17677669, %v12175_v7  ;;  %v12181_v7 = vld [vmem:[#allocation57_spill] sm:$0xff]  ;;  %v8305_v63 = vunpack.i.h.bf16 %v8303_v4 }
 0x7da   : > { %v8298_v57 = vpop.permute.xlu0 %8297 }
 0x7dc   : > { %v7050_v42 = vpop.f32.mrb[46].mxu1 }
 0x7dd   : > { %v10934_v55 = vpop.eup %8504  ;;  %v2572_v51 = vpop.f32.mrb[47].mxu1 }
 0x7de   : > { %7080 = vmatprep.mubr.msk.f32.mxu1 %vm1311_vm0, %v2572_v51  ;;  %3382 = vadd.xlane.f32.xlu0 %v10934_v55  ;;  %v12177_v51 = vld [vmem:[#allocation35_spill] sm:$0xff] }
 0x7df   : > { %7081 = vmatmul.mubr.msk.f32.gmra.mrb[62].mxu1 %vm1311_vm0, %v7050_v42  ;;  %v10955_v42 = vsel %vm1570_vm2, -1e+09, %v4109_v52  ;;  %v8289_v52 = vunpack.i.l.bf16 %v8288_v25  ;;  %vm12185_vm2 = vcmp.gt.f32.partialorder %v12140_v61, 0.5 }
 0x7e0   : > { %7091 = vmatprep.mubr.msk.f32.mxu1 %vm1311_vm0, %v12170_v6  ;;  %v10965_v6 = vsel %vm1571_vm5, -1e+09, %v4110_v2  ;;  %v10994_v15 = vsel %vm12185_vm2, -1e+09, %v4116_v49 }
 0x7e1   : > { %v7739_v2 = vpack.c.bf16 %v8290_v21, %v8289_v52  ;;  %v8304_v21 = vunpack.i.l.bf16 %v8303_v4  ;;  %v12186_v52 = vld [vmem:[#allocation61_spill] sm:$0xff] }
 0x7e2   : > { %4140 = vmax.xlane.f32.xlu0 %v10945_v53 }
 0x7e3   : > { %7092 = vmatmul.mubr.msk.f32.vlgmr.msra.gmra.mrb[48].mxu1 %vm1311_vm0, %v12173_v34  ;;  %v7751_v4 = vpack.c.bf16 %v8305_v63, %v8304_v21 }
 0x7e4   : > { %7726 = vmatpush3.bf16.msra.mxu1 %v7723_v14  ;;  %7094 = vmatprep.mubr.msk.f32.mxu1 %vm1311_vm0, %v12174_v44  ;;  %v12178_v14 = vld [vmem:[#allocation38_spill] sm:$0xff]  ;;  %v8294_v44 = vunpack.i.l.bf16 %v8293_v10 }
 0x7e5   : > { %7728 = vmatprep.subr.bf16.mxu1 %v7727_v13 }
 0x7e6   : > { %4142 = vmax.xlane.f32.xlu0 %v10955_v42 }
 0x7e7   : > { %7095 = vmatmul.mubr.msk.f32.gmra.mrb[50].mxu1 %vm1311_vm0, %v12177_v51  ;;  %v8299_v51 = vunpack.i.l.bf16 %v8298_v57 }
 0x7e8   : > { %7730 = vmatpush3.bf16.msra.mxu1 %v7727_v13  ;;  %7097 = vmatprep.mubr.msk.f32.mxu1 %vm1311_vm0, %v12178_v14  ;;  %v8295_v13 = vunpack.i.h.bf16 %v8293_v10  ;;  %v8300_v10 = vunpack.i.h.bf16 %v8298_v57  ;;  %v12184_v14 = vld [vmem:[#allocation62_spill] sm:$0xff]  ;;  %v12190_v57 = vld [vmem:[#allocation65_spill] sm:$0xff] }
 0x7e9   : > { %7732 = vmatprep.subr.bf16.mxu1 %v7731_v45 }
 0x7ea   : > { %4144 = vmax.xlane.f32.xlu0 %v10965_v6  ;;  %v7743_v25 = vpack.c.bf16 %v8295_v13, %v8294_v44  ;;  %v12189_v13 = vld [vmem:[#allocation66_spill] sm:$0xff] }
 0x7eb   : > { %7098 = vmatmul.mubr.msk.f32.gmra.mrb[52].mxu1 %vm1311_vm0, %v12179_v38  ;;  %v7747_v38 = vpack.c.bf16 %v8300_v10, %v8299_v51 }
 0x7ec   : > { %7734 = vmatpush3.bf16.msra.mxu1 %v7731_v45  ;;  %7100 = vmatprep.mubr.msk.f32.mxu1 %vm1311_vm0, %v12180_v56  ;;  %v12183_v45 = vld [vmem:[#allocation59_spill] sm:$0xff] }
 0x7ed   : > { %7736 = vmatprep.subr.bf16.mxu1 %v7735_v60 }
 0x7ee   : > { %v3353_v34 = vpop.xlane.xlu1 %3352  ;;  %4148 = vmax.xlane.f32.xlu0 %v10975_v28 }
 0x7ef   : > { %8506 = vrcp.f32 %v3353_v34  ;;  %7101 = vmatmul.mubr.msk.f32.gmra.mrb[54].mxu1 %vm1311_vm0, %v12181_v7  ;;  %v12188_v34 = vld [vmem:[#allocation63_spill] sm:$0xff] }
 0x7f0   : > { %7738 = vmatpush3.bf16.msra.mxu1 %v7735_v60  ;;  %7103 = vmatprep.mubr.msk.f32.mxu1 %vm1311_vm0, %v12182_v32  ;;  %v12187_v60 = vld [vmem:[#allocation64_spill] sm:$0xff] }
 0x7f1   : > { %7740 = vmatprep.subr.bf16.mxu1 %v7739_v2 }
 0x7f2   : > { %v3359_v18 = vpop.xlane.xlu1 %3358  ;;  %4152 = vmax.xlane.f32.xlu0 %v10985_v0 }
 0x7f3   : > { %8508 = vrcp.f32 %v3359_v18  ;;  %7104 = vmatmul.mubr.msk.f32.gmra.mrb[56].mxu1 %vm1311_vm0, %v12183_v45 }
 0x7f4   : > { %7742 = vmatpush3.bf16.msra.mxu1 %v7739_v2  ;;  %7106 = vmatprep.mubr.msk.f32.mxu1 %vm1311_vm0, %v12184_v14 }
 0x7f5   : > { %7744 = vmatprep.subr.bf16.mxu1 %v7743_v25 }
 0x7f6   : > { %v3357_v22 = vpop.xlane.xlu1 %3356  ;;  %4156 = vmax.xlane.f32.xlu0 %v10994_v15 }
 0x7f7   : > { %8510 = vrcp.f32 %v3357_v22  ;;  %7107 = vmatmul.mubr.msk.f32.gmra.mrb[58].mxu1 %vm1311_vm0, %v12186_v52 }
 0x7f8   : > { %7746 = vmatpush3.bf16.msra.mxu1 %v7743_v25  ;;  %7109 = vmatprep.mubr.msk.f32.mxu1 %vm1311_vm0, %v12187_v60 }
 0x7f9   : > { %v8507_v56 = vpop.eup %8506  ;;  %7748 = vmatprep.subr.bf16.mxu1 %v7747_v38 }
 0x7fa   : > { %v3363_v61 = vpop.xlane.xlu1 %3362  ;;  %v3400_v29 = vmul.f32 %v8507_v56, %v10832_v3 }
 0x7fb   : > { %8512 = vrcp.f32 %v3363_v61  ;;  %7110 = vmatmul.mubr.msk.f32.gmra.mrb[60].mxu1 %vm1311_vm0, %v12188_v34 }
 0x7fc   : > { %7750 = vmatpush3.bf16.msra.mxu1 %v7747_v38  ;;  %7112 = vmatprep.mubr.msk.f32.mxu1 %vm1311_vm0, %v12189_v13  ;;  %6033 = vst [vmem:[%s10083_s28 + $0x100] sm:$0xff] %v3400_v29 }
 0x7fd   : > { %v8509_v44 = vpop.eup %8508  ;;  %7752 = vmatprep.subr.bf16.mxu1 %v7751_v4 }
 0x7fe   : > { %v3365_v7 = vpop.xlane.xlu1 %3364  ;;  %v3403_v2 = vmul.f32 %v8509_v44, %v10835_v35 }
 0x7ff   : > { %8514 = vrcp.f32 %v3365_v7  ;;  %7113 = vmatmul.mubr.msk.f32.gmra.mrb[62].mxu1 %vm1311_vm0, %v12190_v57 }
 0x800   : > { %7754 = vmatpush3.bf16.msra.mxu1 %v7751_v4  ;;  %7203 = vmatprep.mubr.f32.mxu1 %v3400_v29  ;;  %6036 = vst [vmem:[%s10083_s28 + $0x118] sm:$0xff] %v3403_v2 }
 0x801   : > { %v8511_v3 = vpop.eup %8510 }
 0x802   : > { %v3402_v32 = vmul.f32 %v8511_v3, %v10839_v31 }
 0x804   : > { %6035 = vst [vmem:[%s10083_s28 + $0x110] sm:$0xff] %v3402_v32 }
 0x805   : > { %v8513_v49 = vpop.eup %8512  ;;  %v3369_v18 = vpop.xlane.xlu1 %3368 }
 0x806   : > { %8516 = vrcp.f32 %v3369_v18  ;;  %v3405_v10 = vmul.f32 %v8513_v49, %v10845_v16 }
 0x808   : > { %6038 = vst [vmem:[%s10083_s28 + $0x128] sm:$0xff] %v3405_v10 }
 0x809   : > { %v8515_v51 = vpop.eup %8514  ;;  %v3373_v35 = vpop.xlane.xlu1 %3372 }
 0x80a   : > { %8518 = vrcp.f32 %v3373_v35  ;;  %v3406_v45 = vmul.f32 %v8515_v51, %v10851_v33 }
 0x80b   : > { %v7308_v25 = vpop.f32.mrb[90].mxu0  ;;  %v3355_v14 = vpop.xlane.xlu0 %3354 }
 0x80c   : > { %v4119_v22 = vmul.f32 0.17677669, %v7308_v25  ;;  %8520 = vrcp.f32 %v3355_v14  ;;  %v4079_v63 = vpop.f32.mrb[91].mxu0  ;;  %6039 = vst [vmem:[%s10083_s28 + $0x130] sm:$0xff] %v3406_v45  ;;  %v1304_v14 = vld [vmem:[#allocation11 + $0x48] sm:$0xff] }
 0x80d   : > { %v4118_v31 = vmul.f32 0.17677669, %v4079_v63  ;;  %v7755_v46 = vpack.c.bf16 %v1304_v14, %v1303_v37  ;;  %v1306_v63 = vld [vmem:[#allocation11 + $0x58] sm:$0xff] }
 0x80e   : > { %v11019_v21 = vsel %vm12191_vm3, -1e+09, %v4119_v22  ;;  %v1305_v22 = vld [vmem:[#allocation11 + $0x50] sm:$0xff] }
 0x80f   : > { %4162 = vmax.xlane.f32.xlu1 %v11019_v21  ;;  %v3361_v16 = vpop.xlane.xlu0 %3360  ;;  %v11024_v33 = vsel %vm12192_vm4, -1e+09, %v4118_v31  ;;  %v7759_v31 = vpack.c.bf16 %v1306_v63, %v1305_v22  ;;  %7756 = vmatprep.subr.bf16.mxu1 %v7755_v46 }
 0x810   : > { %v8517_v52 = vpop.eup %8516  ;;  %8522 = vrcp.f32 %v3361_v16  ;;  %4160 = vmax.xlane.f32.xlu0 %v11024_v33 }
 0x811   : > { %v3408_v38 = vmul.f32 %v8517_v52, %v10856_v36 }
 0x813   : > { %v3367_v60 = vpop.xlane.xlu0 %3366  ;;  %6041 = vst [vmem:[%s10083_s28 + $0x140] sm:$0xff] %v3408_v38 }
 0x814   : > { %v8519_v54 = vpop.eup %8518  ;;  %8524 = vrcp.f32 %v3367_v60 }
 0x815   : > { %v3410_v56 = vmul.f32 %v8519_v54, %v10860_v12 }
 0x816   : > { %v8521_v61 = vpop.eup %8520 }
 0x817   : > { %v3371_v29 = vpop.xlane.xlu0 %3370  ;;  %v3401_v27 = vmul.f32 %v8521_v61, %v10863_v5  ;;  %6043 = vst [vmem:[%s10083_s28 + $0x150] sm:$0xff] %v3410_v56 }
 0x818   : > { %8526 = vrcp.f32 %v3371_v29 }
 0x819   : > { %6034 = vst [vmem:[%s10083_s28 + $0x108] sm:$0xff] %v3401_v27  ;;  %7204 = vmatmul.mubr.f32.vlgmr.msra.gmra.mrb[64].mxu1 %v3401_v27 }
 0x81a   : > { %v8523_v34 = vpop.eup %8522  ;;  %7206 = vmatprep.mubr.f32.mxu1 %v3402_v32  ;;  %7758 = vmatpush3.bf16.msra.mxu1 %v7755_v46 }
 0x81b   : > { %v3404_v36 = vmul.f32 %v8523_v34, %v10866_v23  ;;  %7760 = vmatprep.subr.bf16.mxu1 %v7759_v31 }
 0x81d   : > { %7207 = vmatmul.mubr.f32.gmra.mrb[66].mxu1 %v3403_v2  ;;  %6037 = vst [vmem:[%s10083_s28 + $0x120] sm:$0xff] %v3404_v36 }
 0x81e   : > { %v8525_v4 = vpop.eup %8524  ;;  %7209 = vmatprep.mubr.f32.mxu1 %v3404_v36  ;;  %7762 = vmatpush3.bf16.msra.mxu1 %v7759_v31 }
 0x81f   : > { %v3407_v12 = vmul.f32 %v8525_v4, %v10869_v43 }
 0x821   : > { %7210 = vmatmul.mubr.f32.gmra.mrb[68].mxu1 %v3405_v10  ;;  %6040 = vst [vmem:[%s10083_s28 + $0x138] sm:$0xff] %v3407_v12 }
 0x822   : > { %v8527_v13 = vpop.eup %8526  ;;  %7212 = vmatprep.mubr.f32.mxu1 %v3406_v45 }
 0x823   : > { %v3409_v5 = vmul.f32 %v8527_v13, %v10872_v26 }
 0x825   : > { %7213 = vmatmul.mubr.f32.gmra.mrb[70].mxu1 %v3407_v12  ;;  %6042 = vst [vmem:[%s10083_s28 + $0x148] sm:$0xff] %v3409_v5 }
 0x826   : > { %7215 = vmatprep.mubr.f32.mxu1 %v3408_v38 }
 0x829   : > { %7216 = vmatmul.mubr.f32.gmra.mrb[72].mxu1 %v3409_v5 }
 0x82a   : > { %7218 = vmatprep.mubr.f32.mxu1 %v3410_v56 }
 0x832   : > { %v3375_v23 = vpop.xlane.xlu0 %3374 }
 0x833   : > { %8528 = vrcp.f32 %v3375_v23 }
 0x836   : > { %v3379_v44 = vpop.xlane.xlu0 %3378 }
 0x837   : > { %8530 = vrcp.f32 %v3379_v44 }
 0x83d   : > { %v8529_v7 = vpop.eup %8528 }
 0x83e   : > { %v3377_v2 = vpop.xlane.xlu1 %3376  ;;  %v3411_v43 = vmul.f32 %v8529_v7, %v10879_v40 }
 0x83f   : > { %8532 = vrcp.f32 %v3377_v2 }
 0x840   : > { %6044 = vst [vmem:[%s10083_s28 + $0x158] sm:$0xff] %v3411_v43  ;;  %7219 = vmatmul.mubr.f32.gmra.mrb[74].mxu1 %v3411_v43 }
 0x841   : > { %v8531_v57 = vpop.eup %8530 }
 0x842   : > { %v3381_v26 = vpop.xlane.xlu0 %3380  ;;  %v3413_v3 = vmul.f32 %v8531_v57, %v10883_v1  ;;  %v4147_v34 = vpop.xlane.xlu1 %4146 }
 0x843   : > { %8534 = vrcp.f32 %v3381_v26  ;;  %v4175_v4 = vsub.f32 %v10896_v11, %v4147_v34 }
 0x844   : > { %v7311_v32 = vpop.f32.mrb[92].mxu0  ;;  %6046 = vst [vmem:[%s10083_s28 + $0x168] sm:$0xff] %v3413_v3 }
 0x845   : > { %v4121_v49 = vmul.f32 0.17677669, %v7311_v32  ;;  %v4089_v18 = vpop.f32.mrb[93].mxu0 }
 0x846   : > { %v4120_v10 = vmul.f32 0.17677669, %v4089_v18 }
 0x847   : > { %v11045_v51 = vsel %vm1582_vm15, -1e+09, %v4121_v49 }
 0x848   : > { %4166 = vmax.xlane.f32.xlu1 %v11045_v51  ;;  %v11050_v40 = vsel %vm1581_vm14, -1e+09, %v4120_v10 }
 0x849   : > { %v8533_v35 = vpop.eup %8532  ;;  %4164 = vmax.xlane.f32.xlu0 %v11050_v40 }
 0x84a   : > { %v3412_v1 = vmul.f32 %v8533_v35, %v10887_v24 }
 0x84c   : > { %6045 = vst [vmem:[%s10083_s28 + $0x160] sm:$0xff] %v3412_v1  ;;  %7221 = vmatprep.mubr.f32.mxu1 %v3412_v1 }
 0x84d   : > { %v8535_v45 = vpop.eup %8534  ;;  %7222 = vmatmul.mubr.f32.gmra.mrb[76].mxu1 %v3413_v3 }
 0x84e   : > { %v3414_v25 = vmul.f32 %v8535_v45, %v10891_v59 }
 0x850   : > { %6047 = vst [vmem:[%s10083_s28 + $0x170] sm:$0xff] %v3414_v25  ;;  %7224 = vmatprep.mubr.f32.mxu1 %v3414_v25 }
 0x86b   : > { %v3383_v24 = vpop.xlane.xlu0 %3382 }
 0x86c   : > { %8536 = vrcp.f32 %v3383_v24 }
 0x86f   : > { %v4141_v20 = vpop.xlane.xlu0 %4140 }
 0x870   : > { %v4172_v17 = vsub.f32 %v10945_v53, %v4141_v20 }
 0x872   : > { %v4188_v36 = vmul.f32 1.442695, %v4172_v17 }
 0x874   : > { %8538 = vpow2.f32 %v4188_v36 }
 0x876   : > { %v8537_v16 = vpop.eup %8536 }
 0x877   : > { %v3415_v52 = vmul.f32 %v8537_v16, %v10934_v55  ;;  %v4143_v55 = vpop.xlane.xlu0 %4142 }
 0x878   : > { %v4173_v29 = vsub.f32 %v10955_v42, %v4143_v55 }
 0x879   : > { %6048 = vst [vmem:[%s10083_s28 + $0x178] sm:$0xff] %v3415_v52  ;;  %7225 = vmatmul.mubr.f32.gmra.mrb[78].mxu1 %v3415_v52 }
 0x87b   : > { %v4145_v27 = vpop.xlane.xlu0 %4144 }
 0x87d   : > { %v7314_v59 = vpop.f32.mrb[94].mxu0 }
 0x87e   : > { %v4123_v38 = vmul.f32 0.17677669, %v7314_v59  ;;  %v4099_v60 = vpop.f32.mrb[95].mxu0 }
 0x87f   : > { %v4122_v54 = vmul.f32 0.17677669, %v4099_v60  ;;  %v4149_v11 = vpop.xlane.xlu0 %4148 }
 0x880   : > { %v11061_v56 = vsel %vm1584_vm12, -1e+09, %v4123_v38  ;;  %v4176_v5 = vsub.f32 %v10975_v28, %v4149_v11 }
 0x881   : > { %4170 = vmax.xlane.f32.xlu1 %v11061_v56  ;;  %v11066_v61 = vsel %vm1583_vm13, -1e+09, %v4122_v54 }
 0x882   : > { %4168 = vmax.xlane.f32.xlu0 %v11066_v61  ;;  %v4196_v44 = vmul.f32 1.442695, %v4176_v5 }
 0x883   : > { %v4153_v18 = vpop.xlane.xlu0 %4152 }
 0x887   : > { %v4157_v45 = vpop.xlane.xlu0 %4156 }
 0x892   : > { %8312 = vrot.lane.b32.xlu1 %v12158_v41, %s9044_s18  ;;  %v4174_v41 = vsub.f32 %v10965_v6, %v4145_v27  ;;  %v4151_v6 = vpop.xlane.xlu1 %4150 }
 0x893   : > { %v4177_v23 = vsub.f32 %v10906_v9, %v4151_v6 }
 0x894   : > { %v4192_v12 = vmul.f32 1.442695, %v4174_v41 }
 0x895   : > { %v4198_v7 = vmul.f32 1.442695, %v4177_v23 }
 0x896   : > { %8322 = vrot.lane.b32.xlu1 %v12159_v62, %s9044_s18  ;;  %v4190_v62 = vmul.f32 1.442695, %v4173_v29  ;;  %v4155_v35 = vpop.xlane.xlu1 %4154 }
 0x897   : > { %v4179_v20 = vsub.f32 %v10911_v48, %v4155_v35 }
 0x898   : > { %8307 = vrot.lane.b32.xlu0 %v10161_v58, %s9044_s18  ;;  %v4194_v58 = vmul.f32 1.442695, %v4175_v4  ;;  %8540 = vpow2.f32 %v4190_v62 }
 0x899   : > { %8542 = vpow2.f32 %v4192_v12  ;;  %v4202_v4 = vmul.f32 1.442695, %v4179_v20 }
 0x89a   : > { %8544 = vpow2.f32 %v4194_v58  ;;  %v4159_v1 = vpop.xlane.xlu1 %4158 }
 0x89b   : > { %8546 = vpow2.f32 %v4196_v44  ;;  %v4181_v34 = vsub.f32 %v10929_v47, %v4159_v1 }
 0x89c   : > { %8317 = vrot.lane.b32.xlu0 %v12165_v50, %s9044_s18  ;;  %v11081_v50 = vpop.eup %8538  ;;  %8548 = vpow2.f32 %v4198_v7 }
 0x89d   : > { %v4161_v37 = vpop.xlane.xlu0 %4160  ;;  %v4206_v58 = vmul.f32 1.442695, %v4181_v34 }
 0x89e   : > { %v4163_v25 = vpop.xlane.xlu1 %4162  ;;  %v4182_v5 = vsub.f32 %v11024_v33, %v4161_v37 }
 0x89f   : > { %v4183_v11 = vsub.f32 %v11019_v21, %v4163_v25 }
 0x8a1   : > { %v4210_v44 = vmul.f32 1.442695, %v4183_v11 }
 0x8a2   : > { %v11083_v13 = vpop.eup %8540 }
 0x8a3   : > { %v11087_v53 = vpop.eup %8542 }
 0x8a4   : > { %v11089_v42 = vpop.eup %8544 }
 0x8a5   : > { %v11101_v26 = vpop.eup %8546 }
 0x8ba   : > { %4220 = vadd.xlane.f32.xlu1 %v11081_v50 }
 0x8bb   : > { %4222 = vadd.xlane.f32.xlu0 %v11083_v13 }
 0x8be   : > { %4224 = vadd.xlane.f32.xlu1 %v11087_v53 }
 0x8bf   : > { %4226 = vadd.xlane.f32.xlu0 %v11089_v42 }
 0x8cf   : > { %8332 = vrot.lane.b32.xlu1 %v12160_v19, %s9044_s18 }
 0x8d5   : > { %8327 = vrot.lane.b32.xlu0 %v12166_v8, %s9044_s18  ;;  %v11104_v8 = vpop.eup %8548  ;;  %v4167_v14 = vpop.xlane.xlu1 %4166 }
 0x8d6   : > { %v4165_v22 = vpop.xlane.xlu0 %4164 }
 0x8ec   : > { %v7205_v2 = vpop.f32.mrb[64].mxu1 }
 0x8ed   : > { %v3547_v43 = vpop.f32.mrb[65].mxu1 }
 0x8ee   : > { %7235 = vmatprep.mubr.msk.f32.mxu1 %vm1311_vm0, %v3547_v43  ;;  %v4184_v43 = vsub.f32 %v11050_v40, %v4165_v22 }
 0x8ef   : > { %7236 = vmatmul.mubr.msk.f32.vlgmr.msra.gmra.mrb[48].mxu1 %vm1311_vm0, %v7205_v2  ;;  %v4208_v2 = vmul.f32 1.442695, %v4182_v5 }
 0x8f0   : > { %v7208_v19 = vpop.f32.mrb[66].mxu1 }
 0x8f1   : > { %v3557_v57 = vpop.f32.mrb[67].mxu1 }
 0x8f2   : > { %7238 = vmatprep.mubr.msk.f32.mxu1 %vm1311_vm0, %v3557_v57 }
 0x8f3   : > { %4228 = vadd.xlane.f32.xlu1 %v11101_v26  ;;  %7239 = vmatmul.mubr.msk.f32.gmra.mrb[50].mxu1 %vm1311_vm0, %v7208_v19  ;;  %v4212_v19 = vmul.f32 1.442695, %v4184_v43 }
 0x8f4   : > { %4230 = vadd.xlane.f32.xlu0 %v11104_v8  ;;  %v7211_v9 = vpop.f32.mrb[68].mxu1 }
 0x8f5   : > { %v3567_v28 = vpop.f32.mrb[69].mxu1 }
 0x8f6   : > { %7241 = vmatprep.mubr.msk.f32.mxu1 %vm1311_vm0, %v3567_v28 }
 0x8f7   : > { %7242 = vmatmul.mubr.msk.f32.gmra.mrb[52].mxu1 %vm1311_vm0, %v7211_v9 }
 0x8f8   : > { %v7214_v3 = vpop.f32.mrb[70].mxu1 }
 0x8f9   : > { %v3577_v32 = vpop.f32.mrb[71].mxu1 }
 0x8fa   : > { %7244 = vmatprep.mubr.msk.f32.mxu1 %vm1311_vm0, %v3577_v32 }
 0x8fb   : > { %7245 = vmatmul.mubr.msk.f32.gmra.mrb[54].mxu1 %vm1311_vm0, %v7214_v3 }
 0x8fc   : > { %v7217_v49 = vpop.f32.mrb[72].mxu1 }
 0x8fd   : > { %v3587_v10 = vpop.f32.mrb[73].mxu1 }
 0x8fe   : > { %7247 = vmatprep.mubr.msk.f32.mxu1 %vm1311_vm0, %v3587_v10 }
 0x8ff   : > { %7248 = vmatmul.mubr.msk.f32.gmra.mrb[56].mxu1 %vm1311_vm0, %v7217_v49 }
 0x904   : > { %8342 = vrot.lane.b32.xlu1 %v12162_v30, %s9044_s18  ;;  %v4178_v30 = vsub.f32 %v10985_v0, %v4153_v18  ;;  %v4180_v0 = vsub.f32 %v10994_v15, %v4157_v45  ;;  %v4185_v15 = vsub.f32 %v11045_v51, %v4167_v14 }
 0x906   : > { %v4200_v36 = vmul.f32 1.442695, %v4178_v30  ;;  %v4204_v6 = vmul.f32 1.442695, %v4180_v0  ;;  %v4214_v21 = vmul.f32 1.442695, %v4185_v15 }
 0x908   : > { %8550 = vpow2.f32 %v4200_v36 }
 0x909   : > { %8552 = vpow2.f32 %v4202_v4 }
 0x90a   : > { %8337 = vrot.lane.b32.xlu0 %v12167_v39, %s9044_s18  ;;  %8554 = vpow2.f32 %v4206_v58  ;;  %s6146_s18 = sshll.u32 %s9171_s2, 13 }
 0x90b   : > { %8556 = vpow2.f32 %v4204_v6 }
 0x90c   : > { %8558 = vpow2.f32 %v4210_v44 }
 0x90d   : > { %8560 = vpow2.f32 %v4208_v2 }
 0x90e   : > { %v4171_v46 = vpop.xlane.xlu1 %4170  ;;  %8562 = vpow2.f32 %v4214_v21 }
 0x90f   : > { %v11119_v63 = vpop.xlane.xlu0 %4168  ;;  %v4187_v33 = vsub.f32 %v11061_v56, %v4171_v46  ;;  %8564 = vpow2.f32 %v4212_v19 }
 0x910   : > { %v4186_v51 = vsub.f32 %v11066_v61, %v11119_v63 }
 0x911   : > { %v4218_v40 = vmul.f32 1.442695, %v4187_v33 }
 0x912   : > { %v8313_v31 = vpop.permute.xlu1 %8312  ;;  %v11136_v57 = vpop.eup %8550  ;;  %v4216_v28 = vmul.f32 1.442695, %v4186_v51 }
 0x913   : > { %v8308_v24 = vpop.permute.xlu0 %8307  ;;  %v7220_v16 = vpop.f32.mrb[74].mxu1  ;;  %v8315_v52 = vunpack.i.h.bf16 %v8313_v31  ;;  %v8314_v59 = vunpack.i.l.bf16 %v8313_v31  ;;  %8566 = vpow2.f32 %v4218_v40 }
 0x914   : > { %v8310_v38 = vunpack.i.h.bf16 %v8308_v24  ;;  %v8309_v60 = vunpack.i.l.bf16 %v8308_v24  ;;  %v3597_v54 = vpop.f32.mrb[75].mxu1  ;;  %v11138_v9 = vpop.eup %8552  ;;  %8568 = vpow2.f32 %v4216_v28 }
 0x915   : > { %7250 = vmatprep.mubr.msk.f32.mxu1 %vm1311_vm0, %v3597_v54  ;;  %v7815_v17 = vpack.c.bf16 %v8315_v52, %v8314_v59  ;;  %v11142_v3 = vpop.eup %8554 }
 0x916   : > { %v7811_v55 = vpack.c.bf16 %v8310_v38, %v8309_v60  ;;  %7251 = vmatmul.mubr.msk.f32.gmra.mrb[58].mxu1 %vm1311_vm0, %v7220_v16  ;;  %v8323_v41 = vpop.permute.xlu1 %8322  ;;  %v11144_v56 = vpop.eup %8556 }
 0x917   : > { %v8318_v39 = vpop.permute.xlu0 %8317  ;;  %v8325_v62 = vunpack.i.h.bf16 %v8323_v41  ;;  %v8324_v12 = vunpack.i.l.bf16 %v8323_v41  ;;  %v11148_v61 = vpop.eup %8558 }
 0x918   : > { %v8320_v29 = vunpack.i.h.bf16 %v8318_v39  ;;  %v8319_v27 = vunpack.i.l.bf16 %v8318_v39  ;;  %7812 = vmatprep.subr.bf16.mxu1 %v7811_v55  ;;  %v11150_v32 = vpop.eup %8560 }
 0x919   : > { %7814 = vmatpush3.bf16.msra.mxu1 %v7811_v55  ;;  %v7823_v47 = vpack.c.bf16 %v8325_v62, %v8324_v12  ;;  %v11154_v49 = vpop.eup %8562  ;;  %v1307_v12 = vld [vmem:[#allocation11 + $0x60] sm:$0xff] }
 0x91a   : > { %7816 = vmatprep.subr.bf16.mxu1 %v7815_v17  ;;  %v7819_v48 = vpack.c.bf16 %v8320_v29, %v8319_v27  ;;  %v11156_v18 = vpop.eup %8564 }
 0x91d   : > { %7818 = vmatpush3.bf16.msra.mxu1 %v7815_v17  ;;  %v11160_v10 = vpop.eup %8566 }
 0x91e   : > { %7820 = vmatprep.subr.bf16.mxu1 %v7819_v48  ;;  %v11162_v35 = vpop.eup %8568 }
 0x920   : > { %v7223_v23 = vpop.f32.mrb[76].mxu1 }
 0x921   : > { %v3607_v7 = vpop.f32.mrb[77].mxu1  ;;  %7822 = vmatpush3.bf16.msra.mxu1 %v7819_v48 }
 0x922   : > { %7253 = vmatprep.mubr.msk.f32.mxu1 %vm1311_vm0, %v3607_v7  ;;  %7824 = vmatprep.subr.bf16.mxu1 %v7823_v47 }
 0x923   : > { %7254 = vmatmul.mubr.msk.f32.gmra.mrb[60].mxu1 %vm1311_vm0, %v7223_v23  ;;  %v1310_v23 = vld [vmem:[#allocation11 + $0x78] sm:$0xff] }
 0x925   : > { %7826 = vmatpush3.bf16.msra.mxu1 %v7823_v47  ;;  %v1309_v47 = vld [vmem:[#allocation11 + $0x70] sm:$0xff] }
 0x926   : > { %v7847_v44 = vpack.c.bf16 %v1310_v23, %v1309_v47  ;;  %v8669_v47 = vld [vmem:[%s9470_s29 + $0x10] sm:$0xff] }
 0x928   : > { %4232 = vadd.xlane.f32.xlu1 %v11136_v57 }
 0x929   : > { %4234 = vadd.xlane.f32.xlu0 %v11138_v9 }
 0x92c   : > { %4238 = vadd.xlane.f32.xlu1 %v11142_v3 }
 0x92d   : > { %4236 = vadd.xlane.f32.xlu0 %v11144_v56 }
 0x930   : > { %4242 = vadd.xlane.f32.xlu1 %v11148_v61 }
 0x931   : > { %4240 = vadd.xlane.f32.xlu0 %v11150_v32 }
 0x934   : > { %4246 = vadd.xlane.f32.xlu1 %v11154_v49 }
 0x935   : > { %4244 = vadd.xlane.f32.xlu0 %v11156_v18 }
 0x938   : > { %4250 = vadd.xlane.f32.xlu1 %v11160_v10 }
 0x939   : > { %4248 = vadd.xlane.f32.xlu0 %v11162_v35 }
 0x947   : > { %v4221_v1 = vpop.xlane.xlu1 %4220 }
 0x948   : > { %8570 = vrcp.f32 %v4221_v1  ;;  %v4223_v45 = vpop.xlane.xlu0 %4222 }
 0x949   : > { %8572 = vrcp.f32 %v4223_v45 }
 0x94b   : > { %v4225_v25 = vpop.xlane.xlu1 %4224 }
 0x94c   : > { %8574 = vrcp.f32 %v4225_v25  ;;  %v4227_v37 = vpop.xlane.xlu0 %4226  ;;  %v7226_v14 = vpop.f32.mrb[78].mxu1 }
 0x94d   : > { %8576 = vrcp.f32 %v4227_v37  ;;  %v3617_v22 = vpop.f32.mrb[79].mxu1 }
 0x94e   : > { %7256 = vmatprep.mubr.msk.f32.mxu1 %vm1311_vm0, %v3617_v22 }
 0x94f   : > { %v8333_v46 = vpop.permute.xlu1 %8332  ;;  %7257 = vmatmul.mubr.msk.f32.gmra.mrb[62].mxu1 %vm1311_vm0, %v7226_v14 }
 0x950   : > { %v8328_v63 = vpop.permute.xlu0 %8327  ;;  %v8335_v31 = vunpack.i.h.bf16 %v8333_v46  ;;  %v8334_v24 = vunpack.i.l.bf16 %v8333_v46 }
 0x951   : > { %v8330_v16 = vunpack.i.h.bf16 %v8328_v63  ;;  %v8329_v52 = vunpack.i.l.bf16 %v8328_v63 }
 0x952   : > { %v8571_v59 = vpop.eup %8570  ;;  %v7831_v20 = vpack.c.bf16 %v8335_v31, %v8334_v24 }
 0x953   : > { %v8573_v38 = vpop.eup %8572  ;;  %v7827_v60 = vpack.c.bf16 %v8330_v16, %v8329_v52  ;;  %v4268_v54 = vmul.f32 %v8571_v59, %v11081_v50 }
 0x954   : > { %v4269_v30 = vmul.f32 %v8573_v38, %v11083_v13 }
 0x955   : > { %7828 = vmatprep.subr.bf16.mxu1 %v7827_v60  ;;  %6097 = vst [vmem:[%s10083_s28 + $0x180] sm:$0xff] %v4268_v54  ;;  %7347 = vmatprep.mubr.f32.mxu1 %v4268_v54 }
 0x956   : > { %v8575_v55 = vpop.eup %8574  ;;  %6098 = vst [vmem:[%s10083_s28 + $0x188] sm:$0xff] %v4269_v30  ;;  %7830 = vmatpush3.bf16.msra.mxu1 %v7827_v60 }
 0x957   : > { %v8577_v39 = vpop.eup %8576  ;;  %7832 = vmatprep.subr.bf16.mxu1 %v7831_v20  ;;  %v4270_v17 = vmul.f32 %v8575_v55, %v11087_v53  ;;  %v1308_v53 = vld [vmem:[#allocation11 + $0x68] sm:$0xff] }
 0x958   : > { %v4271_v29 = vmul.f32 %v8577_v39, %v11089_v42  ;;  %v7843_v6 = vpack.c.bf16 %v1308_v53, %v1307_v12  ;;  %v8667_v12 = vld [vmem:[%s9470_s29] sm:$0xff] }
 0x959   : > { %6099 = vst [vmem:[%s10083_s28 + $0x190] sm:$0xff] %v4270_v17 }
 0x95a   : > { %7834 = vmatpush3.bf16.msra.mxu1 %v7831_v20  ;;  %6100 = vst [vmem:[%s10083_s28 + $0x198] sm:$0xff] %v4271_v29 }
 0x980   : > { %v4229_v27 = vpop.xlane.xlu1 %4228 }
 0x981   : > { %8578 = vrcp.f32 %v4229_v27  ;;  %v4231_v50 = vpop.xlane.xlu0 %4230 }
 0x982   : > { %8580 = vrcp.f32 %v4231_v50 }
 0x984   : > { %v8343_v13 = vpop.permute.xlu1 %8342 }
 0x985   : > { %v8338_v34 = vpop.permute.xlu0 %8337  ;;  %v8345_v36 = vunpack.i.h.bf16 %v8343_v13  ;;  %v8344_v41 = vunpack.i.l.bf16 %v8343_v13  ;;  %v11219_v13 = vld [vmem:[%s11931_s9] ss:$0 sm:$0xff] }
 0x986   : > { %v8340_v4 = vunpack.i.h.bf16 %v8338_v34  ;;  %v8339_v0 = vunpack.i.l.bf16 %v8338_v34 }
 0x987   : > { %v7839_v48 = vpack.c.bf16 %v8345_v36, %v8344_v41 }
 0x988   : > { %v7835_v62 = vpack.c.bf16 %v8340_v4, %v8339_v0  ;;  %v8666_v0 = vld [vmem:[%s9470_s29 + $0x8] sm:$0xff] }
 0x98a   : > { %7836 = vmatprep.subr.bf16.mxu1 %v7835_v62 }
 0x98b   : > { %v8579_v42 = vpop.eup %8578  ;;  %7838 = vmatpush3.bf16.msra.mxu1 %v7835_v62 }
 0x98c   : > { %v8581_v58 = vpop.eup %8580  ;;  %7840 = vmatprep.subr.bf16.mxu1 %v7839_v48  ;;  %v4272_v11 = vmul.f32 %v8579_v42, %v11101_v26 }
 0x98d   : > { %v4273_v5 = vmul.f32 %v8581_v58, %v11104_v8 }
 0x98e   : > { %6101 = vst [vmem:[%s10083_s28 + $0x1a0] sm:$0xff] %v4272_v11 }
 0x98f   : > { %7842 = vmatpush3.bf16.msra.mxu1 %v7839_v48  ;;  %6102 = vst [vmem:[%s10083_s28 + $0x1a8] sm:$0xff] %v4273_v5 }
 0x990   : > { %7844 = vmatprep.subr.bf16.mxu1 %v7843_v6 }
 0x992   : > { %7348 = vmatmul.mubr.f32.vlgmr.msra.gmra.mrb[80].mxu1 %v4269_v30 }
 0x993   : > { %7350 = vmatprep.mubr.f32.mxu1 %v4270_v17  ;;  %7846 = vmatpush3.bf16.msra.mxu1 %v7843_v6  ;;  %v8668_v6 = vld [vmem:[%s9470_s29 + $0x18] sm:$0xff] }
 0x994   : > { %7848 = vmatprep.subr.bf16.mxu1 %v7847_v44 }
 0x996   : > { %7351 = vmatmul.mubr.f32.gmra.mrb[82].mxu1 %v4271_v29 }
 0x997   : > { %7353 = vmatprep.mubr.f32.mxu1 %v4272_v11  ;;  %7850 = vmatpush3.bf16.msra.mxu1 %v7847_v44 }
 0x99a   : > { %7354 = vmatmul.mubr.f32.gmra.mrb[84].mxu1 %v4273_v5 }
 0x9b5   : > { %v4233_v15 = vpop.xlane.xlu1 %4232 }
 0x9b6   : > { %8582 = vrcp.f32 %v4233_v15  ;;  %v4235_v26 = vpop.xlane.xlu0 %4234 }
 0x9b7   : > { %8584 = vrcp.f32 %v4235_v26 }
 0x9b9   : > { %v4239_v8 = vpop.xlane.xlu1 %4238 }
 0x9ba   : > { %8586 = vrcp.f32 %v4239_v8  ;;  %v4237_v7 = vpop.xlane.xlu0 %4236 }
 0x9bb   : > { %8588 = vrcp.f32 %v4237_v7  ;;  %v8670_v7 = vld [vmem:[%s9470_s29 + $0x28] sm:$0xff] }
 0x9bd   : > { %v4243_v2 = vpop.xlane.xlu1 %4242 }
 0x9be   : > { %8590 = vrcp.f32 %v4243_v2  ;;  %v4241_v43 = vpop.xlane.xlu0 %4240 }
 0x9bf   : > { %8592 = vrcp.f32 %v4241_v43  ;;  %v8671_v43 = vld [vmem:[%s9470_s29 + $0x20] sm:$0xff] }
 0x9c0   : > { %v8583_v21 = vpop.eup %8582 }
 0x9c1   : > { %v8585_v33 = vpop.eup %8584  ;;  %v4247_v19 = vpop.xlane.xlu1 %4246  ;;  %v4274_v51 = vmul.f32 %v8583_v21, %v11136_v57 }
 0x9c2   : > { %8594 = vrcp.f32 %v4247_v19  ;;  %v4245_v40 = vpop.xlane.xlu0 %4244  ;;  %v4275_v28 = vmul.f32 %v8585_v33, %v11138_v9 }
 0x9c3   : > { %8596 = vrcp.f32 %v4245_v40  ;;  %6103 = vst [vmem:[%s10083_s28 + $0x1b0] sm:$0xff] %v4274_v51  ;;  %7356 = vmatprep.mubr.f32.mxu1 %v4274_v51 }
 0x9c4   : > { %v8587_v1 = vpop.eup %8586  ;;  %6104 = vst [vmem:[%s10083_s28 + $0x1b8] sm:$0xff] %v4275_v28  ;;  %7357 = vmatmul.mubr.f32.gmra.mrb[86].mxu1 %v4275_v28  ;;  %v8672_v28 = vld [vmem:[%s9470_s29 + $0x38] sm:$0xff] }
 0x9c5   : > { %v8589_v45 = vpop.eup %8588  ;;  %v4251_v25 = vpop.xlane.xlu1 %4250  ;;  %v4277_v37 = vmul.f32 %v8587_v1, %v11142_v3 }
 0x9c6   : > { %8598 = vrcp.f32 %v4251_v25  ;;  %v4249_v57 = vpop.xlane.xlu0 %4248  ;;  %v4276_v14 = vmul.f32 %v8589_v45, %v11144_v56  ;;  %v8673_v45 = vld [vmem:[%s9470_s29 + $0x30] sm:$0xff] }
 0x9c7   : > { %8600 = vrcp.f32 %v4249_v57  ;;  %6106 = vst [vmem:[%s10083_s28 + $0x1c8] sm:$0xff] %v4277_v37 }
 0x9c8   : > { %v8591_v9 = vpop.eup %8590  ;;  %6105 = vst [vmem:[%s10083_s28 + $0x1c0] sm:$0xff] %v4276_v14  ;;  %7359 = vmatprep.mubr.f32.mxu1 %v4276_v14 }
 0x9c9   : > { %v8593_v22 = vpop.eup %8592  ;;  %7360 = vmatmul.mubr.f32.gmra.mrb[88].mxu1 %v4277_v37  ;;  %v4279_v46 = vmul.f32 %v8591_v9, %v11148_v61 }
 0x9ca   : > { %v4278_v63 = vmul.f32 %v8593_v22, %v11150_v32  ;;  %v8674_v22 = vld [vmem:[%s9470_s29 + $0x48] sm:$0xff] }
 0x9cb   : > { %6108 = vst [vmem:[%s10083_s28 + $0x1d8] sm:$0xff] %v4279_v46 }
 0x9cc   : > { %v8595_v3 = vpop.eup %8594  ;;  %6107 = vst [vmem:[%s10083_s28 + $0x1d0] sm:$0xff] %v4278_v63  ;;  %7362 = vmatprep.mubr.f32.mxu1 %v4278_v63  ;;  %v8675_v63 = vld [vmem:[%s9470_s29 + $0x40] sm:$0xff] }
 0x9cd   : > { %v8597_v56 = vpop.eup %8596  ;;  %7363 = vmatmul.mubr.f32.gmra.mrb[90].mxu1 %v4279_v46  ;;  %v4281_v31 = vmul.f32 %v8595_v3, %v11154_v49 }
 0x9ce   : > { %v4280_v24 = vmul.f32 %v8597_v56, %v11156_v18 }
 0x9cf   : > { %6110 = vst [vmem:[%s10083_s28 + $0x1e8] sm:$0xff] %v4281_v31 }
 0x9d0   : > { %v8599_v16 = vpop.eup %8598  ;;  %6109 = vst [vmem:[%s10083_s28 + $0x1e0] sm:$0xff] %v4280_v24  ;;  %7365 = vmatprep.mubr.f32.mxu1 %v4280_v24 }
 0x9d1   : > { %v8601_v52 = vpop.eup %8600  ;;  %7366 = vmatmul.mubr.f32.gmra.mrb[92].mxu1 %v4281_v31  ;;  %v4283_v61 = vmul.f32 %v8599_v16, %v11160_v10 }
 0x9d2   : > { %v4282_v32 = vmul.f32 %v8601_v52, %v11162_v35  ;;  %v8676_v52 = vld [vmem:[%s9470_s29 + $0x58] sm:$0xff] }
 0x9d3   : > { %6112 = vst [vmem:[%s10083_s28 + $0x1f8] sm:$0xff] %v4283_v61 }
 0x9d4   : > { %6111 = vst [vmem:[%s10083_s28 + $0x1f0] sm:$0xff] %v4282_v32  ;;  %7368 = vmatprep.mubr.f32.mxu1 %v4282_v32  ;;  %v8677_v32 = vld [vmem:[%s9470_s29 + $0x50] sm:$0xff] }
 0x9d5   : > { %7369 = vmatmul.mubr.f32.gmra.mrb[94].mxu1 %v4283_v61 }
 0xa65   : > { %v7349_v59 = vpop.f32.mrb[80].mxu1 }
 0xa66   : > { %v4415_v38 = vpop.f32.mrb[81].mxu1 }
 0xa67   : > { %7379 = vmatprep.mubr.msk.f32.mxu1 %vm1311_vm0, %v4415_v38 }
 0xa68   : > { %7380 = vmatmul.mubr.msk.f32.vlgmr.msra.gmra.mrb[48].mxu1 %vm1311_vm0, %v7349_v59 }
 0xa69   : > { %v7352_v49 = vpop.f32.mrb[82].mxu1 }
 0xa6a   : > { %v4425_v18 = vpop.f32.mrb[83].mxu1 }
 0xa6b   : > { %7382 = vmatprep.mubr.msk.f32.mxu1 %vm1311_vm0, %v4425_v18 }
 0xa6c   : > { %7383 = vmatmul.mubr.msk.f32.gmra.mrb[50].mxu1 %vm1311_vm0, %v7352_v49 }
 0xa6d   : > { %v7355_v60 = vpop.f32.mrb[84].mxu1 }
 0xa6e   : > { %v4435_v10 = vpop.f32.mrb[85].mxu1 }
 0xa6f   : > { %7385 = vmatprep.mubr.msk.f32.mxu1 %vm1311_vm0, %v4435_v10  ;;  %v8678_v10 = vld [vmem:[%s9470_s29 + $0x68] sm:$0xff] }
 0xa70   : > { %7386 = vmatmul.mubr.msk.f32.gmra.mrb[52].mxu1 %vm1311_vm0, %v7355_v60 }
 0xa97   : > { %v7358_v35 = vpop.f32.mrb[86].mxu1 }
 0xa98   : > { %v4445_v54 = vpop.f32.mrb[87].mxu1 }
 0xa99   : > { %7388 = vmatprep.mubr.msk.f32.mxu1 %vm1311_vm0, %v4445_v54  ;;  %v8679_v54 = vld [vmem:[%s9470_s29 + $0x60] sm:$0xff] }
 0xa9a   : > { %7389 = vmatmul.mubr.msk.f32.gmra.mrb[54].mxu1 %vm1311_vm0, %v7358_v35 }
 0xa9c   : > { %v7361_v30 = vpop.f32.mrb[88].mxu1 }
 0xa9d   : > { %v4455_v20 = vpop.f32.mrb[89].mxu1 }
 0xa9e   : > { %7391 = vmatprep.mubr.msk.f32.mxu1 %vm1311_vm0, %v4455_v20 }
 0xa9f   : > { %7392 = vmatmul.mubr.msk.f32.gmra.mrb[56].mxu1 %vm1311_vm0, %v7361_v30 }
 0xaa0   : > { %v7364_v55 = vpop.f32.mrb[90].mxu1 }
 0xaa1   : > { %v4465_v39 = vpop.f32.mrb[91].mxu1 }
 0xaa2   : > { %7394 = vmatprep.mubr.msk.f32.mxu1 %vm1311_vm0, %v4465_v39 }
 0xaa3   : > { %7395 = vmatmul.mubr.msk.f32.gmra.mrb[58].mxu1 %vm1311_vm0, %v7364_v55 }
 0xaa4   : > { %v7367_v17 = vpop.f32.mrb[92].mxu1 }
 0xaa5   : > { %v4475_v29 = vpop.f32.mrb[93].mxu1 }
 0xaa6   : > { %7397 = vmatprep.mubr.msk.f32.mxu1 %vm1311_vm0, %v4475_v29  ;;  %v8680_v29 = vld [vmem:[%s9470_s29 + $0x78] sm:$0xff] }
 0xaa7   : > { %7398 = vmatmul.mubr.msk.f32.gmra.mrb[60].mxu1 %vm1311_vm0, %v7367_v17 }
 0xaa8   : > { %v7370_v27 = vpop.f32.mrb[94].mxu1 }
 0xaa9   : > { %v4485_v50 = vpop.f32.mrb[95].mxu1 }
 0xaaa   : > { %7400 = vmatprep.mubr.msk.f32.mxu1 %vm1311_vm0, %v4485_v50  ;;  %v8681_v50 = vld [vmem:[%s9470_s29 + $0x70] sm:$0xff] }
 0xaab   : > { %7401 = vmatmul.mubr.msk.f32.gmra.mrb[62].mxu1 %vm1311_vm0, %v7370_v27 }
 0xb3b   : > { %v7381_v34 = vpop.f32.mrb[48].mxu1 }
 0xb3c   : > { %v4711_v36 = vadd.f32 %v7381_v34, %v11219_v13  ;;  %v4608_v41 = vpop.f32.mrb[49].mxu1 }
 0xb3d   : > { %v4710_v4 = vadd.f32 %v11219_v13, %v4608_v41  ;;  %v4968_v41 = vld [vmem:[#allocation13 + $0x18] sm:$0xff] }
 0xb3e   : > { %v11224_v62 = vadd.f32 %v8666_v0, %v4711_v36  ;;  %v4966_v36 = vld [vmem:[#allocation13 + $0x8] sm:$0xff] }
 0xb3f   : > { %v11227_v53 = vadd.f32 %v8667_v12, %v4710_v4  ;;  %v7384_v48 = vpop.f32.mrb[50].mxu1  ;;  %v4965_v4 = vld [vmem:[#allocation13] sm:$0xff]  ;;  %v7851_v0 = vpack.c.bf16 %v4968_v41, %v4966_v36  ;;  %v4967_v12 = vld [vmem:[#allocation13 + $0x10] sm:$0xff]  ;;  %v4986_v36 = vld [vmem:[#allocation13 + $0xa8] sm:$0xff] }
 0xb40   : > { %v4713_v42 = vadd.f32 %v7384_v48, %v11219_v13  ;;  %4746 = vadd.xlane.f32.xlu1 %v11224_v62  ;;  %v4618_v58 = vpop.f32.mrb[51].mxu1  ;;  %v4970_v48 = vld [vmem:[#allocation13 + $0x28] sm:$0xff]  ;;  %v4988_v41 = vld [vmem:[#allocation13 + $0xb8] sm:$0xff] }
 0xb41   : > { %v4712_v11 = vadd.f32 %v11219_v13, %v4618_v58  ;;  %4744 = vadd.xlane.f32.xlu0 %v11227_v53  ;;  %7852 = vmatprep.subr.bf16.mxu0 %v7851_v0  ;;  %v4985_v0 = vld [vmem:[#allocation13 + $0xa0] sm:$0xff] }
 0xb42   : > { %v11234_v5 = vadd.f32 %v8668_v6, %v4713_v42  ;;  %v4972_v42 = vld [vmem:[#allocation13 + $0x38] sm:$0xff]  ;;  %v4971_v6 = vld [vmem:[#allocation13 + $0x30] sm:$0xff] }
 0xb43   : > { %v11237_v23 = vadd.f32 %v8669_v47, %v4712_v11  ;;  %v7387_v44 = vpop.f32.mrb[52].mxu1  ;;  %v7855_v58 = vpack.c.bf16 %v4972_v42, %v4970_v48  ;;  %v4969_v11 = vld [vmem:[#allocation13 + $0x20] sm:$0xff]  ;;  %v4974_v47 = vld [vmem:[#allocation13 + $0x48] sm:$0xff] }
 0xb44   : > { %v4715_v15 = vadd.f32 %v7387_v44, %v11219_v13  ;;  %4750 = vadd.xlane.f32.xlu1 %v11234_v5  ;;  %v4628_v26 = vpop.f32.mrb[53].mxu1  ;;  %v4976_v44 = vld [vmem:[#allocation13 + $0x58] sm:$0xff]  ;;  %v4990_v42 = vld [vmem:[#allocation13 + $0xc8] sm:$0xff] }
 0xb45   : > { %v4714_v8 = vadd.f32 %v11219_v13, %v4628_v26  ;;  %4748 = vadd.xlane.f32.xlu0 %v11237_v23  ;;  %v7859_v26 = vpack.c.bf16 %v4976_v44, %v4974_v47  ;;  %v4994_v44 = vld [vmem:[#allocation13 + $0xe8] sm:$0xff] }
 0xb46   : > { %v11244_v2 = vadd.f32 %v8670_v7, %v4715_v15  ;;  %v7857_v15 = vpack.c.bf16 %v4971_v6, %v4969_v11  ;;  %v4975_v7 = vld [vmem:[#allocation13 + $0x50] sm:$0xff]  ;;  %v4989_v11 = vld [vmem:[#allocation13 + $0xc0] sm:$0xff] }
 0xb47   : > { %v11247_v21 = vadd.f32 %v8671_v43, %v4714_v8  ;;  %v4973_v8 = vld [vmem:[#allocation13 + $0x40] sm:$0xff]  ;;  %v4991_v6 = vld [vmem:[#allocation13 + $0xd0] sm:$0xff] }
 0xb48   : > { %4754 = vadd.xlane.f32.xlu1 %v11244_v2  ;;  %v7861_v43 = vpack.c.bf16 %v4975_v7, %v4973_v8  ;;  %v7877_v47 = vpack.c.bf16 %v4991_v6, %v4989_v11  ;;  %v4995_v7 = vld [vmem:[#allocation13 + $0xf0] sm:$0xff] }
 0xb49   : > { %4752 = vadd.xlane.f32.xlu0 %v11247_v21  ;;  %v5204_v6 = vld [vmem:[#allocation14 + $0x10] sm:$0xff] }
 0xb6d   : > { %v7390_v33 = vpop.f32.mrb[54].mxu1 }
 0xb6e   : > { %v4717_v19 = vadd.f32 %v7390_v33, %v11219_v13  ;;  %v4638_v51 = vpop.f32.mrb[55].mxu1 }
 0xb6f   : > { %v4716_v40 = vadd.f32 %v11219_v13, %v4638_v51 }
 0xb70   : > { %v11254_v1 = vadd.f32 %v8672_v28, %v4717_v19 }
 0xb71   : > { %v11257_v25 = vadd.f32 %v8673_v45, %v4716_v40 }
 0xb72   : > { %4758 = vadd.xlane.f32.xlu1 %v11254_v1  ;;  %v7393_v37 = vpop.f32.mrb[56].mxu1 }
 0xb73   : > { %v4719_v57 = vadd.f32 %v7393_v37, %v11219_v13  ;;  %4756 = vadd.xlane.f32.xlu0 %v11257_v25  ;;  %v4648_v14 = vpop.f32.mrb[57].mxu1 }
 0xb74   : > { %v4718_v9 = vadd.f32 %v11219_v13, %v4648_v14 }
 0xb75   : > { %v11264_v46 = vadd.f32 %v8674_v22, %v4719_v57 }
 0xb76   : > { %v11267_v3 = vadd.f32 %v8675_v63, %v4718_v9  ;;  %v7396_v56 = vpop.f32.mrb[58].mxu1 }
 0xb77   : > { %v4721_v31 = vadd.f32 %v7396_v56, %v11219_v13  ;;  %4762 = vadd.xlane.f32.xlu1 %v11264_v46  ;;  %v4658_v24 = vpop.f32.mrb[59].mxu1 }
 0xb78   : > { %v4720_v16 = vadd.f32 %v11219_v13, %v4658_v24  ;;  %4760 = vadd.xlane.f32.xlu0 %v11267_v3 }
 0xb79   : > { %v11274_v61 = vadd.f32 %v8676_v52, %v4721_v31 }
 0xb7a   : > { %v11277_v59 = vadd.f32 %v8677_v32, %v4720_v16  ;;  %v7399_v38 = vpop.f32.mrb[60].mxu1 }
 0xb7b   : > { %v4723_v49 = vadd.f32 %v7399_v38, %v11219_v13  ;;  %4766 = vadd.xlane.f32.xlu1 %v11274_v61  ;;  %v4668_v18 = vpop.f32.mrb[61].mxu1 }
 0xb7c   : > { %v4722_v60 = vadd.f32 %v11219_v13, %v4668_v18  ;;  %4764 = vadd.xlane.f32.xlu0 %v11277_v59  ;;  %v4978_v18 = vld [vmem:[#allocation13 + $0x68] sm:$0xff] }
 0xb7d   : > { %v11284_v35 = vadd.f32 %v8678_v10, %v4723_v49 }
 0xb7e   : > { %v11287_v30 = vadd.f32 %v8679_v54, %v4722_v60  ;;  %v7402_v20 = vpop.f32.mrb[62].mxu1  ;;  %v4980_v60 = vld [vmem:[#allocation13 + $0x78] sm:$0xff]  ;;  %v4977_v54 = vld [vmem:[#allocation13 + $0x60] sm:$0xff] }
 0xb7f   : > { %v4725_v55 = vadd.f32 %v7402_v20, %v11219_v13  ;;  %4770 = vadd.xlane.f32.xlu1 %v11284_v35  ;;  %v4678_v39 = vpop.f32.mrb[63].mxu1  ;;  %v7863_v10 = vpack.c.bf16 %v4980_v60, %v4978_v18  ;;  %v4979_v20 = vld [vmem:[#allocation13 + $0x70] sm:$0xff] }
 0xb80   : > { %v4724_v17 = vadd.f32 %v11219_v13, %v4678_v39  ;;  %4768 = vadd.xlane.f32.xlu0 %v11287_v30  ;;  %v7853_v13 = vpack.c.bf16 %v4967_v12, %v4965_v4  ;;  %v7871_v4 = vpack.c.bf16 %v4988_v41, %v4986_v36  ;;  %v4987_v12 = vld [vmem:[#allocation13 + $0xb0] sm:$0xff] }
 0xb81   : > { %v11294_v27 = vadd.f32 %v8680_v29, %v4725_v55  ;;  %v4982_v55 = vld [vmem:[#allocation13 + $0x88] sm:$0xff]  ;;  %v4983_v29 = vld [vmem:[#allocation13 + $0x90] sm:$0xff]  ;;  %v7873_v48 = vpack.c.bf16 %v4987_v12, %v4985_v0  ;;  %v5218_v0 = vld [vmem:[#allocation14 + $0x80] sm:$0xff] }
 0xb82   : > { %v11297_v34 = vadd.f32 %v8681_v50, %v4724_v17  ;;  %7854 = vmatpush1.bf16.msra.mxu0 %v7853_v13  ;;  %v4981_v17 = vld [vmem:[#allocation13 + $0x80] sm:$0xff]  ;;  %v4992_v13 = vld [vmem:[#allocation13 + $0xd8] sm:$0xff]  ;;  %v5219_v12 = vld [vmem:[#allocation14 + $0x88] sm:$0xff] }
 0xb83   : > { %4774 = vadd.xlane.f32.xlu1 %v11294_v27  ;;  %7856 = vmatprep.subr.bf16.mxu0 %v7855_v58  ;;  %v7869_v50 = vpack.c.bf16 %v4983_v29, %v4981_v17  ;;  %v7875_v58 = vpack.c.bf16 %v4992_v13, %v4990_v42  ;;  %v7883_v42 = vpack.c.bf16 %v5219_v12, %v5218_v0  ;;  %v5203_v13 = vld [vmem:[#allocation14 + $0x8] sm:$0xff] }
 0xb84   : > { %4772 = vadd.xlane.f32.xlu0 %v11297_v34 }
 0xb85   : > { %7915 = vmatprep.subr.bf16.mxu1 %v7883_v42 }
 0xb86   : > { %7858 = vmatpush1.bf16.msra.mxu0 %v7857_v15  ;;  %v4996_v15 = vld [vmem:[#allocation13 + $0xf8] sm:$0xff] }
 0xb87   : > { %7860 = vmatprep.subr.bf16.mxu0 %v7859_v26  ;;  %v4993_v26 = vld [vmem:[#allocation13 + $0xe0] sm:$0xff]  ;;  %v7879_v8 = vpack.c.bf16 %v4996_v15, %v4994_v44  ;;  %v5223_v15 = vld [vmem:[#allocation14 + $0xa8] sm:$0xff] }
 0xb88   : > { %v5222_v44 = vld [vmem:[#allocation14 + $0xa0] sm:$0xff] }
 0xb8a   : > { %7862 = vmatpush1.bf16.msra.mxu0 %v7861_v43  ;;  %v9045_v43 = vmov 0.0  }
 0xb8b   : > { %7864 = vmatprep.subr.bf16.mxu0 %v7863_v10  ;;  %5073 = vmatprep.mubr.f32.mxu0 %v9045_v43 }
 0xbcd   : > { %v4747_v33 = vpop.xlane.xlu1 %4746 }
 0xbce   : > { %v4778_v19 = vmul.f32 0.0078125, %v4747_v33  ;;  %v4745_v51 = vpop.xlane.xlu0 %4744  ;;  %v7881_v33 = vpack.c.bf16 %v4995_v7, %v4993_v26  ;;  %v5206_v7 = vld [vmem:[#allocation14 + $0x20] sm:$0xff] }
 0xbcf   : > { %v4777_v40 = vmul.f32 0.0078125, %v4745_v51 }
 0xbd0   : > { %v11302_v28 = vsub.f32 %v11224_v62, %v4778_v19 }
 0xbd1   : > { %v11305_v45 = vsub.f32 %v11227_v53, %v4777_v40  ;;  %v4751_v37 = vpop.xlane.xlu1 %4750 }
 0xbd2   : > { %v4780_v57 = vmul.f32 0.0078125, %v4751_v37  ;;  %v4749_v14 = vpop.xlane.xlu0 %4748  ;;  %v4810_v9 = vmul.f32 %v11302_v28, %v11302_v28 }
 0xbd3   : > { %v4779_v22 = vmul.f32 0.0078125, %v4749_v14  ;;  %v4809_v63 = vmul.f32 %v11305_v45, %v11305_v45 }
 0xbd4   : > { %v11312_v56 = vsub.f32 %v11234_v5, %v4780_v57  ;;  %4827 = vadd.xlane.f32.xlu1 %v4810_v9 }
 0xbd5   : > { %v11315_v62 = vsub.f32 %v11237_v23, %v4779_v22  ;;  %v4755_v31 = vpop.xlane.xlu1 %4754  ;;  %4825 = vadd.xlane.f32.xlu0 %v4809_v63 }
 0xbd6   : > { %v4782_v53 = vmul.f32 0.0078125, %v4755_v31  ;;  %v4753_v24 = vpop.xlane.xlu0 %4752  ;;  %v4812_v16 = vmul.f32 %v11312_v56, %v11312_v56 }
 0xbd7   : > { %v4781_v52 = vmul.f32 0.0078125, %v4753_v24  ;;  %v4811_v32 = vmul.f32 %v11315_v62, %v11315_v62 }
 0xbd8   : > { %v11322_v38 = vsub.f32 %v11244_v2, %v4782_v53  ;;  %4831 = vadd.xlane.f32.xlu1 %v4812_v16  ;;  %v7865_v2 = vpack.c.bf16 %v4979_v20, %v4977_v54 }
 0xbd9   : > { %v11325_v5 = vsub.f32 %v11247_v21, %v4781_v52  ;;  %4829 = vadd.xlane.f32.xlu0 %v4811_v32  ;;  %v4984_v21 = vld [vmem:[#allocation13 + $0x98] sm:$0xff] }
 0xbda   : > { %v4814_v23 = vmul.f32 %v11322_v38, %v11322_v38  ;;  %7866 = vmatpush1.bf16.msra.mxu0 %v7865_v2  ;;  %v7867_v39 = vpack.c.bf16 %v4984_v21, %v4982_v55 }
 0xbdb   : > { %v4813_v49 = vmul.f32 %v11325_v5, %v11325_v5 }
 0xbdc   : > { %4835 = vadd.xlane.f32.xlu1 %v4814_v23  ;;  %7868 = vmatprep.subr.bf16.mxu0 %v7867_v39 }
 0xbdd   : > { %4833 = vadd.xlane.f32.xlu0 %v4813_v49 }
 0xbde   : > { %7870 = vmatpush1.bf16.msra.mxu0 %v7869_v50 }
 0xbdf   : > { %7872 = vmatprep.subr.bf16.mxu0 %v7871_v4 }
 0xbe2   : > { %7874 = vmatpush1.bf16.msra.mxu0 %v7873_v48  ;;  %v5202_v48 = vld [vmem:[#allocation14] sm:$0xff] }
 0xbe3   : > { %7876 = vmatprep.subr.bf16.mxu0 %v7875_v58  ;;  %v5221_v58 = vld [vmem:[#allocation14 + $0x98] sm:$0xff]  ;;  %v11382_v11 = vpack.c.bf16 %v5203_v13, %v5202_v48 }
 0xbe5   : > { %7923 = vmatpush3.bf16.msra.mxu1 %v11382_v11 }
 0xbe6   : > { %7878 = vmatpush1.bf16.msra.mxu0 %v7877_v47  ;;  %v5205_v47 = vld [vmem:[#allocation14 + $0x18] sm:$0xff] }
 0xbe7   : > { %7880 = vmatprep.subr.bf16.mxu0 %v7879_v8  ;;  %v11388_v26 = vpack.c.bf16 %v5205_v47, %v5204_v6  ;;  %v11390_v8 = vpack.c.bf16 %v5223_v15, %v5222_v44 }
 0xbea   : > { %7882 = vmatpush1.bf16.msra.mxu0 %v7881_v33  ;;  %v5207_v33 = vld [vmem:[#allocation14 + $0x28] sm:$0xff] }
 0xbeb   : > { %7884 = vmatprep.subr.bf16.mxu0 %v7883_v42 }
 0xbff   : > { %v4759_v19 = vpop.xlane.xlu1 %4758 }
 0xc00   : > { %v4784_v51 = vmul.f32 0.0078125, %v4759_v19  ;;  %v4757_v40 = vpop.xlane.xlu0 %4756  ;;  %v5224_v19 = vld [vmem:[#allocation14 + $0xb0] sm:$0xff] }
 0xc01   : > { %v4783_v37 = vmul.f32 0.0078125, %v4757_v40  ;;  %v11394_v40 = vpack.c.bf16 %v5207_v33, %v5206_v7  ;;  %v11421_v33 = vld [vmem:[%s12193_s15] ss:$0 sm:$0xff]  ;;  %s11760_s15 = scalar_lea.hbm %s12197_s13, %s6146_s18 }
 0xc02   : > { %v11333_v57 = vsub.f32 %v11254_v1, %v4784_v51  ;;  %v5225_v51 = vld [vmem:[#allocation14 + $0xb8] sm:$0xff] }
 0xc03   : > { %v11336_v14 = vsub.f32 %v11257_v25, %v4783_v37  ;;  %v11396_v37 = vpack.c.bf16 %v5225_v51, %v5224_v19 }
 0xc04   : > { %v4763_v9 = vpop.xlane.xlu1 %4762  ;;  %v4816_v22 = vmul.f32 %v11333_v57, %v11333_v57 }
 0xc05   : > { %v4786_v63 = vmul.f32 0.0078125, %v4763_v9  ;;  %v4761_v31 = vpop.xlane.xlu0 %4760  ;;  %v4815_v53 = vmul.f32 %v11336_v14, %v11336_v14  ;;  %v5208_v9 = vld [vmem:[#allocation14 + $0x30] sm:$0xff] }
 0xc06   : > { %v4785_v24 = vmul.f32 0.0078125, %v4761_v31  ;;  %4839 = vadd.xlane.f32.xlu1 %v4816_v22  ;;  %v5209_v22 = vld [vmem:[#allocation14 + $0x38] sm:$0xff]  ;;  %v5227_v31 = vld [vmem:[#allocation14 + $0xc8] sm:$0xff] }
 0xc07   : > { %v11343_v16 = vsub.f32 %v11264_v46, %v4786_v63  ;;  %4837 = vadd.xlane.f32.xlu0 %v4815_v53  ;;  %v5226_v63 = vld [vmem:[#allocation14 + $0xc0] sm:$0xff]  ;;  %v11400_v53 = vpack.c.bf16 %v5209_v22, %v5208_v9 }
 0xc08   : > { %v11346_v1 = vsub.f32 %v11267_v3, %v4785_v24  ;;  %v4767_v25 = vpop.xlane.xlu1 %4766  ;;  %v11402_v24 = vpack.c.bf16 %v5227_v31, %v5226_v63  ;;  %v11428_v9 = vld [vmem:[%s12194_s4] ss:$0 sm:$0xff]  ;;  %s9046_s4 = smov [#allocation17]  }
 0xc09   : > { %v4788_v52 = vmul.f32 0.0078125, %v4767_v25  ;;  %v4765_v32 = vpop.xlane.xlu0 %4764  ;;  %v4818_v23 = vmul.f32 %v11343_v16, %v11343_v16  ;;  %v5210_v25 = vld [vmem:[#allocation14 + $0x40] sm:$0xff]  ;;  %s8914_s11 = sshll.u32 %s9046_s4, 4  ;;  %s8915_s11 = int_to_ptr.vmem [resolvable:$false] %s8914_s11 }
 0xc0a   : > { %v4787_v49 = vmul.f32 0.0078125, %v4765_v32  ;;  %v4817_v18 = vmul.f32 %v11346_v1, %v11346_v1  ;;  %v5228_v32 = vld [vmem:[#allocation14 + $0xd0] sm:$0xff]  ;;  %s8916_s28 = scalar_lea.vmem %s8915_s11, 16384  ;;  %p8917_p9 = scmp.lt.s32.totalorder %s11762_s12, %s8915_s11 }
 0xc0b   : > { %v11353_v60 = vsub.f32 %v11274_v61, %v4788_v52  ;;  %4843 = vadd.xlane.f32.xlu1 %v4818_v23  ;;  %v5211_v52 = vld [vmem:[#allocation14 + $0x48] sm:$0xff]  ;;  %v5229_v23 = vld [vmem:[#allocation14 + $0xd8] sm:$0xff]  ;;  %p8918_p8 = scmp.lt.s32.totalorder %s8916_s28, %s8910_s3 }
 0xc0c   : > { %v11356_v46 = vsub.f32 %v11277_v59, %v4787_v49  ;;  %v4771_v10 = vpop.xlane.xlu1 %4770  ;;  %4841 = vadd.xlane.f32.xlu0 %v4817_v18  ;;  %v11406_v49 = vpack.c.bf16 %v5211_v52, %v5210_v25 }
 0xc0d   : > { %v4790_v3 = vmul.f32 0.0078125, %v4771_v10  ;;  %v4769_v54 = vpop.xlane.xlu0 %4768  ;;  %v4820_v20 = vmul.f32 %v11353_v60, %v11353_v60  ;;  %v11408_v10 = vpack.c.bf16 %v5229_v23, %v5228_v32  ;;  %p8919_p11 = por %p8918_p8, %p8917_p9 }
 0xc0e   : > { %v4789_v2 = vmul.f32 0.0078125, %v4769_v54  ;;  %v4819_v55 = vmul.f32 %v11356_v46, %v11356_v46  ;;  %v5213_v54 = vld [vmem:[#allocation14 + $0x58] sm:$0xff] }
 0xc0f   : > { %v11363_v21 = vsub.f32 %v11284_v35, %v4790_v3  ;;  %4847 = vadd.xlane.f32.xlu1 %v4820_v20  ;;  %v5212_v3 = vld [vmem:[#allocation14 + $0x50] sm:$0xff]  ;;  %p8920_p3 = pnand %p8919_p11, %p8913_p7 }
 0xc10   : > { %v11366_v61 = vsub.f32 %v11287_v30, %v4789_v2  ;;  %v4775_v59 = vpop.xlane.xlu1 %4774  ;;  %4845 = vadd.xlane.f32.xlu0 %v4819_v55  ;;  %v5230_v55 = vld [vmem:[#allocation14 + $0xe0] sm:$0xff] }
 0xc11   : > { %v4792_v39 = vmul.f32 0.0078125, %v4775_v59  ;;  %v4773_v17 = vpop.xlane.xlu0 %4772  ;;  %v4822_v29 = vmul.f32 %v11363_v21, %v11363_v21  ;;  %v5231_v59 = vld [vmem:[#allocation14 + $0xe8] sm:$0xff] }
 0xc12   : > { %v4791_v50 = vmul.f32 0.0078125, %v4773_v17  ;;  %v4821_v36 = vmul.f32 %v11366_v61, %v11366_v61 }
 0xc13   : > { %v11373_v41 = vsub.f32 %v11294_v27, %v4792_v39  ;;  %4851 = vadd.xlane.f32.xlu1 %v4822_v29  ;;  %v5220_v27 = vld [vmem:[#allocation14 + $0x90] sm:$0xff]  ;;  %v11412_v29 = vpack.c.bf16 %v5213_v54, %v5212_v3 }
 0xc14   : > { %v11376_v35 = vsub.f32 %v11297_v34, %v4791_v50  ;;  %4849 = vadd.xlane.f32.xlu0 %v4821_v36  ;;  %v11384_v34 = vpack.c.bf16 %v5221_v58, %v5220_v27 }
 0xc15   : > { %v4824_v30 = vmul.f32 %v11373_v41, %v11373_v41 }
 0xc16   : > { %v4823_v4 = vmul.f32 %v11376_v35, %v11376_v35  ;;  %7916 = vmatprep.subr.bf16.mxu1 %v11384_v34 }
 0xc17   : > { %4855 = vadd.xlane.f32.xlu1 %v4824_v30  ;;  %7924 = vmatpush3.bf16.msra.mxu1 %v11388_v26  ;;  %v11414_v30 = vpack.c.bf16 %v5231_v59, %v5230_v55 }
 0xc18   : > { %4853 = vadd.xlane.f32.xlu0 %v4823_v4  ;;  %7917 = vmatprep.subr.bf16.mxu1 %v11390_v8 }
 0xc1b   : > { %7925 = vmatpush3.bf16.msra.mxu1 %v11394_v40 }
 0xc1c   : > { %7918 = vmatprep.subr.bf16.mxu1 %v11396_v37 }
 0xc1f   : > { %7926 = vmatpush3.bf16.msra.mxu1 %v11400_v53 }
 0xc20   : > { %7919 = vmatprep.subr.bf16.mxu1 %v11402_v24 }
 0xc23   : > { %7927 = vmatpush3.bf16.msra.mxu1 %v11406_v49 }
 0xc24   : > { %7920 = vmatprep.subr.bf16.mxu1 %v11408_v10 }
 0xc27   : > { %7928 = vmatpush3.bf16.msra.mxu1 %v11412_v29 }
 0xc28   : > { %7921 = vmatprep.subr.bf16.mxu1 %v11414_v30 }
 0xc61   : > { %v4828_v18 = vpop.xlane.xlu1 %4827 }
 0xc62   : > { %v4858_v20 = vmul.f32 0.0078125, %v4828_v18  ;;  %v4826_v2 = vpop.xlane.xlu0 %4825 }
 0xc63   : > { %v4857_v39 = vmul.f32 0.0078125, %v4826_v2 }
 0xc64   : > { %v4874_v17 = vadd.f32 1e-06, %v4858_v20 }
 0xc65   : > { %v4873_v50 = vadd.f32 1e-06, %v4857_v39  ;;  %v4832_v36 = vpop.xlane.xlu1 %4831 }
 0xc66   : > { %8602 = vrsqrt.f32 %v4874_v17  ;;  %v4860_v4 = vmul.f32 0.0078125, %v4832_v36  ;;  %v4830_v0 = vpop.xlane.xlu0 %4829 }
 0xc67   : > { %8604 = vrsqrt.f32 %v4873_v50  ;;  %v4859_v12 = vmul.f32 0.0078125, %v4830_v0 }
 0xc68   : > { %v4876_v48 = vadd.f32 1e-06, %v4860_v4 }
 0xc69   : > { %v4875_v42 = vadd.f32 1e-06, %v4859_v12  ;;  %v4836_v13 = vpop.xlane.xlu1 %4835 }
 0xc6a   : > { %v4834_v27 = vpop.xlane.xlu0 %4833  ;;  %v4862_v6 = vmul.f32 0.0078125, %v4836_v13 }
 0xc6b   : > { %8606 = vrsqrt.f32 %v4875_v42  ;;  %v4861_v58 = vmul.f32 0.0078125, %v4834_v27 }
 0xc6c   : > { %8608 = vrsqrt.f32 %v4876_v48  ;;  %v4878_v7 = vadd.f32 1e-06, %v4862_v6 }
 0xc6d   : > { %v4877_v47 = vadd.f32 1e-06, %v4861_v58 }
 0xc6f   : > { %8610 = vrsqrt.f32 %v4877_v47 }
 0xc70   : > { %v8603_v44 = vpop.eup %8602  ;;  %8612 = vrsqrt.f32 %v4878_v7 }
 0xc71   : > { %v8605_v15 = vpop.eup %8604  ;;  %v4906_v51 = vmul.f32 %v8603_v44, %v11302_v28 }
 0xc72   : > { %v4905_v19 = vmul.f32 %v8605_v15, %v11305_v45 }
 0xc73   : > { %v4928_v25 = vmul.f32 %v11421_v33, %v4906_v51 }
 0xc74   : > { %v4927_v22 = vmul.f32 %v11421_v33, %v4905_v19 }
 0xc75   : > { %v8607_v63 = vpop.eup %8606  ;;  %v11440_v28 = vadd.f32 %v11428_v9, %v4928_v25 }
 0xc76   : > { %v11432_v31 = vadd.f32 %v11428_v9, %v4927_v22  ;;  %v4907_v52 = vmul.f32 %v8607_v63, %v11315_v62  ;;  %v8609_v32 = vpop.eup %8608 }
 0xc77   : > { %v4908_v23 = vmul.f32 %v8609_v32, %v11312_v56 }
 0xc78   : > { %5074 = vmatmul.mubr.f32.vlgmr.msra.gmra.mrb[96].mxu0 %v11432_v31  ;;  %v4929_v45 = vmul.f32 %v11421_v33, %v4907_v52 }
 0xc79   : > { %5079 = vmatprep.mubr.f32.mxu0 %v9045_v43  ;;  %7886 = vmatpush3.bf16.msra.mxu0 %v11382_v11  ;;  %v8611_v18 = vpop.eup %8610  ;;  %v4930_v11 = vmul.f32 %v11421_v33, %v4908_v23 }
 0xc7a   : > { %7888 = vmatprep.subr.bf16.mxu0 %v11384_v34  ;;  %v11449_v62 = vadd.f32 %v11428_v9, %v4929_v45  ;;  %v4909_v3 = vmul.f32 %v8611_v18, %v11325_v5  ;;  %v8613_v54 = vpop.eup %8612 }
 0xc7b   : > { %v11458_v56 = vadd.f32 %v11428_v9, %v4930_v11 }
 0xc7c   : > { %5080 = vmatmul.mubr.f32.gmra.mrb[98].mxu0 %v11440_v28  ;;  %v4931_v34 = vmul.f32 %v11421_v33, %v4909_v3 }
 0xc7d   : > { %5085 = vmatprep.mubr.f32.mxu0 %v9045_v43  ;;  %7890 = vmatpush3.bf16.msra.mxu0 %v11388_v26  ;;  %v4910_v26 = vmul.f32 %v8613_v54, %v11322_v38 }
 0xc7e   : > { %7892 = vmatprep.subr.bf16.mxu0 %v11390_v8  ;;  %v11467_v5 = vadd.f32 %v11428_v9, %v4931_v34 }
 0xc7f   : > { %v4932_v8 = vmul.f32 %v11421_v33, %v4910_v26 }
 0xc80   : > { %5086 = vmatmul.mubr.f32.gmra.mrb[100].mxu0 %v11449_v62 }
 0xc81   : > { %5091 = vmatprep.mubr.f32.mxu0 %v9045_v43  ;;  %7894 = vmatpush3.bf16.msra.mxu0 %v11394_v40  ;;  %v11475_v38 = vadd.f32 %v11428_v9, %v4932_v8 }
 0xc82   : > { %7896 = vmatprep.subr.bf16.mxu0 %v11396_v37 }
 0xc84   : > { %5092 = vmatmul.mubr.f32.gmra.mrb[102].mxu0 %v11458_v56 }
 0xc85   : > { %5097 = vmatprep.mubr.f32.mxu0 %v9045_v43  ;;  %7898 = vmatpush3.bf16.msra.mxu0 %v11400_v53 }
 0xc86   : > { %7900 = vmatprep.subr.bf16.mxu0 %v11402_v24 }
 0xc88   : > { %5098 = vmatmul.mubr.f32.gmra.mrb[104].mxu0 %v11467_v5 }
 0xc89   : > { %5103 = vmatprep.mubr.f32.mxu0 %v9045_v43  ;;  %7902 = vmatpush3.bf16.msra.mxu0 %v11406_v49 }
 0xc8a   : > { %7904 = vmatprep.subr.bf16.mxu0 %v11408_v10 }
 0xc8c   : > { %5104 = vmatmul.mubr.f32.gmra.mrb[106].mxu0 %v11475_v38 }
 0xc8d   : > { %5109 = vmatprep.mubr.f32.mxu0 %v9045_v43  ;;  %7906 = vmatpush3.bf16.msra.mxu0 %v11412_v29 }
 0xc8e   : > { %7908 = vmatprep.subr.bf16.mxu0 %v11414_v30 }
 0xc93   : > { %v4840_v40 = vpop.xlane.xlu1 %4839 }
 0xc94   : > { %v4864_v37 = vmul.f32 0.0078125, %v4840_v40  ;;  %v4838_v53 = vpop.xlane.xlu0 %4837 }
 0xc95   : > { %v4863_v24 = vmul.f32 0.0078125, %v4838_v53 }
 0xc96   : > { %v4880_v20 = vadd.f32 1e-06, %v4864_v37 }
 0xc97   : > { %v4879_v2 = vadd.f32 1e-06, %v4863_v24 }
 0xc98   : > { %8614 = vrsqrt.f32 %v4880_v20  ;;  %v4844_v49 = vpop.xlane.xlu1 %4843 }
 0xc99   : > { %8616 = vrsqrt.f32 %v4879_v2  ;;  %v4866_v55 = vmul.f32 0.0078125, %v4844_v49  ;;  %v4842_v59 = vpop.xlane.xlu0 %4841 }
 0xc9a   : > { %v4865_v10 = vmul.f32 0.0078125, %v4842_v59 }
 0xc9b   : > { %v4882_v39 = vadd.f32 1e-06, %v4866_v55 }
 0xc9c   : > { %v4881_v17 = vadd.f32 1e-06, %v4865_v10  ;;  %v4848_v50 = vpop.xlane.xlu1 %4847 }
 0xc9d   : > { %v4846_v36 = vpop.xlane.xlu0 %4845  ;;  %v4868_v30 = vmul.f32 0.0078125, %v4848_v50 }
 0xc9e   : > { %8618 = vrsqrt.f32 %v4881_v17  ;;  %v4867_v29 = vmul.f32 0.0078125, %v4846_v36 }
 0xc9f   : > { %8620 = vrsqrt.f32 %v4882_v39  ;;  %v4884_v42 = vadd.f32 1e-06, %v4868_v30  ;;  %v5214_v30 = vld [vmem:[#allocation14 + $0x60] sm:$0xff] }
 0xca0   : > { %v4883_v4 = vadd.f32 1e-06, %v4867_v29  ;;  %v4852_v27 = vpop.xlane.xlu1 %4851 }
 0xca1   : > { %v4850_v0 = vpop.xlane.xlu0 %4849  ;;  %v4870_v44 = vmul.f32 0.0078125, %v4852_v27  ;;  %v5217_v27 = vld [vmem:[#allocation14 + $0x78] sm:$0xff] }
 0xca2   : > { %v8615_v12 = vpop.eup %8614  ;;  %8622 = vrsqrt.f32 %v4883_v4  ;;  %v4869_v13 = vmul.f32 0.0078125, %v4850_v0  ;;  %v5215_v4 = vld [vmem:[#allocation14 + $0x68] sm:$0xff] }
 0xca3   : > { %v8617_v48 = vpop.eup %8616  ;;  %v4912_v6 = vmul.f32 %v8615_v12, %v11333_v57  ;;  %8624 = vrsqrt.f32 %v4884_v42  ;;  %v7909_v0 = vpack.c.bf16 %v5215_v4, %v5214_v30 }
 0xca4   : > { %v4911_v58 = vmul.f32 %v8617_v48, %v11336_v14  ;;  %v4885_v15 = vadd.f32 1e-06, %v4869_v13  ;;  %v4886_v14 = vadd.f32 1e-06, %v4870_v44  ;;  %v4856_v52 = vpop.xlane.xlu1 %4855  ;;  %v5233_v48 = vld [vmem:[#allocation14 + $0xf8] sm:$0xff]  ;;  %v5216_v13 = vld [vmem:[#allocation14 + $0x70] sm:$0xff] }
 0xca5   : > { %v4854_v19 = vpop.xlane.xlu0 %4853  ;;  %v4934_v22 = vmul.f32 %v11421_v33, %v4912_v6  ;;  %7910 = vmatpush3.bf16.msra.mxu0 %v7909_v0  ;;  %7929 = vmatpush3.bf16.msra.mxu1 %v7909_v0 }
 0xca6   : > { %v4933_v47 = vmul.f32 %v11421_v33, %v4911_v58  ;;  %8626 = vrsqrt.f32 %v4885_v15  ;;  %v4871_v57 = vmul.f32 0.0078125, %v4854_v19  ;;  %v4999_v58 = vlaneseq }
 0xca7   : > { %v11493_v32 = vadd.f32 %v11428_v9, %v4934_v22  ;;  %8628 = vrsqrt.f32 %v4886_v14 }
 0xca8   : > { %v8619_v7 = vpop.eup %8618  ;;  %v11486_v51 = vadd.f32 %v11428_v9, %v4933_v47  ;;  %v4887_v11 = vadd.f32 1e-06, %v4871_v57  ;;  %v5000_v6 = vshrl.u32 %v4999_v58, 7 }
 0xca9   : > { %v8621_v63 = vpop.eup %8620  ;;  %v4913_v25 = vmul.f32 %v8619_v7, %v11346_v1  ;;  %v4872_v1 = vmul.f32 0.0078125, %v4856_v52 }
 0xcaa   : > { %5110 = vmatmul.mubr.f32.gmra.mrb[108].mxu0 %v11486_v51  ;;  %v4914_v23 = vmul.f32 %v8621_v63, %v11343_v16  ;;  %8630 = vrsqrt.f32 %v4887_v11  ;;  %v5005_v47 = vsub.s32 1, %v5000_v6 }
 0xcab   : > { %5115 = vmatprep.mubr.f32.mxu0 %v9045_v43  ;;  %v4935_v45 = vmul.f32 %v11421_v33, %v4913_v25  ;;  %v4888_v8 = vadd.f32 1e-06, %v4872_v1 }
 0xcac   : > { %v8623_v18 = vpop.eup %8622  ;;  %v4936_v54 = vmul.f32 %v11421_v33, %v4914_v23 }
 0xcad   : > { %v11500_v3 = vadd.f32 %v11428_v9, %v4935_v45  ;;  %v4915_v34 = vmul.f32 %v8623_v18, %v11356_v46  ;;  %v8625_v26 = vpop.eup %8624  ;;  %8632 = vrsqrt.f32 %v4888_v8 }
 0xcae   : > { %5116 = vmatmul.mubr.f32.gmra.mrb[110].mxu0 %v11493_v32  ;;  %v11507_v16 = vadd.f32 %v11428_v9, %v4936_v54  ;;  %v4916_v37 = vmul.f32 %v8625_v26, %v11353_v60 }
 0xcaf   : > { %5121 = vmatprep.mubr.f32.mxu0 %v9045_v43  ;;  %v4937_v40 = vmul.f32 %v11421_v33, %v4915_v34 }
 0xcb0   : > { %v8627_v53 = vpop.eup %8626  ;;  %v4938_v24 = vmul.f32 %v11421_v33, %v4916_v37 }
 0xcb1   : > { %v11514_v46 = vadd.f32 %v11428_v9, %v4937_v40  ;;  %v4917_v20 = vmul.f32 %v8627_v53, %v11366_v61  ;;  %v8629_v2 = vpop.eup %8628 }
 0xcb2   : > { %5122 = vmatmul.mubr.f32.gmra.mrb[112].mxu0 %v11500_v3  ;;  %v11521_v60 = vadd.f32 %v11428_v9, %v4938_v24  ;;  %v4918_v55 = vmul.f32 %v8629_v2, %v11363_v21 }
 0xcb3   : > { %5127 = vmatprep.mubr.f32.mxu0 %v9045_v43  ;;  %v4939_v49 = vmul.f32 %v11421_v33, %v4917_v20 }
 0xcb4   : > { %v8631_v59 = vpop.eup %8630  ;;  %v4940_v61 = vmul.f32 %v11421_v33, %v4918_v55 }
 0xcb5   : > { %v11528_v10 = vadd.f32 %v11428_v9, %v4939_v49  ;;  %v4919_v39 = vmul.f32 %v8631_v59, %v11376_v35 }
 0xcb6   : > { %5128 = vmatmul.mubr.f32.gmra.mrb[114].mxu0 %v11507_v16  ;;  %v11535_v50 = vadd.f32 %v11428_v9, %v4940_v61 }
 0xcb7   : > { %5133 = vmatprep.mubr.f32.mxu0 %v9045_v43  ;;  %v8633_v17 = vpop.eup %8632  ;;  %v4941_v21 = vmul.f32 %v11421_v33, %v4919_v39 }
 0xcb8   : > { %v4920_v36 = vmul.f32 %v8633_v17, %v11373_v41  ;;  %v5232_v41 = vld [vmem:[#allocation14 + $0xf0] sm:$0xff] }
 0xcb9   : > { %v11542_v29 = vadd.f32 %v11428_v9, %v4941_v21  ;;  %v7911_v42 = vpack.c.bf16 %v5233_v48, %v5232_v41 }
 0xcba   : > { %5134 = vmatmul.mubr.f32.gmra.mrb[116].mxu0 %v11514_v46  ;;  %v4942_v35 = vmul.f32 %v11421_v33, %v4920_v36  ;;  %v7913_v33 = vpack.c.bf16 %v5217_v27, %v5216_v13 }
 0xcbb   : > { %5139 = vmatprep.mubr.f32.mxu0 %v9045_v43  ;;  %7912 = vmatprep.subr.bf16.mxu0 %v7911_v42 }
 0xcbc   : > { %v11548_v12 = vadd.f32 %v11428_v9, %v4942_v35  ;;  %7922 = vmatprep.subr.bf16.mxu1 %v7911_v42  ;;  %7914 = vmatpush3.bf16.msra.mxu0 %v7913_v33  ;;  %v4997_v9 = vld [vmem:[%s12195_s17] sm:$0x3] }
 0xcbd   : > { %7930 = vmatpush3.bf16.msra.mxu1 %v7913_v33  ;;  %v11556_v15 = vrot.slane %v4997_v9, %v5005_v47 }
 0xcbe   : > { %5140 = vmatmul.mubr.f32.gmra.mrb[118].mxu0 %v11521_v60 }
 0xcbf   : > { %5145 = vmatprep.mubr.f32.mxu0 %v9045_v43 }
 0xcc2   : > { %5146 = vmatmul.mubr.f32.gmra.mrb[120].mxu0 %v11528_v10 }
 0xcc3   : > { %5151 = vmatprep.mubr.f32.mxu0 %v9045_v43 }
 0xcc6   : > { %5152 = vmatmul.mubr.f32.gmra.mrb[122].mxu0 %v11535_v50 }
 0xcc7   : > { %5157 = vmatprep.mubr.f32.mxu0 %v9045_v43 }
 0xcca   : > { %5158 = vmatmul.mubr.f32.gmra.mrb[124].mxu0 %v11542_v29 }
 0xccb   : > { %5163 = vmatprep.mubr.f32.mxu0 %v9045_v43  ;;  %v5001_v43 = vsub.s32 0, %v5000_v6 }
 0xccd   : > { %v11554_v44 = vrot.slane %v4997_v9, %v5001_v43 }
 0xcce   : > { %5164 = vmatmul.mubr.f32.gmra.mrb[126].mxu0 %v11548_v12 }
 0xd4b   : > { %v5075_v7 = vpop.f32.mrb[96].mxu0 }
 0xd4c   : > { %v5076_v19 = vadd.f32 %v5075_v7, %v11554_v44  ;;  %v5077_v22 = vpop.f32.mrb[97].mxu0 }
 0xd4d   : > { %v5078_v63 = vadd.f32 %v5077_v22, %v11556_v15 }
 0xd4e   : > { %v5170_v57 = vmax.f32 %v5076_v19, 0.0 }
 0xd4f   : > { %v5171_v25 = vmax.f32 %v5078_v63, 0.0  ;;  %v5081_v14 = vpop.f32.mrb[98].mxu0 }
 0xd50   : > { %v5082_v52 = vadd.f32 %v5081_v14, %v11554_v44  ;;  %v5083_v45 = vpop.f32.mrb[99].mxu0 }
 0xd51   : > { %v5084_v23 = vadd.f32 %v5083_v45, %v11556_v15  ;;  %5305 = vmatprep.mubr.f32.mxu0 %v5171_v25 }
 0xd52   : > { %5306 = vmatmul.mubr.f32.vlgmr.msra.gmra.mrb[128].mxu0 %v5170_v57  ;;  %v5172_v11 = vmax.f32 %v5082_v52, 0.0 }
 0xd53   : > { %v5173_v18 = vmax.f32 %v5084_v23, 0.0  ;;  %v5087_v1 = vpop.f32.mrb[100].mxu0 }
 0xd54   : > { %v5088_v54 = vadd.f32 %v5087_v1, %v11554_v44  ;;  %v5089_v34 = vpop.f32.mrb[101].mxu0 }
 0xd55   : > { %v5090_v26 = vadd.f32 %v5089_v34, %v11556_v15  ;;  %5310 = vmatprep.mubr.f32.mxu0 %v5173_v18 }
 0xd56   : > { %5311 = vmatmul.mubr.f32.gmra.mrb[130].mxu0 %v5172_v11  ;;  %v5174_v37 = vmax.f32 %v5088_v54, 0.0 }
 0xd57   : > { %v5175_v8 = vmax.f32 %v5090_v26, 0.0  ;;  %v5093_v40 = vpop.f32.mrb[102].mxu0 }
 0xd58   : > { %v5094_v53 = vadd.f32 %v5093_v40, %v11554_v44  ;;  %v5095_v24 = vpop.f32.mrb[103].mxu0 }
 0xd59   : > { %v5096_v20 = vadd.f32 %v5095_v24, %v11556_v15  ;;  %5315 = vmatprep.mubr.f32.mxu0 %v5175_v8 }
 0xd5a   : > { %5316 = vmatmul.mubr.f32.gmra.mrb[132].mxu0 %v5174_v37  ;;  %v5176_v55 = vmax.f32 %v5094_v53, 0.0 }
 0xd5b   : > { %v5177_v2 = vmax.f32 %v5096_v20, 0.0  ;;  %v5099_v49 = vpop.f32.mrb[104].mxu0 }
 0xd5c   : > { %v5100_v59 = vadd.f32 %v5099_v49, %v11554_v44  ;;  %v5101_v61 = vpop.f32.mrb[105].mxu0 }
 0xd5d   : > { %v5102_v39 = vadd.f32 %v5101_v61, %v11556_v15  ;;  %5320 = vmatprep.mubr.f32.mxu0 %v5177_v2 }
 0xd5e   : > { %5321 = vmatmul.mubr.f32.gmra.mrb[134].mxu0 %v5176_v55  ;;  %v5178_v36 = vmax.f32 %v5100_v59, 0.0 }
 0xd5f   : > { %v5179_v17 = vmax.f32 %v5102_v39, 0.0  ;;  %v5105_v21 = vpop.f32.mrb[106].mxu0 }
 0xd60   : > { %v5106_v35 = vadd.f32 %v5105_v21, %v11554_v44  ;;  %v5107_v30 = vpop.f32.mrb[107].mxu0 }
 0xd61   : > { %v5108_v4 = vadd.f32 %v5107_v30, %v11556_v15  ;;  %5325 = vmatprep.mubr.f32.mxu1 %v5179_v17 }
 0xd62   : > { %5326 = vmatmul.mubr.f32.vlgmr.msra.gmra.mrb[96].mxu1 %v5178_v36  ;;  %v5180_v41 = vmax.f32 %v5106_v35, 0.0 }
 0xd63   : > { %v5181_v0 = vmax.f32 %v5108_v4, 0.0 }
 0xd65   : > { %5330 = vmatprep.mubr.f32.mxu1 %v5181_v0 }
 0xd66   : > { %5331 = vmatmul.mubr.f32.gmra.mrb[98].mxu1 %v5180_v41 }
 0xd7d   : > { %v5111_v48 = vpop.f32.mrb[108].mxu0 }
 0xd7e   : > { %v5112_v42 = vadd.f32 %v5111_v48, %v11554_v44  ;;  %v5113_v13 = vpop.f32.mrb[109].mxu0 }
 0xd7f   : > { %v5114_v27 = vadd.f32 %v5113_v13, %v11556_v15 }
 0xd80   : > { %v5182_v6 = vmax.f32 %v5112_v42, 0.0 }
 0xd81   : > { %v5183_v33 = vmax.f32 %v5114_v27, 0.0  ;;  %v5117_v58 = vpop.f32.mrb[110].mxu0 }
 0xd82   : > { %v5118_v43 = vadd.f32 %v5117_v58, %v11554_v44  ;;  %v5119_v9 = vpop.f32.mrb[111].mxu0 }
 0xd83   : > { %v5120_v47 = vadd.f32 %v5119_v9, %v11556_v15  ;;  %5335 = vmatprep.mubr.f32.mxu1 %v5183_v33 }
 0xd84   : > { %5336 = vmatmul.mubr.f32.gmra.mrb[100].mxu1 %v5182_v6  ;;  %v5184_v22 = vmax.f32 %v5118_v43, 0.0 }
 0xd85   : > { %v5185_v7 = vmax.f32 %v5120_v47, 0.0  ;;  %v5123_v19 = vpop.f32.mrb[112].mxu0 }
 0xd86   : > { %v5124_v63 = vadd.f32 %v5123_v19, %v11554_v44  ;;  %v5125_v25 = vpop.f32.mrb[113].mxu0 }
 0xd87   : > { %v5126_v14 = vadd.f32 %v5125_v25, %v11556_v15  ;;  %5340 = vmatprep.mubr.f32.mxu1 %v5185_v7 }
 0xd88   : > { %5341 = vmatmul.mubr.f32.gmra.mrb[102].mxu1 %v5184_v22  ;;  %v5186_v45 = vmax.f32 %v5124_v63, 0.0 }
 0xd89   : > { %v5187_v57 = vmax.f32 %v5126_v14, 0.0  ;;  %v5129_v52 = vpop.f32.mrb[114].mxu0  ;;  %v11593_v14 = vld [vmem:[%s12196_s10] ss:$0 sm:$0xff] }
 0xd8a   : > { %v5130_v23 = vadd.f32 %v5129_v52, %v11554_v44  ;;  %v5131_v18 = vpop.f32.mrb[115].mxu0 }
 0xd8b   : > { %v5132_v1 = vadd.f32 %v5131_v18, %v11556_v15  ;;  %5345 = vmatprep.mubr.f32.mxu1 %v5187_v57 }
 0xd8c   : > { %5346 = vmatmul.mubr.f32.gmra.mrb[104].mxu1 %v5186_v45  ;;  %v5188_v34 = vmax.f32 %v5130_v23, 0.0 }
 0xd8d   : > { %v5189_v11 = vmax.f32 %v5132_v1, 0.0  ;;  %v5135_v54 = vpop.f32.mrb[116].mxu0 }
 0xd8e   : > { %v5136_v26 = vadd.f32 %v5135_v54, %v11554_v44  ;;  %v5137_v8 = vpop.f32.mrb[117].mxu0 }
 0xd8f   : > { %v5138_v40 = vadd.f32 %v5137_v8, %v11556_v15  ;;  %5350 = vmatprep.mubr.f32.mxu1 %v5189_v11 }
 0xd90   : > { %5351 = vmatmul.mubr.f32.gmra.mrb[106].mxu1 %v5188_v34  ;;  %v5190_v24 = vmax.f32 %v5136_v26, 0.0 }
 0xd91   : > { %v5191_v37 = vmax.f32 %v5138_v40, 0.0  ;;  %v5141_v53 = vpop.f32.mrb[118].mxu0 }
 0xd92   : > { %v5142_v20 = vadd.f32 %v5141_v53, %v11554_v44  ;;  %v5143_v2 = vpop.f32.mrb[119].mxu0 }
 0xd93   : > { %v5144_v49 = vadd.f32 %v5143_v2, %v11556_v15  ;;  %5355 = vmatprep.mubr.f32.mxu1 %v5191_v37 }
 0xd94   : > { %5356 = vmatmul.mubr.f32.gmra.mrb[108].mxu1 %v5190_v24  ;;  %v5192_v61 = vmax.f32 %v5142_v20, 0.0 }
 0xd95   : > { %v5193_v55 = vmax.f32 %v5144_v49, 0.0  ;;  %v5147_v59 = vpop.f32.mrb[120].mxu0 }
 0xd96   : > { %v5148_v39 = vadd.f32 %v5147_v59, %v11554_v44  ;;  %v5149_v17 = vpop.f32.mrb[121].mxu0 }
 0xd97   : > { %v5150_v21 = vadd.f32 %v5149_v17, %v11556_v15  ;;  %5360 = vmatprep.mubr.f32.mxu1 %v5193_v55 }
 0xd98   : > { %5361 = vmatmul.mubr.f32.gmra.mrb[110].mxu1 %v5192_v61  ;;  %v5194_v30 = vmax.f32 %v5148_v39, 0.0 }
 0xd99   : > { %v5195_v36 = vmax.f32 %v5150_v21, 0.0  ;;  %v5153_v35 = vpop.f32.mrb[122].mxu0 }
 0xd9a   : > { %v5154_v4 = vadd.f32 %v5153_v35, %v11554_v44  ;;  %v5155_v0 = vpop.f32.mrb[123].mxu0 }
 0xd9b   : > { %v5156_v41 = vadd.f32 %v5155_v0, %v11556_v15  ;;  %5365 = vmatprep.mubr.f32.mxu1 %v5195_v36 }
 0xd9c   : > { %5366 = vmatmul.mubr.f32.gmra.mrb[112].mxu1 %v5194_v30  ;;  %v5196_v13 = vmax.f32 %v5154_v4, 0.0 }
 0xd9d   : > { %v5197_v48 = vmax.f32 %v5156_v41, 0.0  ;;  %v5159_v42 = vpop.f32.mrb[124].mxu0 }
 0xd9e   : > { %v5160_v27 = vadd.f32 %v5159_v42, %v11554_v44  ;;  %v5161_v33 = vpop.f32.mrb[125].mxu0 }
 0xd9f   : > { %v5162_v58 = vadd.f32 %v5161_v33, %v11556_v15  ;;  %5370 = vmatprep.mubr.f32.mxu1 %v5197_v48 }
 0xda0   : > { %5371 = vmatmul.mubr.f32.gmra.mrb[114].mxu1 %v5196_v13  ;;  %v5198_v9 = vmax.f32 %v5160_v27, 0.0 }
 0xda1   : > { %v5199_v6 = vmax.f32 %v5162_v58, 0.0  ;;  %v5165_v43 = vpop.f32.mrb[126].mxu0 }
 0xda2   : > { %v5166_v47 = vadd.f32 %v5165_v43, %v11554_v44  ;;  %v5167_v7 = vpop.f32.mrb[127].mxu0 }
 0xda3   : > { %v5168_v19 = vadd.f32 %v5167_v7, %v11556_v15  ;;  %5375 = vmatprep.mubr.f32.mxu1 %v5199_v6 }
 0xda4   : > { %5376 = vmatmul.mubr.f32.gmra.mrb[116].mxu1 %v5198_v9  ;;  %v5200_v63 = vmax.f32 %v5166_v47, 0.0 }
 0xda5   : > { %v5201_v22 = vmax.f32 %v5168_v19, 0.0 }
 0xda7   : > { %5380 = vmatprep.mubr.f32.mxu1 %v5201_v22 }
 0xda8   : > { %5381 = vmatmul.mubr.f32.gmra.mrb[118].mxu1 %v5200_v63 }
 0xe25   : > { %v6611_v25 = vpop.f32.mrb[128].mxu0 }
 0xe26   : > { %v6612_v57 = vpop.f32.mrb[129].mxu0 }
 0xe27   : > { %v6613_v52 = vadd.f32 %v6612_v57, %v6611_v25 }
 0xe29   : > { %v5308_v45 = vadd.f32 %v6613_v52, %v11593_v14  ;;  %v6614_v44 = vpop.f32.mrb[130].mxu0 }
 0xe2a   : > { %v6615_v23 = vpop.f32.mrb[131].mxu0 }
 0xe2b   : > { %v6616_v18 = vadd.f32 %v6615_v23, %v6614_v44  ;;  %v11597_v15 = vadd.f32 %v5308_v45, %v11432_v31 }
 0xe2d   : > { %v5313_v1 = vadd.f32 %v6616_v18, %v11593_v14  ;;  %v6617_v11 = vpop.f32.mrb[132].mxu0  ;;  %5404 = vadd.xlane.f32.xlu0 %v11597_v15 }
 0xe2e   : > { %v6618_v54 = vpop.f32.mrb[133].mxu0 }
 0xe2f   : > { %v6619_v34 = vadd.f32 %v6618_v54, %v6617_v11  ;;  %v11602_v26 = vadd.f32 %v5313_v1, %v11440_v28 }
 0xe31   : > { %v5318_v8 = vadd.f32 %v6619_v34, %v11593_v14  ;;  %v6620_v40 = vpop.f32.mrb[134].mxu0  ;;  %5406 = vadd.xlane.f32.xlu1 %v11602_v26 }
 0xe32   : > { %v6621_v37 = vpop.f32.mrb[135].mxu0 }
 0xe33   : > { %v6622_v53 = vadd.f32 %v6621_v37, %v6620_v40  ;;  %v11607_v31 = vadd.f32 %v5318_v8, %v11449_v62 }
 0xe35   : > { %v5323_v24 = vadd.f32 %v6622_v53, %v11593_v14  ;;  %v6623_v20 = vpop.f32.mrb[96].mxu1  ;;  %5408 = vadd.xlane.f32.xlu0 %v11607_v31 }
 0xe36   : > { %v6624_v2 = vpop.f32.mrb[97].mxu1 }
 0xe37   : > { %v6625_v49 = vadd.f32 %v6624_v2, %v6623_v20  ;;  %v11612_v28 = vadd.f32 %v5323_v24, %v11458_v56 }
 0xe39   : > { %v5328_v55 = vadd.f32 %v6625_v49, %v11593_v14  ;;  %v6626_v59 = vpop.f32.mrb[98].mxu1  ;;  %5410 = vadd.xlane.f32.xlu1 %v11612_v28 }
 0xe3a   : > { %v6627_v61 = vpop.f32.mrb[99].mxu1 }
 0xe3b   : > { %v6628_v39 = vadd.f32 %v6627_v61, %v6626_v59  ;;  %v11617_v62 = vadd.f32 %v5328_v55, %v11467_v5 }
 0xe3d   : > { %v5333_v17 = vadd.f32 %v6628_v39, %v11593_v14  ;;  %5412 = vadd.xlane.f32.xlu0 %v11617_v62 }
 0xe3f   : > { %v11622_v21 = vadd.f32 %v5333_v17, %v11475_v38 }
 0xe41   : > { %5414 = vadd.xlane.f32.xlu1 %v11622_v21 }
 0xe57   : > { %v6629_v56 = vpop.f32.mrb[100].mxu1 }
 0xe58   : > { %v6630_v36 = vpop.f32.mrb[101].mxu1 }
 0xe59   : > { %v6631_v35 = vadd.f32 %v6630_v36, %v6629_v56 }
 0xe5b   : > { %v5338_v30 = vadd.f32 %v6631_v35, %v11593_v14  ;;  %v6632_v4 = vpop.f32.mrb[102].mxu1 }
 0xe5c   : > { %v6633_v0 = vpop.f32.mrb[103].mxu1 }
 0xe5d   : > { %v6634_v41 = vadd.f32 %v6633_v0, %v6632_v4  ;;  %v11627_v5 = vadd.f32 %v5338_v30, %v11486_v51 }
 0xe5f   : > { %v5343_v48 = vadd.f32 %v6634_v41, %v11593_v14  ;;  %v6635_v42 = vpop.f32.mrb[104].mxu1  ;;  %5416 = vadd.xlane.f32.xlu0 %v11627_v5 }
 0xe60   : > { %v6636_v38 = vpop.f32.mrb[105].mxu1 }
 0xe61   : > { %v6637_v13 = vadd.f32 %v6636_v38, %v6635_v42  ;;  %v11632_v27 = vadd.f32 %v5343_v48, %v11493_v32 }
 0xe63   : > { %v5348_v33 = vadd.f32 %v6637_v13, %v11593_v14  ;;  %v6638_v58 = vpop.f32.mrb[106].mxu1  ;;  %5418 = vadd.xlane.f32.xlu1 %v11632_v27 }
 0xe64   : > { %v6639_v6 = vpop.f32.mrb[107].mxu1 }
 0xe65   : > { %v6640_v43 = vadd.f32 %v6639_v6, %v6638_v58  ;;  %v11637_v51 = vadd.f32 %v5348_v33, %v11500_v3 }
 0xe67   : > { %v5353_v9 = vadd.f32 %v6640_v43, %v11593_v14  ;;  %v6641_v47 = vpop.f32.mrb[108].mxu1  ;;  %5420 = vadd.xlane.f32.xlu0 %v11637_v51 }
 0xe68   : > { %v6642_v7 = vpop.f32.mrb[109].mxu1 }
 0xe69   : > { %v6643_v19 = vadd.f32 %v6642_v7, %v6641_v47  ;;  %v11642_v32 = vadd.f32 %v5353_v9, %v11507_v16 }
 0xe6b   : > { %v5358_v22 = vadd.f32 %v6643_v19, %v11593_v14  ;;  %v6644_v63 = vpop.f32.mrb[110].mxu1  ;;  %5422 = vadd.xlane.f32.xlu1 %v11642_v32 }
 0xe6c   : > { %v6645_v25 = vpop.f32.mrb[111].mxu1 }
 0xe6d   : > { %v6646_v57 = vadd.f32 %v6645_v25, %v6644_v63  ;;  %v11647_v3 = vadd.f32 %v5358_v22, %v11514_v46 }
 0xe6f   : > { %v5363_v52 = vadd.f32 %v6646_v57, %v11593_v14  ;;  %v6647_v45 = vpop.f32.mrb[112].mxu1  ;;  %5424 = vadd.xlane.f32.xlu0 %v11647_v3 }
 0xe70   : > { %v6648_v44 = vpop.f32.mrb[113].mxu1 }
 0xe71   : > { %v6649_v23 = vadd.f32 %v6648_v44, %v6647_v45  ;;  %v11652_v16 = vadd.f32 %v5363_v52, %v11521_v60 }
 0xe73   : > { %v5368_v18 = vadd.f32 %v6649_v23, %v11593_v14  ;;  %v6650_v1 = vpop.f32.mrb[114].mxu1  ;;  %5426 = vadd.xlane.f32.xlu1 %v11652_v16 }
 0xe74   : > { %v6651_v11 = vpop.f32.mrb[115].mxu1 }
 0xe75   : > { %v6652_v54 = vadd.f32 %v6651_v11, %v6650_v1  ;;  %v11657_v46 = vadd.f32 %v5368_v18, %v11528_v10 }
 0xe77   : > { %v5373_v34 = vadd.f32 %v6652_v54, %v11593_v14  ;;  %5428 = vadd.xlane.f32.xlu0 %v11657_v46  ;;  %v6653_v8 = vpop.f32.mrb[116].mxu1 }
 0xe78   : > { %v6654_v40 = vpop.f32.mrb[117].mxu1 }
 0xe79   : > { %v6655_v37 = vadd.f32 %v6654_v40, %v6653_v8  ;;  %v11662_v60 = vadd.f32 %v5373_v34, %v11535_v50 }
 0xe7b   : > { %v5378_v53 = vadd.f32 %v6655_v37, %v11593_v14  ;;  %5430 = vadd.xlane.f32.xlu1 %v11662_v60  ;;  %v6656_v24 = vpop.f32.mrb[118].mxu1 }
 0xe7c   : > { %v6657_v20 = vpop.f32.mrb[119].mxu1 }
 0xe7d   : > { %v6658_v2 = vadd.f32 %v6657_v20, %v6656_v24  ;;  %v11667_v10 = vadd.f32 %v5378_v53, %v11542_v29 }
 0xe7f   : > { %v5383_v49 = vadd.f32 %v6658_v2, %v11593_v14  ;;  %5432 = vadd.xlane.f32.xlu0 %v11667_v10 }
 0xe81   : > { %v11672_v55 = vadd.f32 %v5383_v49, %v11548_v12 }
 0xe83   : > { %5434 = vadd.xlane.f32.xlu1 %v11672_v55 }
 0xeba   : > { %v5405_v50 = vpop.xlane.xlu0 %5404 }
 0xebb   : > { %v5436_v59 = vmul.f32 0.0078125, %v5405_v50 }
 0xebd   : > { %v11676_v61 = vsub.f32 %v11597_v15, %v5436_v59 }
 0xebe   : > { %v5407_v39 = vpop.xlane.xlu1 %5406 }
 0xebf   : > { %v5437_v17 = vmul.f32 0.0078125, %v5407_v39  ;;  %v5468_v29 = vmul.f32 %v11676_v61, %v11676_v61 }
 0xec1   : > { %v11681_v56 = vsub.f32 %v11602_v26, %v5437_v17  ;;  %5484 = vadd.xlane.f32.xlu0 %v5468_v29 }
 0xec2   : > { %v5409_v14 = vpop.xlane.xlu0 %5408 }
 0xec3   : > { %v5438_v36 = vmul.f32 0.0078125, %v5409_v14  ;;  %v5469_v12 = vmul.f32 %v11681_v56, %v11681_v56 }
 0xec5   : > { %v11686_v35 = vsub.f32 %v11607_v31, %v5438_v36  ;;  %5486 = vadd.xlane.f32.xlu1 %v5469_v12 }
 0xec6   : > { %v5411_v15 = vpop.xlane.xlu1 %5410 }
 0xec7   : > { %v5439_v30 = vmul.f32 0.0078125, %v5411_v15  ;;  %v5470_v4 = vmul.f32 %v11686_v35, %v11686_v35 }
 0xec9   : > { %v11691_v0 = vsub.f32 %v11612_v28, %v5439_v30  ;;  %5488 = vadd.xlane.f32.xlu0 %v5470_v4 }
 0xeca   : > { %v5413_v26 = vpop.xlane.xlu0 %5412 }
 0xecb   : > { %v5440_v41 = vmul.f32 0.0078125, %v5413_v26  ;;  %v5471_v48 = vmul.f32 %v11691_v0, %v11691_v0 }
 0xecd   : > { %v11696_v42 = vsub.f32 %v11617_v62, %v5440_v41  ;;  %5490 = vadd.xlane.f32.xlu1 %v5471_v48 }
 0xece   : > { %v5415_v31 = vpop.xlane.xlu1 %5414 }
 0xecf   : > { %v5441_v38 = vmul.f32 0.0078125, %v5415_v31  ;;  %v5472_v13 = vmul.f32 %v11696_v42, %v11696_v42 }
 0xed1   : > { %v11701_v33 = vsub.f32 %v11622_v21, %v5441_v38  ;;  %5492 = vadd.xlane.f32.xlu0 %v5472_v13 }
 0xed3   : > { %v5473_v28 = vmul.f32 %v11701_v33, %v11701_v33 }
 0xed5   : > { %5494 = vadd.xlane.f32.xlu1 %v5473_v28 }
 0xeec   : > { %v5417_v58 = vpop.xlane.xlu0 %5416 }
 0xeed   : > { %v5442_v6 = vmul.f32 0.0078125, %v5417_v58 }
 0xeef   : > { %v11706_v43 = vsub.f32 %v11627_v5, %v5442_v6 }
 0xef0   : > { %v5419_v62 = vpop.xlane.xlu1 %5418 }
 0xef1   : > { %v5443_v9 = vmul.f32 0.0078125, %v5419_v62  ;;  %v5474_v47 = vmul.f32 %v11706_v43, %v11706_v43 }
 0xef3   : > { %v11711_v7 = vsub.f32 %v11632_v27, %v5443_v9  ;;  %5496 = vadd.xlane.f32.xlu0 %v5474_v47 }
 0xef4   : > { %v5421_v21 = vpop.xlane.xlu0 %5420 }
 0xef5   : > { %v5444_v19 = vmul.f32 0.0078125, %v5421_v21  ;;  %v5475_v22 = vmul.f32 %v11711_v7, %v11711_v7 }
 0xef7   : > { %v11716_v63 = vsub.f32 %v11637_v51, %v5444_v19  ;;  %5498 = vadd.xlane.f32.xlu1 %v5475_v22 }
 0xef8   : > { %v5423_v5 = vpop.xlane.xlu1 %5422 }
 0xef9   : > { %v5445_v25 = vmul.f32 0.0078125, %v5423_v5  ;;  %v5476_v57 = vmul.f32 %v11716_v63, %v11716_v63 }
 0xefb   : > { %v11721_v52 = vsub.f32 %v11642_v32, %v5445_v25  ;;  %5500 = vadd.xlane.f32.xlu0 %v5476_v57 }
 0xefc   : > { %v5425_v27 = vpop.xlane.xlu0 %5424 }
 0xefd   : > { %v5446_v45 = vmul.f32 0.0078125, %v5425_v27  ;;  %v5477_v44 = vmul.f32 %v11721_v52, %v11721_v52 }
 0xeff   : > { %v11726_v23 = vsub.f32 %v11647_v3, %v5446_v45  ;;  %5502 = vadd.xlane.f32.xlu1 %v5477_v44 }
 0xf00   : > { %v5427_v51 = vpop.xlane.xlu1 %5426 }
 0xf01   : > { %v5447_v18 = vmul.f32 0.0078125, %v5427_v51  ;;  %v5478_v1 = vmul.f32 %v11726_v23, %v11726_v23 }
 0xf03   : > { %v11731_v11 = vsub.f32 %v11652_v16, %v5447_v18  ;;  %5504 = vadd.xlane.f32.xlu0 %v5478_v1 }
 0xf04   : > { %v5429_v32 = vpop.xlane.xlu0 %5428 }
 0xf05   : > { %v5448_v54 = vmul.f32 0.0078125, %v5429_v32  ;;  %v5479_v34 = vmul.f32 %v11731_v11, %v11731_v11 }
 0xf07   : > { %v11736_v8 = vsub.f32 %v11657_v46, %v5448_v54  ;;  %5506 = vadd.xlane.f32.xlu1 %v5479_v34 }
 0xf08   : > { %v5431_v3 = vpop.xlane.xlu1 %5430 }
 0xf09   : > { %v5449_v40 = vmul.f32 0.0078125, %v5431_v3  ;;  %v5480_v37 = vmul.f32 %v11736_v8, %v11736_v8 }
 0xf0b   : > { %v11741_v16 = vsub.f32 %v11662_v60, %v5449_v40  ;;  %5508 = vadd.xlane.f32.xlu0 %v5480_v37 }
 0xf0c   : > { %v5433_v53 = vpop.xlane.xlu0 %5432 }
 0xf0d   : > { %v5450_v24 = vmul.f32 0.0078125, %v5433_v53  ;;  %v5481_v20 = vmul.f32 %v11741_v16, %v11741_v16 }
 0xf0f   : > { %v11746_v46 = vsub.f32 %v11667_v10, %v5450_v24  ;;  %5510 = vadd.xlane.f32.xlu1 %v5481_v20 }
 0xf10   : > { %v5435_v2 = vpop.xlane.xlu1 %5434 }
 0xf11   : > { %v5451_v49 = vmul.f32 0.0078125, %v5435_v2  ;;  %v5482_v50 = vmul.f32 %v11746_v46, %v11746_v46 }
 0xf13   : > { %v11751_v60 = vsub.f32 %v11672_v55, %v5451_v49  ;;  %5512 = vadd.xlane.f32.xlu0 %v5482_v50 }
 0xf15   : > { %v5483_v59 = vmul.f32 %v11751_v60, %v11751_v60 }
 0xf17   : > { %5514 = vadd.xlane.f32.xlu1 %v5483_v59 }
 0xf18   : > { %8923 = shalt.err (!%p8920_p3)
}
 0xf19   : > { %s8924_s25 = scalar_lea.hbm %s11760_s15, 8192  ;;  %s8928_s1 = scalar_lea.hbm %s12197_s13, 16384 }
 0xf1a   : > { %p8925_p12 = scmp.ne.s32.totalorder %s11760_s15, %s8924_s25  ;;  %p8929_p0 = scmp.lt.u32.totalorder %s11760_s15, %s12197_s13 }
 0xf1b   : > { %p8930_p6 = scmp.lt.u32.totalorder %s8928_s1, %s8924_s25  ;;  %p8932_p4 = scmp.lt.u32.totalorder %s8924_s25, %s11760_s15 }
 0xf1c   : > { %p8926_p1 = pnand %p8925_p12, %p12198_p10 }
 0xf1d   : > { %p8931_p2 = por %p8930_p6, %p8929_p0 }
 0xf1e   : > { %p8927_p13 = pneg %p8926_p1 }
 0xf1f   : > { %p8933_p5 = por %p8932_p4, %p8931_p2 }
 0xf21   : > { %p8934_p7 = pnand %p8933_p5, %p8927_p13 }
 0xf23   : > { %8937 = shalt.err (!%p8934_p7)
}
 0xf24   : > { %s9047_s23 = smov 128   ;;  %s9048_s29 = smov 8  }
 0xf25   : > { %8008 = dma.vmem_to_hbm [thread:$0]  (%p12198_p10), %s11762_s12, 8192, %s11760_s15, %s5646_s19, %s9047_s23, %s9047_s23, %s9048_s29  }
 0xf26   : > { %s12199_s11 = sld [smem:[#allocation80_spill]]  ;;  %s12200_s19 = sld [smem:[#allocation81_spill]] }
 0xf27   : > { %s11806_s28 = scalar_lea.vmem [#allocation16], %s9466_s22  ;;  %s6145_s22 = sshll.u32 %s9171_s2, 11 }
 0xf28   : > { %s5659_s25 = sshll.u32 %s11806_s28, 4  ;;  %s12201_s1 = sld [smem:[#allocation82_spill]]  ;;  %s11874_s25 = int_to_ptr.vmem [resolvable:$true] %s5659_s25 }
 0xf29   : > { %s5641_s18 = scalar_lea.sflag [#allocation4], %s9463_s6  ;;  %s8938_s3 = scalar_lea.vmem %s11874_s25, 2048 }
 0xf2a   : > { %p8939_p9 = scmp.ne.s32.totalorder %s11874_s25, %s8938_s3  ;;  %s9049_s2 = smov [#allocation16]  }
 0xf2b   : > { %s8942_s4 = sshll.u32 %s9049_s2, 4  ;;  %s8943_s4 = int_to_ptr.vmem [resolvable:$false] %s8942_s4 }
 0xf2c   : > { %v11794_v41 = vld [vmem:[%s12199_s11] ss:$0 sm:$0xff]  ;;  %p8940_p8 = pnand %p8939_p9, %p12198_p10  ;;  %s8944_s11 = scalar_lea.vmem %s8943_s4, 4096 }
 0xf2d   : > { %v11800_v13 = vld [vmem:[%s12200_s19] ss:$0 sm:$0xff]  ;;  %p8945_p3 = scmp.lt.s32.totalorder %s11874_s25, %s8943_s4  ;;  %p8946_p12 = scmp.lt.s32.totalorder %s8944_s11, %s8938_s3 }
 0xf2e   : > { %s11872_s10 = scalar_lea.hbm %s12201_s1, %s6145_s22  ;;  %p8941_p11 = pneg %p8940_p8 }
 0xf2f   : > { %p8947_p1 = por %p8946_p12, %p8945_p3 }
 0xf31   : > { %p8948_p13 = pnand %p8947_p1, %p8941_p11 }
 0xf4e   : > { %v5485_v10 = vpop.xlane.xlu0 %5484 }
 0xf4f   : > { %v5516_v55 = vmul.f32 0.0078125, %v5485_v10 }
 0xf51   : > { %v5532_v39 = vadd.f32 1e-06, %v5516_v55 }
 0xf52   : > { %v5487_v17 = vpop.xlane.xlu1 %5486 }
 0xf53   : > { %8634 = vrsqrt.f32 %v5532_v39  ;;  %v5517_v29 = vmul.f32 0.0078125, %v5487_v17 }
 0xf55   : > { %v5533_v14 = vadd.f32 1e-06, %v5517_v29 }
 0xf56   : > { %v5489_v36 = vpop.xlane.xlu0 %5488 }
 0xf57   : > { %8636 = vrsqrt.f32 %v5533_v14  ;;  %v5518_v12 = vmul.f32 0.0078125, %v5489_v36 }
 0xf59   : > { %v5534_v15 = vadd.f32 1e-06, %v5518_v12 }
 0xf5a   : > { %v5491_v30 = vpop.xlane.xlu1 %5490 }
 0xf5b   : > { %8638 = vrsqrt.f32 %v5534_v15  ;;  %v5519_v4 = vmul.f32 0.0078125, %v5491_v30 }
 0xf5d   : > { %v8635_v26 = vpop.eup %8634  ;;  %v5535_v48 = vadd.f32 1e-06, %v5519_v4 }
 0xf5e   : > { %v5564_v31 = vmul.f32 %v8635_v26, %v11676_v61  ;;  %v5493_v38 = vpop.xlane.xlu0 %5492 }
 0xf5f   : > { %8640 = vrsqrt.f32 %v5535_v48  ;;  %v5520_v28 = vmul.f32 0.0078125, %v5493_v38 }
 0xf60   : > { %v5586_v58 = vmul.f32 %v11794_v41, %v5564_v31 }
 0xf61   : > { %v8637_v6 = vpop.eup %8636  ;;  %v5536_v62 = vadd.f32 1e-06, %v5520_v28 }
 0xf62   : > { %v5608_v9 = vadd.f32 %v11800_v13, %v5586_v58  ;;  %v5565_v47 = vmul.f32 %v8637_v6, %v11681_v56  ;;  %v5495_v21 = vpop.xlane.xlu1 %5494 }
 0xf63   : > { %8642 = vrsqrt.f32 %v5536_v62  ;;  %v5521_v19 = vmul.f32 0.0078125, %v5495_v21 }
 0xf64   : > { %5624 = vst [vmem:[%s11806_s28] sm:$0xff] %v5608_v9  ;;  %v5587_v61 = vmul.f32 %v11794_v41, %v5565_v47 }
 0xf65   : > { %v8639_v22 = vpop.eup %8638  ;;  %v5537_v5 = vadd.f32 1e-06, %v5521_v19 }
 0xf66   : > { %v5609_v25 = vadd.f32 %v11800_v13, %v5587_v61  ;;  %v5566_v57 = vmul.f32 %v8639_v22, %v11686_v35 }
 0xf67   : > { %8644 = vrsqrt.f32 %v5537_v5 }
 0xf68   : > { %5625 = vst [vmem:[%s11806_s28 + $0x8] sm:$0xff] %v5609_v25  ;;  %v5588_v56 = vmul.f32 %v11794_v41, %v5566_v57 }
 0xf69   : > { %v8641_v27 = vpop.eup %8640 }
 0xf6a   : > { %v5610_v45 = vadd.f32 %v11800_v13, %v5588_v56  ;;  %v5567_v44 = vmul.f32 %v8641_v27, %v11691_v0 }
 0xf6c   : > { %5626 = vst [vmem:[%s11806_s28 + $0x10] sm:$0xff] %v5610_v45  ;;  %v5589_v51 = vmul.f32 %v11794_v41, %v5567_v44 }
 0xf6d   : > { %v8643_v18 = vpop.eup %8642 }
 0xf6e   : > { %v5611_v1 = vadd.f32 %v11800_v13, %v5589_v51  ;;  %v5568_v32 = vmul.f32 %v8643_v18, %v11696_v42 }
 0xf70   : > { %5627 = vst [vmem:[%s11806_s28 + $0x18] sm:$0xff] %v5611_v1  ;;  %v5590_v35 = vmul.f32 %v11794_v41, %v5568_v32 }
 0xf71   : > { %v8645_v54 = vpop.eup %8644 }
 0xf72   : > { %v5612_v34 = vadd.f32 %v11800_v13, %v5590_v35  ;;  %v5569_v3 = vmul.f32 %v8645_v54, %v11701_v33 }
 0xf74   : > { %5628 = vst [vmem:[%s11806_s28 + $0x20] sm:$0xff] %v5612_v34  ;;  %v5591_v40 = vmul.f32 %v11794_v41, %v5569_v3 }
 0xf76   : > { %v5613_v0 = vadd.f32 %v11800_v13, %v5591_v40 }
 0xf78   : > { %5629 = vst [vmem:[%s11806_s28 + $0x28] sm:$0xff] %v5613_v0 }
 0xf80   : > { %v5497_v37 = vpop.xlane.xlu0 %5496 }
 0xf81   : > { %v5522_v53 = vmul.f32 0.0078125, %v5497_v37 }
 0xf83   : > { %v5538_v24 = vadd.f32 1e-06, %v5522_v53 }
 0xf84   : > { %v5499_v20 = vpop.xlane.xlu1 %5498 }
 0xf85   : > { %8646 = vrsqrt.f32 %v5538_v24  ;;  %v5523_v42 = vmul.f32 0.0078125, %v5499_v20 }
 0xf87   : > { %v5539_v2 = vadd.f32 1e-06, %v5523_v42 }
 0xf88   : > { %v5501_v49 = vpop.xlane.xlu0 %5500 }
 0xf89   : > { %8648 = vrsqrt.f32 %v5539_v2  ;;  %v5524_v50 = vmul.f32 0.0078125, %v5501_v49 }
 0xf8b   : > { %v5540_v59 = vadd.f32 1e-06, %v5524_v50 }
 0xf8c   : > { %v5503_v10 = vpop.xlane.xlu1 %5502 }
 0xf8d   : > { %8650 = vrsqrt.f32 %v5540_v59  ;;  %v5525_v33 = vmul.f32 0.0078125, %v5503_v10 }
 0xf8f   : > { %v8647_v55 = vpop.eup %8646  ;;  %v5541_v39 = vadd.f32 1e-06, %v5525_v33 }
 0xf90   : > { %v5570_v17 = vmul.f32 %v8647_v55, %v11706_v43  ;;  %v5505_v29 = vpop.xlane.xlu0 %5504 }
 0xf91   : > { %8652 = vrsqrt.f32 %v5541_v39  ;;  %v5526_v14 = vmul.f32 0.0078125, %v5505_v29 }
 0xf92   : > { %v5592_v36 = vmul.f32 %v11794_v41, %v5570_v17 }
 0xf93   : > { %v8649_v12 = vpop.eup %8648  ;;  %v5542_v15 = vadd.f32 1e-06, %v5526_v14 }
 0xf94   : > { %v5614_v30 = vadd.f32 %v11800_v13, %v5592_v36  ;;  %v5571_v4 = vmul.f32 %v8649_v12, %v11711_v7  ;;  %v5507_v26 = vpop.xlane.xlu1 %5506 }
 0xf95   : > { %8654 = vrsqrt.f32 %v5542_v15  ;;  %v5527_v48 = vmul.f32 0.0078125, %v5507_v26 }
 0xf96   : > { %5630 = vst [vmem:[%s11806_s28 + $0x30] sm:$0xff] %v5614_v30  ;;  %v5593_v31 = vmul.f32 %v11794_v41, %v5571_v4 }
 0xf97   : > { %v8651_v38 = vpop.eup %8650  ;;  %v5543_v43 = vadd.f32 1e-06, %v5527_v48 }
 0xf98   : > { %v5615_v28 = vadd.f32 %v11800_v13, %v5593_v31  ;;  %v5572_v58 = vmul.f32 %v8651_v38, %v11716_v63  ;;  %v5509_v6 = vpop.xlane.xlu0 %5508 }
 0xf99   : > { %8656 = vrsqrt.f32 %v5543_v43  ;;  %v5528_v62 = vmul.f32 0.0078125, %v5509_v6 }
 0xf9a   : > { %5631 = vst [vmem:[%s11806_s28 + $0x38] sm:$0xff] %v5615_v28  ;;  %v5594_v9 = vmul.f32 %v11794_v41, %v5572_v58 }
 0xf9b   : > { %v8653_v7 = vpop.eup %8652  ;;  %v5544_v47 = vadd.f32 1e-06, %v5528_v62 }
 0xf9c   : > { %v5616_v21 = vadd.f32 %v11800_v13, %v5594_v9  ;;  %v5573_v19 = vmul.f32 %v8653_v7, %v11721_v52  ;;  %v5511_v61 = vpop.xlane.xlu1 %5510 }
 0xf9d   : > { %8658 = vrsqrt.f32 %v5544_v47  ;;  %v5529_v22 = vmul.f32 0.0078125, %v5511_v61 }
 0xf9e   : > { %5632 = vst [vmem:[%s11806_s28 + $0x40] sm:$0xff] %v5616_v21  ;;  %v5595_v5 = vmul.f32 %v11794_v41, %v5573_v19 }
 0xf9f   : > { %v8655_v63 = vpop.eup %8654  ;;  %v5545_v25 = vadd.f32 1e-06, %v5529_v22 }
 0xfa0   : > { %v5617_v57 = vadd.f32 %v11800_v13, %v5595_v5  ;;  %v5574_v56 = vmul.f32 %v8655_v63, %v11726_v23  ;;  %v5513_v27 = vpop.xlane.xlu0 %5512 }
 0xfa1   : > { %8660 = vrsqrt.f32 %v5545_v25  ;;  %v5530_v45 = vmul.f32 0.0078125, %v5513_v27 }
 0xfa2   : > { %5633 = vst [vmem:[%s11806_s28 + $0x48] sm:$0xff] %v5617_v57  ;;  %v5596_v52 = vmul.f32 %v11794_v41, %v5574_v56 }
 0xfa3   : > { %v8657_v44 = vpop.eup %8656  ;;  %v5546_v51 = vadd.f32 1e-06, %v5530_v45 }
 0xfa4   : > { %v5618_v18 = vadd.f32 %v11800_v13, %v5596_v52  ;;  %v5575_v1 = vmul.f32 %v8657_v44, %v11731_v11  ;;  %v5515_v32 = vpop.xlane.xlu1 %5514 }
 0xfa5   : > { %8662 = vrsqrt.f32 %v5546_v51  ;;  %v5531_v35 = vmul.f32 0.0078125, %v5515_v32 }
 0xfa6   : > { %5634 = vst [vmem:[%s11806_s28 + $0x50] sm:$0xff] %v5618_v18  ;;  %v5597_v23 = vmul.f32 %v11794_v41, %v5575_v1 }
 0xfa7   : > { %v8659_v54 = vpop.eup %8658  ;;  %v5547_v34 = vadd.f32 1e-06, %v5531_v35 }
 0xfa8   : > { %v5619_v3 = vadd.f32 %v11800_v13, %v5597_v23  ;;  %v5576_v40 = vmul.f32 %v8659_v54, %v11736_v8 }
 0xfa9   : > { %8664 = vrsqrt.f32 %v5547_v34 }
 0xfaa   : > { %5635 = vst [vmem:[%s11806_s28 + $0x58] sm:$0xff] %v5619_v3  ;;  %v5598_v11 = vmul.f32 %v11794_v41, %v5576_v40 }
 0xfab   : > { %v8661_v0 = vpop.eup %8660 }
 0xfac   : > { %v5620_v37 = vadd.f32 %v11800_v13, %v5598_v11  ;;  %v5577_v53 = vmul.f32 %v8661_v0, %v11741_v16 }
 0xfae   : > { %5636 = vst [vmem:[%s11806_s28 + $0x60] sm:$0xff] %v5620_v37  ;;  %v5599_v24 = vmul.f32 %v11794_v41, %v5577_v53 }
 0xfaf   : > { %v8663_v20 = vpop.eup %8662 }
 0xfb0   : > { %v5621_v8 = vadd.f32 %v11800_v13, %v5599_v24  ;;  %v5578_v42 = vmul.f32 %v8663_v20, %v11746_v46 }
 0xfb2   : > { %5637 = vst [vmem:[%s11806_s28 + $0x68] sm:$0xff] %v5621_v8  ;;  %v5600_v2 = vmul.f32 %v11794_v41, %v5578_v42 }
 0xfb3   : > { %v8665_v49 = vpop.eup %8664 }
 0xfb4   : > { %v5622_v50 = vadd.f32 %v11800_v13, %v5600_v2  ;;  %v5579_v59 = vmul.f32 %v8665_v49, %v11751_v60 }
 0xfb6   : > { %5638 = vst [vmem:[%s11806_s28 + $0x70] sm:$0xff] %v5622_v50  ;;  %v5601_v16 = vmul.f32 %v11794_v41, %v5579_v59 }
 0xfb8   : > { %v5623_v10 = vadd.f32 %v11800_v13, %v5601_v16 }
 0xfba   : > { %5639 = vst [vmem:[%s11806_s28 + $0x78] sm:$0xff] %v5623_v10 }
 0xfbb   : > { %8951 = shalt.err (!%p8948_p13)
}
 0xfbc   : > { %s8952_s12 = scalar_lea.hbm %s11872_s10, 2048  ;;  %s8956_s28 = scalar_lea.hbm %s12201_s1, 4096 }
 0xfbd   : > { %p8953_p0 = scmp.ne.s32.totalorder %s11872_s10, %s8952_s12  ;;  %p8957_p4 = scmp.lt.u32.totalorder %s11872_s10, %s12201_s1 }
 0xfbe   : > { %p8958_p5 = scmp.lt.u32.totalorder %s8956_s28, %s8952_s12  ;;  %p8960_p9 = scmp.lt.u32.totalorder %s8952_s12, %s11872_s10 }
 0xfbf   : > { %p8954_p6 = pnand %p8953_p0, %p12198_p10 }
 0xfc0   : > { %p8959_p7 = por %p8958_p5, %p8957_p4 }
 0xfc1   : > { %p8955_p2 = pneg %p8954_p6 }
 0xfc2   : > { %p8961_p8 = por %p8960_p9, %p8959_p7 }
 0xfc4   : > { %p8962_p11 = pnand %p8961_p8, %p8955_p2 }
 0xfc6   : > { %8965 = shalt.err (!%p8962_p11)
}
 0xfc7   : > { %8007 = dma.vmem_to_hbm [thread:$0]  (%p12198_p10), %s11874_s25, 2048, %s11872_s10, %s5641_s18, %s9047_s23, %s9047_s23, %s9048_s29  }
 0xfc8 PF: > { %s5690_s14 = sand.u32 1, %s9016_s0   ;;  %p12202_p3 = scmp.ne.s32.totalorder %s12052_s16, 0 }
 0xfc9   : > { %p12203_p12 = scmp.ge.s32.totalorder %s9028_s21, 2  ;;  %s5691_s3 = scalar_lea.sflag [#allocation4], %s5690_s14 }
 0xfcb   : > { %p8038_p1 = pnand %p12203_p12, %p12202_p3 }
 0xfcd   : > { %9007 = dma.done.wait (!%p8038_p1), %s5691_s3, 2048  }
 0xfce   : > { %9009 = vsyncadd (!%p8038_p1), %s5691_s3, 4294965248  ;;  %s5700_s26 = scalar_lea.sflag [#allocation18], %s5690_s14 }
 0xfcf   : > { %9011 = dma.done.wait (!%p8038_p1), %s5700_s26, 8192  }
 0xfd0   : > { %9013 = vsyncadd (!%p8038_p1), %s5700_s26, 4294959104  ;;  %s12204_s6 = sld [smem:[#allocation27_spill]]  ;;  %p42_p10 = scmp.ge.s32.totalorder %s9341_s24, 4  }
 0xfd1   : > { %s12205_s0 = smov %s9020_s30  ;;  %s12206_s30 = smov %s9024_s20 }
 0xfd2   : > { %s12208_s21 = smov %s9341_s24  ;;  %44 = sbr.rel (!%p42_p10) target bundleno = 30 (0x1e), region = 194 }
 0xfd6   : > { %s12207_s20 = smov %s12204_s6 }
 0xfd9   :  { %5705 = vsyncpa [#allocation3], 1 }
 0xfda   :  { %5707 = vsyncpa [#allocation3 + $0x1], 1 }
 0xfdb   :  { %5708 = vsyncpa [#allocation6], 1 }
 0xfdc   :  { %5710 = vsyncpa [#allocation6 + $0x1], 1 }
 0xfdd   :  { %5711 = vsyncpa [#allocation9], 1 }
 0xfde   :  { %5712 = vsyncpa [#allocation12], 1 }
 0xfdf   :  { %5713 = vsyncpa [#allocation15], 1 }
 0xfe0   :  { %5714 = vsyncpa [#allocation4], 1 }
 0xfe1   :  { %5716 = vsyncpa [#allocation4 + $0x1], 1 }
 0xfe2   :  { %5717 = vsyncpa [#allocation18], 1 }
 0xfe3   :  { %5719 = vsyncpa [#allocation18 + $0x1], 1 }

</bundles_post_ra>
